<compile_context>
chip_gen: v6e
topology: v6e:2x2x1
jax: 0.10.0
libtpu: 0.0.40
codegen_flags: <defaults>
</compile_context>

<pallas_src>
import math
import functools

import jax
import jax.numpy as jnp
from jax.experimental import pallas as pl
from jax.experimental.pallas import tpu as pltpu


HIDDEN = 128
LANE = 128            # lane-dense padded width of the output head (action_dim -> 128)
NEG_BIG = -1.0e30     # logit filler for padded action columns -> exp underflows to 0


def policy_kernel(x_ref, w1_ref, b1_ref, w2_ref, b2_ref, out_ref):
    # x: (tb, state_dim) f32 ; w1: (state_dim, HIDDEN) bf16 ; b1: (1, HIDDEN) f32
    # w2: (HIDDEN, LANE) bf16 ; b2: (1, LANE) f32 (NEG_BIG on padded columns)
    # out: (tb, action_dim) f32
    x_bf = x_ref[...].astype(jnp.bfloat16)
    h = jnp.tanh(
        jnp.dot(x_bf, w1_ref[...], preferred_element_type=jnp.float32)
        + b1_ref[...]                                   # (1, HIDDEN) broadcast
    )                                                   # (tb, HIDDEN) f32
    logits = (
        jnp.dot(h.astype(jnp.bfloat16), w2_ref[...],
                preferred_element_type=jnp.float32)
        + b2_ref[...]                                   # (1, LANE) broadcast
    )                                                   # (tb, LANE) f32
    # Numerically-stable softmax over the padded lane dimension (padded cols -> 0),
    # exact normalization (divide) so downstream log-prob math is safe.
    m = jnp.max(logits, axis=-1, keepdims=True)
    e = jnp.exp(logits - m)
    probs = e / jnp.sum(e, axis=-1, keepdims=True)      # (tb, LANE) f32
    # Only the real action columns are stored (masked narrow store; cheap vs. a
    # full 128-wide f32 slab writeback + wrapper slice).
    out_ref[...] = probs[:, : out_ref.shape[1]].astype(out_ref.dtype)


def _round_up(n, m):
    return ((n + m - 1) // m) * m


def prepare_params(w1, b1, w2, b2):
    """One-time parameter prep (hoisted out of the per-call forward path).

    Returns (w1_bf16, b1_row_f32, w2_padded_bf16, b2_padded_f32, action_dim).
    """
    hidden, action_dim = w2.shape
    w1_bf = jnp.asarray(w1, jnp.bfloat16)                              # (state_dim, HIDDEN)
    b1r = jnp.asarray(b1, jnp.float32).reshape(1, hidden)              # (1, HIDDEN)
    w2p = (
        jnp.zeros((hidden, LANE), jnp.float32)
        .at[:, :action_dim]
        .set(jnp.asarray(w2, jnp.float32))
        .astype(jnp.bfloat16)
    )                                                                  # (HIDDEN, LANE)
    b2p = (
        jnp.full((1, LANE), NEG_BIG, jnp.float32)
        .at[:, :action_dim]
        .set(jnp.asarray(b2, jnp.float32).reshape(1, action_dim))
    )                                                                  # (1, LANE)
    return w1_bf, b1r, w2p, b2p, action_dim


@functools.partial(
    jax.jit, static_argnames=("action_dim", "block_b", "min_kernel_batch")
)
def policy_forward(x, w1_bf, b1r, w2p_bf, b2p, *, action_dim,
                   block_b=2048, min_kernel_batch=512):
    """y = softmax(tanh(x @ W1 + b1) @ W2 + b2, axis=-1)."""
    B, state_dim = x.shape
    hidden = w1_bf.shape[1]
    x = x.astype(jnp.float32)

    if B < min_kernel_batch:
        # Tiny batches (e.g. single-env action selection): pallas_call launch
        # cost dominates, so use the plain jnp expression (same bf16 math).
        h = jnp.tanh(
            jnp.dot(x.astype(jnp.bfloat16), w1_bf,
                    preferred_element_type=jnp.float32) + b1r)
        logits = jnp.dot(h.astype(jnp.bfloat16), w2p_bf,
                         preferred_element_type=jnp.float32) + b2p
        return jax.nn.softmax(logits, axis=-1)[:, :action_dim]

    # Tile the batch so there are >= 2 grid steps when possible (lets the
    # "parallel" axis shard across v7x's two TensorCores), capped at block_b
    # so single-TC v5e/v6e still run in 1-2 serial steps.
    tb = min(block_b, _round_up(pl.cdiv(B, 2), 8))
    grid = (pl.cdiv(B, tb),)   # ragged last block: padded read, masked write

    return pl.pallas_call(
        policy_kernel,
        out_shape=jax.ShapeDtypeStruct((B, action_dim), jnp.float32),
        grid_spec=pltpu.PrefetchScalarGridSpec(
            num_scalar_prefetch=0,
            grid=grid,
            in_specs=[
                pl.BlockSpec((tb, state_dim), lambda i: (i, 0)),      # x tile (streamed)
                pl.BlockSpec((state_dim, hidden), lambda i: (0, 0)),  # W1 (resident)
                pl.BlockSpec((1, hidden), lambda i: (0, 0)),          # b1 (resident)
                pl.BlockSpec((hidden, LANE), lambda i: (0, 0)),       # W2 (resident)
                pl.BlockSpec((1, LANE), lambda i: (0, 0)),            # b2 (resident)
            ],
            out_specs=pl.BlockSpec((tb, action_dim), lambda i: (i, 0)),  # narrow output
        ),
        compiler_params=pltpu.CompilerParams(
            dimension_semantics=("parallel",),   # shard batch across TCs on v7x
        ),
    )(x, w1_bf, b1r, w2p_bf, b2p)


def init_params(key, state_dim, action_dim):
    """Deterministic init mirroring torch.nn.Linear default (uniform +-1/sqrt(fan_in))."""
    k1, k2, k3, k4 = jax.random.split(key, 4)
    bound1 = 1.0 / math.sqrt(state_dim)
    bound2 = 1.0 / math.sqrt(HIDDEN)
    w1 = jax.random.uniform(k1, (state_dim, HIDDEN), jnp.float32, -bound1, bound1)
    b1 = jax.random.uniform(k2, (1, HIDDEN), jnp.float32, -bound1, bound1)
    w2 = jax.random.uniform(k3, (HIDDEN, action_dim), jnp.float32, -bound2, bound2)
    b2 = jax.random.uniform(k4, (1, action_dim), jnp.float32, -bound2, bound2)
    return w1, b1, w2, b2


if __name__ == "__main__":
    key = jax.random.PRNGKey(0)
    k_x, k_p, k_x2, k_x3 = jax.random.split(key, 4)

    # CartPole-like sizes: state_dim=4, action_dim=2.
    state_dim, action_dim = 4, 2
    w1, b1, w2, b2 = init_params(k_p, state_dim, action_dim)
    w1_bf, b1r, w2p_bf, b2p, adim = prepare_params(w1, b1, w2, b2)

    def ref_fn(xx):  # pure-JAX f32 reference
        h = jnp.tanh(xx @ w1 + b1)
        return jax.nn.softmax(h @ w2 + b2, axis=-1)

    # Rollout-sized batch -> Pallas kernel path (2 grid steps of 1024 rows).
    big_b = 2048
    xb = jax.random.normal(k_x2, (big_b, state_dim), jnp.float32)
    probs_b = jax.block_until_ready(
        policy_forward(xb, w1_bf, b1r, w2p_bf, b2p, action_dim=adim))
    ref_b = ref_fn(xb)
    assert probs_b.shape == (big_b, action_dim)
    assert jnp.allclose(probs_b, ref_b, atol=2e-2, rtol=2e-2)          # bf16 MXU path
    assert jnp.allclose(jnp.sum(probs_b, axis=-1), 1.0, atol=1e-4)     # exact normalization

    # Ragged batch (non-divisible by the tile) -> masked last block.
    rag_b = 1000
    xr = jax.random.normal(k_x3, (rag_b, state_dim), jnp.float32)
    probs_r = jax.block_until_ready(
        policy_forward(xr, w1_bf, b1r, w2p_bf, b2p, action_dim=adim))
    ref_r = ref_fn(xr)
    assert probs_r.shape == (rag_b, action_dim)
    assert jnp.allclose(probs_r, ref_r, atol=2e-2, rtol=2e-2)
    assert jnp.allclose(jnp.sum(probs_r, axis=-1), 1.0, atol=1e-4)

    # Tiny batch (single-env action selection) -> jnp fallback path.
    small_b = 8
    xs = jax.random.normal(k_x, (small_b, state_dim), jnp.float32)
    probs_s = jax.block_until_ready(
        policy_forward(xs, w1_bf, b1r, w2p_bf, b2p, action_dim=adim))
    ref_s = ref_fn(xs)
    assert probs_s.shape == (small_b, action_dim)
    assert jnp.allclose(probs_s, ref_s, atol=2e-2, rtol=2e-2)
    assert jnp.allclose(jnp.sum(probs_s, axis=-1), 1.0, atol=1e-4)

    print("KERNEL_OK")
</pallas_src>

<mosaic_0001>
module attributes {stable_mosaic.version = 11 : i64} {
  func.func @policy_kernel(%arg0: i32, %arg1: memref<1024x4xf32, #tpu.memory_space<vmem>>, %arg2: memref<4x128xbf16, #tpu.memory_space<vmem>>, %arg3: memref<1x128xf32, #tpu.memory_space<vmem>>, %arg4: memref<128x128xbf16, #tpu.memory_space<vmem>>, %arg5: memref<1x128xf32, #tpu.memory_space<vmem>>, %arg6: memref<1024x2xf32, #tpu.memory_space<vmem>>) attributes {dimension_semantics = [#tpu.dimension_semantics<parallel>], iteration_bounds = array<i64: 2>, scalar_prefetch = 0 : i64, scratch_operands = 0 : i64, tpu.core_type = #tpu.core_type<tc>, window_params = [{transform_indices = @transform_0, window_bounds = array<i64: 1024, 4>}, {pipeline_mode = #tpu.pipeline_mode<synchronous>, transform_indices = @transform_1, window_bounds = array<i64: 4, 128>}, {pipeline_mode = #tpu.pipeline_mode<synchronous>, transform_indices = @transform_2, window_bounds = array<i64: 1, 128>}, {pipeline_mode = #tpu.pipeline_mode<synchronous>, transform_indices = @transform_3, window_bounds = array<i64: 128, 128>}, {pipeline_mode = #tpu.pipeline_mode<synchronous>, transform_indices = @transform_4, window_bounds = array<i64: 1, 128>}, {transform_indices = @transform_5, window_bounds = array<i64: 1024, 2>}]} {
    %c0 = arith.constant 0 : index
    %c0_0 = arith.constant 0 : index
    %0 = vector.load %arg1[%c0, %c0_0] : memref<1024x4xf32, #tpu.memory_space<vmem>>, vector<1024x4xf32>
    %1 = arith.truncf %0 : vector<1024x4xf32> to vector<1024x4xbf16>
    %c0_1 = arith.constant 0 : index
    %c0_2 = arith.constant 0 : index
    %2 = vector.load %arg2[%c0_1, %c0_2] : memref<4x128xbf16, #tpu.memory_space<vmem>>, vector<4x128xbf16>
    %cst = arith.constant dense<0.000000e+00> : vector<1024x128xf32>
    %3 = tpu.matmul %1, %2, %cst {dimension_numbers = #tpu.dot_dimension_numbers<[1], [0], [0], [1], [0, 0, 1, 1], [], []>} : vector<1024x4xbf16>, vector<4x128xbf16>, vector<1024x128xf32> -> vector<1024x128xf32>
    %c0_3 = arith.constant 0 : index
    %c0_4 = arith.constant 0 : index
    %4 = vector.load %arg3[%c0_3, %c0_4] : memref<1x128xf32, #tpu.memory_space<vmem>>, vector<1x128xf32>
    %5 = vector.broadcast %4 : vector<1x128xf32> to vector<1024x128xf32>
    %6 = arith.addf %3, %5 : vector<1024x128xf32>
    %7 = math.tanh %6 : vector<1024x128xf32>
    %8 = arith.truncf %7 : vector<1024x128xf32> to vector<1024x128xbf16>
    %c0_5 = arith.constant 0 : index
    %c0_6 = arith.constant 0 : index
    %9 = vector.load %arg4[%c0_5, %c0_6] : memref<128x128xbf16, #tpu.memory_space<vmem>>, vector<128x128xbf16>
    %cst_7 = arith.constant dense<0.000000e+00> : vector<1024x128xf32>
    %10 = tpu.matmul %8, %9, %cst_7 {dimension_numbers = #tpu.dot_dimension_numbers<[1], [0], [0], [1], [0, 0, 1, 1], [], []>} : vector<1024x128xbf16>, vector<128x128xbf16>, vector<1024x128xf32> -> vector<1024x128xf32>
    %c0_8 = arith.constant 0 : index
    %c0_9 = arith.constant 0 : index
    %11 = vector.load %arg5[%c0_8, %c0_9] : memref<1x128xf32, #tpu.memory_space<vmem>>, vector<1x128xf32>
    %12 = vector.broadcast %11 : vector<1x128xf32> to vector<1024x128xf32>
    %13 = arith.addf %10, %12 : vector<1024x128xf32>
    %cst_10 = arith.constant dense<0xFF800000> : vector<1024xf32>
    %14 = vector.multi_reduction <maximumf>, %13, %cst_10 [1] : vector<1024x128xf32> to vector<1024xf32>
    %15 = vector.shape_cast %14 : vector<1024xf32> to vector<1024x1xf32>
    %16 = vector.broadcast %15 : vector<1024x1xf32> to vector<1024x128xf32>
    %17 = arith.subf %13, %16 : vector<1024x128xf32>
    %18 = math.exp %17 : vector<1024x128xf32>
    %cst_11 = arith.constant dense<0.000000e+00> : vector<1024xf32>
    %19 = vector.multi_reduction <add>, %18, %cst_11 [1] : vector<1024x128xf32> to vector<1024xf32>
    %20 = vector.shape_cast %19 : vector<1024xf32> to vector<1024x1xf32>
    %21 = vector.broadcast %20 : vector<1024x1xf32> to vector<1024x128xf32>
    %22 = arith.divf %18, %21 : vector<1024x128xf32>
    %23 = vector.extract_strided_slice %22 {offsets = [0, 0], sizes = [1024, 2], strides = [1, 1]} : vector<1024x128xf32> to vector<1024x2xf32>
    %c0_12 = arith.constant 0 : index
    %c0_13 = arith.constant 0 : index
    %24 = vector.load %arg6[%c0_12, %c0_13] : memref<1024x2xf32, #tpu.memory_space<vmem>>, vector<1024x2xf32>
    tpu.vector_store %arg6[%c0_12, %c0_13], %23 {strides = array<i32>} : memref<1024x2xf32, #tpu.memory_space<vmem>>, vector<1024x2xf32>,
    return
  }
  func.func @transform_0(%arg0: i32) -> (i32, i32) {
    %c0_i32 = arith.constant 0 : i32
    %c0_i32_0 = arith.constant 0 : i32
    return %arg0, %c0_i32 : i32, i32
  }
  func.func @transform_1(%arg0: i32) -> (i32, i32) {
    %c0_i32 = arith.constant 0 : i32
    %c0_i32_0 = arith.constant 0 : i32
    %c0_i32_1 = arith.constant 0 : i32
    return %c0_i32, %c0_i32_0 : i32, i32
  }
  func.func @transform_2(%arg0: i32) -> (i32, i32) {
    %c0_i32 = arith.constant 0 : i32
    %c0_i32_0 = arith.constant 0 : i32
    %c0_i32_1 = arith.constant 0 : i32
    return %c0_i32, %c0_i32_0 : i32, i32
  }
  func.func @transform_3(%arg0: i32) -> (i32, i32) {
    %c0_i32 = arith.constant 0 : i32
    %c0_i32_0 = arith.constant 0 : i32
    %c0_i32_1 = arith.constant 0 : i32
    return %c0_i32, %c0_i32_0 : i32, i32
  }
  func.func @transform_4(%arg0: i32) -> (i32, i32) {
    %c0_i32 = arith.constant 0 : i32
    %c0_i32_0 = arith.constant 0 : i32
    %c0_i32_1 = arith.constant 0 : i32
    return %c0_i32, %c0_i32_0 : i32, i32
  }
  func.func @transform_5(%arg0: i32) -> (i32, i32) {
    %c0_i32 = arith.constant 0 : i32
    %c0_i32_0 = arith.constant 0 : i32
    return %arg0, %c0_i32 : i32, i32
  }
}

</mosaic_0001>

<bundles_post_ra>
// kernel: policy_forward.1
= control target key start
LH: loop header
LB: loop body
LE: loop exit
PB: predicated region body
PF: predicated region fallthrough
CT: control target
= control target key end

     0   :  { %s4653_s18 = smov 0   ;;  %s6804_s0 = inlined_call_operand.vmem [shape: f32[2048,4], index: 0, kind: input, shape index: {}]   ;;  %s6805_s1 = inlined_call_operand.vmem [shape: bf16[4,128], index: 1, kind: input, shape index: {}]   ;;  %s6806_s2 = inlined_call_operand.vmem [shape: f32[1,128], index: 2, kind: input, shape index: {}]   ;;  %s6807_s3 = inlined_call_operand.vmem [shape: bf16[128,128], index: 3, kind: input, shape index: {}]   ;;  %s6808_s4 = inlined_call_operand.vmem [shape: f32[1,128], index: 4, kind: input, shape index: {}]   ;;  %s6809_s5 = inlined_call_operand.vmem [shape: f32[2048,2], index: 5, kind: output, shape index: {}]  }
   0x1 LB: > { %s3316_s19 = sadd.s32 4294967295, %s4621_s18   ;;  %p3320_p0 = scmp.ge.s32.totalorder %s4621_s18, 1  ;;  %s4621_s18 = sphi %s4653_s18, %s15_s18  }
   0x2   : > { %p188_p1 = scmp.lt.s32.totalorder %s4621_s18, 3 }
   0x4   : > { %p189_p2 = pnand %p3320_p0, %p188_p1 }
   0x6   : > { %192 = sbr.rel (%p189_p2) target bundleno = 1110 (0x456), region = 40 }
   0xb   : > { %v421_v0 = vld [vmem:[%s6805_s1] sm:$0x3]  ;;  %vm622_vm0 = vcmask 1041408   ;;  %s3321_s22 = sshll.u32 %s3316_s19, 7  ;;  %v3837_v1 = vld [vmem:[%s6807_s3 + $0x38] sm:$0xff]   ;;  %v3838_v3 = vld [vmem:[%s6807_s3 + $0x30] sm:$0xff]  }
   0xc   : > { %3828 = vmatprep.subr.msk.bf16.mxu0 %vm622_vm0, %v421_v0  ;;  %v624_v2 = vsel %vm622_vm0, %v421_v0, 0  ;;  %p217_p3 = scmp.lt.s32.totalorder %s3321_s22, 255  ;;  %3812 = vmatprep.subr.bf16.mxu1 %v3837_v1  ;;  %v3839_v4 = vld [vmem:[%s6807_s3 + $0x28] sm:$0xff]   ;;  %vm429_vm1 = vcmask 31744   ;;  %v3840_v14 = vld [vmem:[%s6807_s3 + $0x20] sm:$0xff]   ;;  %v3841_v31 = vld [vmem:[%s6807_s3 + $0x18] sm:$0xff]  }
   0xd   : > { %3539 = vmatpush3.bf16.msra.mxu0 %v624_v2  ;;  %3820 = vmatpush3.bf16.msra.mxu1 %v3837_v1  ;;  %v3842_v40 = vld [vmem:[%s6807_s3 + $0x10] sm:$0xff]   ;;  %vm3131_vm2 = vcmask 15360  }
   0xe   : > { %s7246_s22 = smov (!%p217_p3, %s3321_s22), 255  ;;  %3668 = vmatprep.subr.bf16.mxu0 %v3837_v1  ;;  %3813 = vmatprep.subr.bf16.mxu1 %v3838_v3 }
   0xf   : > { %s3322_s29 = sshll.u32 %s7246_s22, 3 }
  0x10   : > { %s4681_s7 = scalar_lea.vmem %s6804_s0, %s3322_s29  ;;  %s5901_s6 = scalar_lea.vmem %s6809_s5, %s3322_s29 }
  0x11   : > { %v229_v5 = vld [vmem:[%s4681_s7] sm:$0xff]  ;;  %v230_v6 = vld [vmem:[%s4681_s7 + $0x8] sm:$0xff]  ;;  %v231_v7 = vld [vmem:[%s4681_s7 + $0x10] sm:$0xff]  ;;  %3821 = vmatpush3.bf16.msra.mxu1 %v3838_v3 }
  0x12   : > { %v357_v8 = vpack.c.bf16 %v230_v6, %v229_v5  ;;  %v232_v9 = vld [vmem:[%s4681_s7 + $0x18] sm:$0xff]  ;;  %v233_v10 = vld [vmem:[%s4681_s7 + $0x20] sm:$0xff]  ;;  %v234_v11 = vld [vmem:[%s4681_s7 + $0x28] sm:$0xff]  ;;  %3814 = vmatprep.subr.bf16.mxu1 %v3839_v4 }
  0x13   : > { %v358_v12 = vpack.c.bf16 %v232_v9, %v231_v7  ;;  %v359_v13 = vpack.c.bf16 %v234_v11, %v233_v10  ;;  %v235_v15 = vld [vmem:[%s4681_s7 + $0x30] sm:$0xff]  ;;  %v236_v16 = vld [vmem:[%s4681_s7 + $0x38] sm:$0xff]  ;;  %v237_v17 = vld [vmem:[%s4681_s7 + $0x40] sm:$0xff] }
  0x14   : > { %3540 = vmatprep.mubr.msk.bf16.mxu0 %vm429_vm1, %v357_v8  ;;  %v238_v18 = vld [vmem:[%s4681_s7 + $0x48] sm:$0xff]  ;;  %v360_v19 = vpack.c.bf16 %v236_v16, %v235_v15  ;;  %v239_v21 = vld [vmem:[%s4681_s7 + $0x50] sm:$0xff]  ;;  %v240_v22 = vld [vmem:[%s4681_s7 + $0x58] sm:$0xff] }
  0x15   : > { %3541 = vmatmul.mubr.msk.bf16.vlgmr.msra.gmra.mxu0 %vm429_vm1, %v358_v12  ;;  %3822 = vmatpush3.bf16.msra.mxu1 %v3839_v4  ;;  %v361_v20 = vpack.c.bf16 %v238_v18, %v237_v17  ;;  %v241_v23 = vld [vmem:[%s4681_s7 + $0x60] sm:$0xff]  ;;  %v242_v24 = vld [vmem:[%s4681_s7 + $0x68] sm:$0xff]  ;;  %v362_v25 = vpack.c.bf16 %v240_v22, %v239_v21  ;;  %v243_v27 = vld [vmem:[%s4681_s7 + $0x70] sm:$0xff] }
  0x16   : > { %3669 = vmatpush3.bf16.msra.mxu0 %v3837_v1  ;;  %3544 = vmatprep.mubr.msk.bf16.mxu0 %vm429_vm1, %v359_v13  ;;  %v363_v26 = vpack.c.bf16 %v242_v24, %v241_v23  ;;  %v244_v28 = vld [vmem:[%s4681_s7 + $0x78] sm:$0xff]  ;;  %v245_v29 = vld [vmem:[%s4681_s7 + $0x80] sm:$0xff]  ;;  %v246_v30 = vld [vmem:[%s4681_s7 + $0x88] sm:$0xff] }
  0x17   : > { %3670 = vmatprep.subr.bf16.mxu0 %v3838_v3  ;;  %3815 = vmatprep.subr.bf16.mxu1 %v3840_v14  ;;  %v364_v32 = vpack.c.bf16 %v244_v28, %v243_v27  ;;  %v365_v33 = vpack.c.bf16 %v246_v30, %v245_v29  ;;  %v247_v34 = vld [vmem:[%s4681_s7 + $0x90] sm:$0xff]  ;;  %v248_v35 = vld [vmem:[%s4681_s7 + $0x98] sm:$0xff]  ;;  %v249_v36 = vld [vmem:[%s4681_s7 + $0xa0] sm:$0xff] }
  0x18   : > { %v250_v37 = vld [vmem:[%s4681_s7 + $0xa8] sm:$0xff]  ;;  %v366_v38 = vpack.c.bf16 %v248_v35, %v247_v34  ;;  %v251_v41 = vld [vmem:[%s4681_s7 + $0xb0] sm:$0xff]  ;;  %v252_v42 = vld [vmem:[%s4681_s7 + $0xb8] sm:$0xff] }
  0x19   : > { %3823 = vmatpush3.bf16.msra.mxu1 %v3840_v14  ;;  %v367_v39 = vpack.c.bf16 %v250_v37, %v249_v36  ;;  %v253_v43 = vld [vmem:[%s4681_s7 + $0xc0] sm:$0xff]  ;;  %v254_v44 = vld [vmem:[%s4681_s7 + $0xc8] sm:$0xff]  ;;  %v368_v45 = vpack.c.bf16 %v252_v42, %v251_v41  ;;  %v255_v47 = vld [vmem:[%s4681_s7 + $0xd0] sm:$0xff] }
  0x1a   : > { %3671 = vmatpush3.bf16.msra.mxu0 %v3838_v3  ;;  %3816 = vmatprep.subr.bf16.mxu1 %v3841_v31  ;;  %v369_v46 = vpack.c.bf16 %v254_v44, %v253_v43  ;;  %v256_v48 = vld [vmem:[%s4681_s7 + $0xd8] sm:$0xff]  ;;  %v257_v49 = vld [vmem:[%s4681_s7 + $0xe0] sm:$0xff]  ;;  %v258_v50 = vld [vmem:[%s4681_s7 + $0xe8] sm:$0xff] }
  0x1b   : > { %3672 = vmatprep.subr.bf16.mxu0 %v3839_v4  ;;  %v370_v51 = vpack.c.bf16 %v256_v48, %v255_v47  ;;  %v371_v52 = vpack.c.bf16 %v258_v50, %v257_v49  ;;  %v259_v53 = vld [vmem:[%s4681_s7 + $0xf0] sm:$0xff]  ;;  %v260_v54 = vld [vmem:[%s4681_s7 + $0xf8] sm:$0xff]  ;;  %v261_v55 = vld [vmem:[%s4681_s7 + $0x100] sm:$0xff] }
  0x1c   : > { %v262_v56 = vld [vmem:[%s4681_s7 + $0x108] sm:$0xff]  ;;  %v372_v57 = vpack.c.bf16 %v260_v54, %v259_v53  ;;  %v263_v59 = vld [vmem:[%s4681_s7 + $0x110] sm:$0xff]  ;;  %v264_v60 = vld [vmem:[%s4681_s7 + $0x118] sm:$0xff] }
  0x1d   : > { %3545 = vmatmul.mubr.msk.bf16.gmra.mxu0 %vm429_vm1, %v360_v19  ;;  %3824 = vmatpush3.bf16.msra.mxu1 %v3841_v31  ;;  %v373_v58 = vpack.c.bf16 %v262_v56, %v261_v55  ;;  %v265_v61 = vld [vmem:[%s4681_s7 + $0x120] sm:$0xff]  ;;  %v266_v62 = vld [vmem:[%s4681_s7 + $0x128] sm:$0xff]  ;;  %v374_v63 = vpack.c.bf16 %v264_v60, %v263_v59  ;;  %v267_v1 = vld [vmem:[%s4681_s7 + $0x130] sm:$0xff] }
  0x1e   : > { %3548 = vmatprep.mubr.msk.bf16.mxu0 %vm429_vm1, %v361_v20  ;;  %3673 = vmatpush3.bf16.msra.mxu0 %v3839_v4  ;;  %v375_v0 = vpack.c.bf16 %v266_v62, %v265_v61  ;;  %v268_v2 = vld [vmem:[%s4681_s7 + $0x138] sm:$0xff]  ;;  %v269_v3 = vld [vmem:[%s4681_s7 + $0x140] sm:$0xff]  ;;  %v270_v4 = vld [vmem:[%s4681_s7 + $0x148] sm:$0xff] }
  0x1f   : > { %3674 = vmatprep.subr.bf16.mxu0 %v3840_v14  ;;  %3817 = vmatprep.subr.bf16.mxu1 %v3842_v40  ;;  %v3843_v5 = vld [vmem:[%s6807_s3 + $0x8] sm:$0xff]   ;;  %v376_v6 = vpack.c.bf16 %v268_v2, %v267_v1  ;;  %v377_v7 = vpack.c.bf16 %v270_v4, %v269_v3  ;;  %v271_v8 = vld [vmem:[%s4681_s7 + $0x150] sm:$0xff]  ;;  %v272_v9 = vld [vmem:[%s4681_s7 + $0x158] sm:$0xff] }
  0x20   : > { %v273_v10 = vld [vmem:[%s4681_s7 + $0x160] sm:$0xff]  ;;  %v274_v11 = vld [vmem:[%s4681_s7 + $0x168] sm:$0xff]  ;;  %v378_v12 = vpack.c.bf16 %v272_v9, %v271_v8  ;;  %v276_v15 = vld [vmem:[%s4681_s7 + $0x178] sm:$0xff] }
  0x21   : > { %3825 = vmatpush3.bf16.msra.mxu1 %v3842_v40  ;;  %v379_v13 = vpack.c.bf16 %v274_v11, %v273_v10  ;;  %v277_v16 = vld [vmem:[%s4681_s7 + $0x180] sm:$0xff]  ;;  %v278_v17 = vld [vmem:[%s4681_s7 + $0x188] sm:$0xff]  ;;  %v279_v20 = vld [vmem:[%s4681_s7 + $0x190] sm:$0xff] }
  0x22   : > { %3675 = vmatpush3.bf16.msra.mxu0 %v3840_v14  ;;  %3818 = vmatprep.subr.bf16.mxu1 %v3843_v5  ;;  %v275_v14 = vld [vmem:[%s4681_s7 + $0x170] sm:$0xff]  ;;  %v381_v19 = vpack.c.bf16 %v278_v17, %v277_v16  ;;  %v280_v21 = vld [vmem:[%s4681_s7 + $0x198] sm:$0xff]  ;;  %v281_v22 = vld [vmem:[%s4681_s7 + $0x1a0] sm:$0xff] }
  0x23   : > { %3676 = vmatprep.subr.bf16.mxu0 %v3841_v31  ;;  %v380_v18 = vpack.c.bf16 %v276_v15, %v275_v14  ;;  %v282_v23 = vld [vmem:[%s4681_s7 + $0x1a8] sm:$0xff]  ;;  %v382_v24 = vpack.c.bf16 %v280_v21, %v279_v20  ;;  %v283_v27 = vld [vmem:[%s4681_s7 + $0x1b0] sm:$0xff]  ;;  %v284_v28 = vld [vmem:[%s4681_s7 + $0x1b8] sm:$0xff] }
  0x24   : > { %v285_v29 = vld [vmem:[%s4681_s7 + $0x1c0] sm:$0xff]  ;;  %v286_v30 = vld [vmem:[%s4681_s7 + $0x1c8] sm:$0xff]  ;;  %v288_v34 = vld [vmem:[%s4681_s7 + $0x1d8] sm:$0xff] }
  0x25   : > { %3549 = vmatmul.mubr.msk.bf16.gmra.mxu0 %vm429_vm1, %v362_v25  ;;  %3826 = vmatpush3.bf16.msra.mxu1 %v3843_v5  ;;  %v3844_v25 = vld [vmem:[%s6807_s3] sm:$0xff]   ;;  %v290_v36 = vld [vmem:[%s4681_s7 + $0x1e8] sm:$0xff]  ;;  %v315_v11 = vld [vmem:[%s4681_s7 + $0x2b0] sm:$0xff] }
  0x26   : > { %3552 = vmatprep.mubr.msk.bf16.mxu0 %vm429_vm1, %v363_v26  ;;  %3677 = vmatpush3.bf16.msra.mxu0 %v3841_v31  ;;  %v383_v26 = vpack.c.bf16 %v282_v23, %v281_v22  ;;  %v384_v31 = vpack.c.bf16 %v284_v28, %v283_v27  ;;  %v289_v35 = vld [vmem:[%s4681_s7 + $0x1e0] sm:$0xff]  ;;  %v294_v42 = vld [vmem:[%s4681_s7 + $0x208] sm:$0xff]  ;;  %v319_v17 = vld [vmem:[%s4681_s7 + $0x2d0] sm:$0xff] }
  0x27   : > { %3678 = vmatprep.subr.bf16.mxu0 %v3842_v40  ;;  %3819 = vmatprep.subr.bf16.mxu1 %v3844_v25  ;;  %v293_v41 = vld [vmem:[%s4681_s7 + $0x200] sm:$0xff]  ;;  %v298_v48 = vld [vmem:[%s4681_s7 + $0x228] sm:$0xff]  ;;  %v323_v23 = vld [vmem:[%s4681_s7 + $0x2f0] sm:$0xff] }
  0x28   : > { %v389_v44 = vpack.c.bf16 %v294_v42, %v293_v41  ;;  %v297_v47 = vld [vmem:[%s4681_s7 + $0x220] sm:$0xff]  ;;  %v302_v54 = vld [vmem:[%s4681_s7 + $0x248] sm:$0xff] }
  0x29   : > { %3827 = vmatpush3.bf16.msra.mxu1 %v3844_v25  ;;  %v391_v50 = vpack.c.bf16 %v298_v48, %v297_v47  ;;  %v301_v53 = vld [vmem:[%s4681_s7 + $0x240] sm:$0xff]  ;;  %v306_v60 = vld [vmem:[%s4681_s7 + $0x268] sm:$0xff]  ;;  %v336_v47 = vld [vmem:[%s4681_s7 + $0x358] sm:$0xff] }
  0x2a   : > { %3679 = vmatpush3.bf16.msra.mxu0 %v3842_v40  ;;  %v292_v40 = vld [vmem:[%s4681_s7 + $0x1f8] sm:$0xff]  ;;  %v393_v56 = vpack.c.bf16 %v302_v54, %v301_v53  ;;  %v305_v59 = vld [vmem:[%s4681_s7 + $0x260] sm:$0xff]  ;;  %v310_v2 = vld [vmem:[%s4681_s7 + $0x288] sm:$0xff] }
  0x2b   : > { %3680 = vmatprep.subr.bf16.mxu0 %v3843_v5  ;;  %v395_v62 = vpack.c.bf16 %v306_v60, %v305_v59  ;;  %v309_v1 = vld [vmem:[%s4681_s7 + $0x280] sm:$0xff]  ;;  %v314_v8 = vld [vmem:[%s4681_s7 + $0x2a8] sm:$0xff] }
  0x2c   : > { %v397_v4 = vpack.c.bf16 %v310_v2, %v309_v1  ;;  %v318_v14 = vld [vmem:[%s4681_s7 + $0x2c8] sm:$0xff]  ;;  %v4870_v48 = vld [vmem:[%s6806_s2] ss:$0 sm:$0xff] }
  0x2d   : > { %3553 = vmatmul.mubr.msk.bf16.gmra.mxu0 %vm429_vm1, %v364_v32  ;;  %v385_v32 = vpack.c.bf16 %v286_v30, %v285_v29  ;;  %v322_v20 = vld [vmem:[%s4681_s7 + $0x2e8] sm:$0xff]  ;;  %v327_v29 = vld [vmem:[%s4681_s7 + $0x310] sm:$0xff]  ;;  %v328_v30 = vld [vmem:[%s4681_s7 + $0x318] sm:$0xff] }
  0x2e   : > { %3556 = vmatprep.mubr.msk.bf16.mxu0 %vm429_vm1, %v365_v33  ;;  %3681 = vmatpush3.bf16.msra.mxu0 %v3843_v5  ;;  %v287_v33 = vld [vmem:[%s4681_s7 + $0x1d0] sm:$0xff]  ;;  %v342_v1 = vld [vmem:[%s4681_s7 + $0x388] sm:$0xff] }
  0x2f   : > { %3682 = vmatprep.subr.bf16.mxu0 %v3844_v25  ;;  %v386_v37 = vpack.c.bf16 %v288_v34, %v287_v33  ;;  %v311_v5 = vld [vmem:[%s4681_s7 + $0x290] sm:$0xff]  ;;  %v406_v33 = vpack.c.bf16 %v328_v30, %v327_v29 }
  0x32   : > { %3683 = vmatpush3.bf16.msra.mxu0 %v3844_v25  ;;  %v325_v25 = vld [vmem:[%s4681_s7 + $0x300] sm:$0xff] }
  0x35   : > { %3557 = vmatmul.mubr.msk.bf16.gmra.mxu0 %vm429_vm1, %v366_v38  ;;  %v387_v38 = vpack.c.bf16 %v290_v36, %v289_v35  ;;  %v331_v36 = vld [vmem:[%s4681_s7 + $0x330] sm:$0xff] }
  0x36   : > { %3560 = vmatprep.mubr.msk.bf16.mxu0 %vm429_vm1, %v367_v39  ;;  %v291_v39 = vld [vmem:[%s4681_s7 + $0x1f0] sm:$0xff] }
  0x37   : > { %v388_v43 = vpack.c.bf16 %v292_v40, %v291_v39  ;;  %v333_v39 = vld [vmem:[%s4681_s7 + $0x340] sm:$0xff]  ;;  %v334_v40 = vld [vmem:[%s4681_s7 + $0x348] sm:$0xff] }
  0x3d   : > { %3561 = vmatmul.mubr.msk.bf16.gmra.mxu0 %vm429_vm1, %v368_v45  ;;  %v295_v45 = vld [vmem:[%s4681_s7 + $0x210] sm:$0xff] }
  0x3e   : > { %3564 = vmatprep.mubr.msk.bf16.mxu0 %vm429_vm1, %v369_v46  ;;  %v296_v46 = vld [vmem:[%s4681_s7 + $0x218] sm:$0xff] }
  0x3f   : > { %v390_v49 = vpack.c.bf16 %v296_v46, %v295_v45  ;;  %v335_v46 = vld [vmem:[%s4681_s7 + $0x350] sm:$0xff] }
  0x40   : > { %v410_v54 = vpack.c.bf16 %v336_v47, %v335_v46 }
  0x45   : > { %3565 = vmatmul.mubr.msk.bf16.gmra.mxu0 %vm429_vm1, %v370_v51  ;;  %v299_v51 = vld [vmem:[%s4681_s7 + $0x230] sm:$0xff] }
  0x46   : > { %3568 = vmatprep.mubr.msk.bf16.mxu0 %vm429_vm1, %v371_v52  ;;  %v300_v52 = vld [vmem:[%s4681_s7 + $0x238] sm:$0xff] }
  0x47   : > { %v392_v55 = vpack.c.bf16 %v300_v52, %v299_v51  ;;  %v338_v51 = vld [vmem:[%s4681_s7 + $0x368] sm:$0xff] }
  0x4d   : > { %3569 = vmatmul.mubr.msk.bf16.gmra.mxu0 %vm429_vm1, %v372_v57  ;;  %v303_v57 = vld [vmem:[%s4681_s7 + $0x250] sm:$0xff] }
  0x4e   : > { %3572 = vmatprep.mubr.msk.bf16.mxu0 %vm429_vm1, %v373_v58  ;;  %v304_v58 = vld [vmem:[%s4681_s7 + $0x258] sm:$0xff] }
  0x4f   : > { %v394_v61 = vpack.c.bf16 %v304_v58, %v303_v57 }
  0x55   : > { %3573 = vmatmul.mubr.msk.bf16.gmra.mxu0 %vm429_vm1, %v374_v63  ;;  %v307_v63 = vld [vmem:[%s4681_s7 + $0x270] sm:$0xff] }
  0x56   : > { %3576 = vmatprep.mubr.msk.bf16.mxu0 %vm429_vm1, %v375_v0  ;;  %v308_v0 = vld [vmem:[%s4681_s7 + $0x278] sm:$0xff] }
  0x57   : > { %v396_v3 = vpack.c.bf16 %v308_v0, %v307_v63  ;;  %v341_v0 = vld [vmem:[%s4681_s7 + $0x380] sm:$0xff] }
  0x5d   : > { %3577 = vmatmul.mubr.msk.bf16.gmra.mxu0 %vm429_vm1, %v376_v6  ;;  %v312_v6 = vld [vmem:[%s4681_s7 + $0x298] sm:$0xff] }
  0x5e   : > { %3580 = vmatprep.mubr.msk.bf16.mxu0 %vm429_vm1, %v377_v7  ;;  %v313_v7 = vld [vmem:[%s4681_s7 + $0x2a0] sm:$0xff]  ;;  %v398_v9 = vpack.c.bf16 %v312_v6, %v311_v5  ;;  %v413_v6 = vpack.c.bf16 %v342_v1, %v341_v0 }
  0x5f   : > { %v399_v10 = vpack.c.bf16 %v314_v8, %v313_v7 }
  0x65   : > { %3581 = vmatmul.mubr.msk.bf16.gmra.mxu0 %vm429_vm1, %v378_v12  ;;  %v316_v12 = vld [vmem:[%s4681_s7 + $0x2b8] sm:$0xff] }
  0x66   : > { %3584 = vmatprep.mubr.msk.bf16.mxu0 %vm429_vm1, %v379_v13  ;;  %v317_v13 = vld [vmem:[%s4681_s7 + $0x2c0] sm:$0xff]  ;;  %v400_v15 = vpack.c.bf16 %v316_v12, %v315_v11  ;;  %v343_v11 = vld [vmem:[%s4681_s7 + $0x390] sm:$0xff]  ;;  %v344_v12 = vld [vmem:[%s4681_s7 + $0x398] sm:$0xff] }
  0x67   : > { %v401_v16 = vpack.c.bf16 %v318_v14, %v317_v13  ;;  %v345_v14 = vld [vmem:[%s4681_s7 + $0x3a0] sm:$0xff] }
  0x6d   : > { %3585 = vmatmul.mubr.msk.bf16.gmra.mxu0 %vm429_vm1, %v380_v18  ;;  %v320_v18 = vld [vmem:[%s4681_s7 + $0x2d8] sm:$0xff] }
  0x6e   : > { %3588 = vmatprep.mubr.msk.bf16.mxu0 %vm429_vm1, %v381_v19  ;;  %v321_v19 = vld [vmem:[%s4681_s7 + $0x2e0] sm:$0xff]  ;;  %v402_v21 = vpack.c.bf16 %v320_v18, %v319_v17 }
  0x6f   : > { %v403_v22 = vpack.c.bf16 %v322_v20, %v321_v19  ;;  %v414_v19 = vpack.c.bf16 %v344_v12, %v343_v11  ;;  %v355_v12 = vld [vmem:[%s4681_s7 + $0x3f0] sm:$0xff] }
  0x75   : > { %3589 = vmatmul.mubr.msk.bf16.gmra.mxu0 %vm429_vm1, %v382_v24  ;;  %v324_v24 = vld [vmem:[%s4681_s7 + $0x2f8] sm:$0xff] }
  0x76   : > { %3592 = vmatprep.mubr.msk.bf16.mxu0 %vm429_vm1, %v383_v26  ;;  %v326_v26 = vld [vmem:[%s4681_s7 + $0x308] sm:$0xff]  ;;  %v404_v27 = vpack.c.bf16 %v324_v24, %v323_v23 }
  0x77   : > { %v405_v28 = vpack.c.bf16 %v326_v26, %v325_v25 }
  0x7d   : > { %3593 = vmatmul.mubr.msk.bf16.gmra.mxu0 %vm429_vm1, %v384_v31  ;;  %v329_v31 = vld [vmem:[%s4681_s7 + $0x320] sm:$0xff] }
  0x7e   : > { %3596 = vmatprep.mubr.msk.bf16.mxu0 %vm429_vm1, %v385_v32  ;;  %v330_v32 = vld [vmem:[%s4681_s7 + $0x328] sm:$0xff] }
  0x7f   : > { %v407_v34 = vpack.c.bf16 %v330_v32, %v329_v31  ;;  %v347_v32 = vld [vmem:[%s4681_s7 + $0x3b0] sm:$0xff] }
  0x85   : > { %3597 = vmatmul.mubr.msk.bf16.gmra.mxu0 %vm429_vm1, %v386_v37  ;;  %v332_v37 = vld [vmem:[%s4681_s7 + $0x338] sm:$0xff] }
  0x86   : > { %3600 = vmatprep.mubr.msk.bf16.mxu0 %vm429_vm1, %v387_v38  ;;  %v408_v42 = vpack.c.bf16 %v332_v37, %v331_v36  ;;  %v349_v37 = vld [vmem:[%s4681_s7 + $0x3c0] sm:$0xff] }
  0x8d   : > { %3601 = vmatmul.mubr.msk.bf16.gmra.mxu0 %vm429_vm1, %v388_v43  ;;  %v409_v43 = vpack.c.bf16 %v334_v40, %v333_v39  ;;  %v350_v39 = vld [vmem:[%s4681_s7 + $0x3c8] sm:$0xff] }
  0x8e   : > { %3604 = vmatprep.mubr.msk.bf16.mxu0 %vm429_vm1, %v389_v44  ;;  %v417_v47 = vpack.c.bf16 %v350_v39, %v349_v37 }
  0x95   : > { %3605 = vmatmul.mubr.msk.bf16.gmra.mxu0 %vm429_vm1, %v390_v49 }
  0x96   : > { %3608 = vmatprep.mubr.msk.bf16.mxu0 %vm429_vm1, %v391_v50  ;;  %v337_v50 = vld [vmem:[%s4681_s7 + $0x360] sm:$0xff] }
  0x9d   : > { %3609 = vmatmul.mubr.msk.bf16.gmra.mxu0 %vm429_vm1, %v392_v55 }
  0x9e   : > { %3612 = vmatprep.mubr.msk.bf16.mxu0 %vm429_vm1, %v393_v56  ;;  %v411_v56 = vpack.c.bf16 %v338_v51, %v337_v50 }
  0xa5   : > { %3613 = vmatmul.mubr.msk.bf16.gmra.mxu0 %vm429_vm1, %v394_v61  ;;  %v339_v61 = vld [vmem:[%s4681_s7 + $0x370] sm:$0xff] }
  0xa6   : > { %3616 = vmatprep.mubr.msk.bf16.mxu0 %vm429_vm1, %v395_v62  ;;  %v340_v62 = vld [vmem:[%s4681_s7 + $0x378] sm:$0xff] }
  0xad   : > { %3617 = vmatmul.mubr.msk.bf16.gmra.mxu0 %vm429_vm1, %v396_v3 }
  0xae   : > { %3620 = vmatprep.mubr.msk.bf16.mxu0 %vm429_vm1, %v397_v4  ;;  %v412_v4 = vpack.c.bf16 %v340_v62, %v339_v61  ;;  %v353_v61 = vld [vmem:[%s4681_s7 + $0x3e0] sm:$0xff]  ;;  %v354_v62 = vld [vmem:[%s4681_s7 + $0x3e8] sm:$0xff] }
  0xb5   : > { %3621 = vmatmul.mubr.msk.bf16.gmra.mxu0 %vm429_vm1, %v398_v9 }
  0xb6   : > { %3624 = vmatprep.mubr.msk.bf16.mxu0 %vm429_vm1, %v399_v10 }
  0xbd   : > { %3625 = vmatmul.mubr.msk.bf16.gmra.mxu0 %vm429_vm1, %v400_v15  ;;  %v346_v15 = vld [vmem:[%s4681_s7 + $0x3a8] sm:$0xff] }
  0xbe   : > { %3628 = vmatprep.mubr.msk.bf16.mxu0 %vm429_vm1, %v401_v16 }
  0xc5   : > { %3629 = vmatmul.mubr.msk.bf16.gmra.mxu0 %vm429_vm1, %v402_v21 }
  0xc6   : > { %3632 = vmatprep.mubr.msk.bf16.mxu0 %vm429_vm1, %v403_v22  ;;  %v415_v22 = vpack.c.bf16 %v346_v15, %v345_v14 }
  0xcd   : > { %3633 = vmatmul.mubr.msk.bf16.gmra.mxu0 %vm429_vm1, %v404_v27 }
  0xce   : > { %3636 = vmatprep.mubr.msk.bf16.mxu0 %vm429_vm1, %v405_v28 }
  0xd5   : > { %v4849_v35 = vpop.f32.mrf.mxu0  ;;  %3637 = vmatmul.mubr.msk.bf16.gmra.mxu0 %vm429_vm1, %v406_v33  ;;  %v348_v33 = vld [vmem:[%s4681_s7 + $0x3b8] sm:$0xff] }
  0xd6   : > { %3640 = vmatprep.mubr.msk.bf16.mxu0 %vm429_vm1, %v407_v34 }
  0xd7   : > { %v4855_v38 = vpop.f32.mrf.mxu0 }
  0xd8   : > { %v661_v31 = vadd.f32 %v4870_v48, %v4855_v38 }
  0xd9   : > { %v4859_v41 = vpop.f32.mrf.mxu0 }
  0xdb   : > { %v4861_v44 = vpop.f32.mrf.mxu0 }
  0xdc   : > { %v664_v34 = vadd.f32 %v4870_v48, %v4861_v44 }
  0xdd   : > { %v3546_v45 = vpop.f32.mrf.mxu0  ;;  %3641 = vmatmul.mubr.msk.bf16.gmra.mxu0 %vm429_vm1, %v408_v42 }
  0xde   : > { %3644 = vmatprep.mubr.msk.bf16.mxu0 %vm429_vm1, %v409_v43  ;;  %v685_v57 = vadd.f32 %v3546_v45, %v4870_v48  ;;  %v416_v45 = vpack.c.bf16 %v348_v33, %v347_v32 }
  0xdf   : > { %v676_v49 = vpop.f32.mrf.mxu0 }
  0xe0   : > { %v677_v52 = vadd.f32 %v4870_v48, %v676_v49 }
  0xe1   : > { %v3547_v53 = vpop.f32.mrf.mxu0 }
  0xe2   : > { %v688_v55 = vadd.f32 %v3547_v53, %v4870_v48  ;;  %3845 = vtanh.f32 %v677_v52 }
  0xe3   : > { %v679_v58 = vpop.f32.mrf.mxu0 }
  0xe4   : > { %v680_v59 = vadd.f32 %v4870_v48, %v679_v58  ;;  %3847 = vtanh.f32 %v688_v55  ;;  %v352_v58 = vld [vmem:[%s4681_s7 + $0x3d8] sm:$0xff] }
  0xe5   : > { %v3550_v60 = vpop.f32.mrf.mxu0  ;;  %3645 = vmatmul.mubr.msk.bf16.gmra.mxu0 %vm429_vm1, %v410_v54 }
  0xe6   : > { %3849 = vtanh.f32 %v680_v59  ;;  %3648 = vmatprep.mubr.msk.bf16.mxu0 %vm429_vm1, %v411_v56  ;;  %v701_v7 = vadd.f32 %v3550_v60, %v4870_v48  ;;  %v669_v56 = vadd.f32 %v4849_v35, %v4870_v48  ;;  %v672_v59 = vadd.f32 %v4859_v41, %v4870_v48 }
  0xe7   : > { %3851 = vtanh.f32 %v685_v57  ;;  %v692_v63 = vpop.f32.mrf.mxu0  ;;  %v351_v57 = vld [vmem:[%s4681_s7 + $0x3d0] sm:$0xff] }
  0xe8   : > { %v693_v2 = vadd.f32 %v4870_v48, %v692_v63 }
  0xe9   : > { %v3551_v3 = vpop.f32.mrf.mxu0 }
  0xea   : > { %v704_v5 = vadd.f32 %v3551_v3, %v4870_v48  ;;  %3853 = vtanh.f32 %v693_v2  ;;  %v418_v2 = vpack.c.bf16 %v352_v58, %v351_v57 }
  0xeb   : > { %v695_v8 = vpop.f32.mrf.mxu0 }
  0xec   : > { %v696_v9 = vadd.f32 %v4870_v48, %v695_v8  ;;  %3855 = vtanh.f32 %v704_v5 }
  0xed   : > { %v3554_v10 = vpop.f32.mrf.mxu0  ;;  %3649 = vmatmul.mubr.msk.bf16.gmra.mxu0 %vm429_vm1, %v412_v4  ;;  %v419_v4 = vpack.c.bf16 %v354_v62, %v353_v61 }
  0xee   : > { %3857 = vtanh.f32 %v696_v9  ;;  %3652 = vmatprep.mubr.msk.bf16.mxu0 %vm429_vm1, %v413_v6  ;;  %v717_v24 = vadd.f32 %v3554_v10, %v4870_v48 }
  0xef   : > { %3859 = vtanh.f32 %v701_v7  ;;  %v708_v13 = vpop.f32.mrf.mxu0  ;;  %v3846_v17 = vpop.eup %3845 }
  0xf0   : > { %v709_v16 = vadd.f32 %v4870_v48, %v708_v13  ;;  %v356_v13 = vld [vmem:[%s4681_s7 + $0x3f8] sm:$0xff] }
  0xf1   : > { %v3555_v18 = vpop.f32.mrf.mxu0  ;;  %v3848_v20 = vpop.eup %3847 }
  0xf2   : > { %v720_v21 = vadd.f32 %v3555_v18, %v4870_v48  ;;  %3861 = vtanh.f32 %v709_v16 }
  0xf3   : > { %v3850_v23 = vpop.eup %3849  ;;  %v711_v25 = vpop.f32.mrf.mxu0 }
  0xf4   : > { %v3852_v26 = vpop.eup %3851  ;;  %v712_v27 = vadd.f32 %v4870_v48, %v711_v25  ;;  %v1301_v28 = vpack.c.bf16 %v3850_v23, %v3846_v17  ;;  %3863 = vtanh.f32 %v720_v21 }
  0xf5   : > { %v3558_v29 = vpop.f32.mrf.mxu0  ;;  %3653 = vmatmul.mubr.msk.bf16.gmra.mxu0 %vm429_vm1, %v414_v19  ;;  %v1302_v30 = vpack.c.bf16 %v3848_v20, %v3852_v26  ;;  %v420_v20 = vpack.c.bf16 %v356_v13, %v355_v12 }
  0xf6   : > { %3865 = vtanh.f32 %v712_v27  ;;  %3688 = vmatprep.mubr.bf16.mxu1 %v1301_v28  ;;  %3656 = vmatprep.mubr.msk.bf16.mxu0 %vm429_vm1, %v415_v22  ;;  %v733_v44 = vadd.f32 %v3558_v29, %v4870_v48 }
  0xf7   : > { %3867 = vtanh.f32 %v717_v24  ;;  %v724_v36 = vpop.f32.mrf.mxu0  ;;  %3689 = vmatmul.mubr.bf16.vlgmr.msra.gmra.mxu1 %v1302_v30  ;;  %v3854_v42 = vpop.eup %3853 }
  0xf8   : > { %v725_v40 = vadd.f32 %v4870_v48, %v724_v36  ;;  %3869 = vtanh.f32 %v661_v31 }
  0xf9   : > { %v3559_v43 = vpop.f32.mrf.mxu0  ;;  %v3856_v38 = vpop.eup %3855  ;;  %3871 = vtanh.f32 %v664_v34 }
  0xfa   : > { %v736_v46 = vadd.f32 %v3559_v43, %v4870_v48  ;;  %3873 = vtanh.f32 %v725_v40 }
  0xfb   : > { %v3858_v49 = vpop.eup %3857  ;;  %v727_v50 = vpop.f32.mrf.mxu0 }
  0xfc   : > { %v3860_v51 = vpop.eup %3859  ;;  %v728_v52 = vadd.f32 %v4870_v48, %v727_v50  ;;  %v1303_v53 = vpack.c.bf16 %v3858_v49, %v3854_v42  ;;  %3875 = vtanh.f32 %v736_v46 }
  0xfd   : > { %v3562_v54 = vpop.f32.mrf.mxu0  ;;  %3657 = vmatmul.mubr.msk.bf16.gmra.mxu0 %vm429_vm1, %v416_v45  ;;  %v1304_v55 = vpack.c.bf16 %v3856_v38, %v3860_v51 }
  0xfe   : > { %3877 = vtanh.f32 %v728_v52  ;;  %3692 = vmatprep.mubr.bf16.mxu1 %v1303_v53  ;;  %3660 = vmatprep.mubr.msk.bf16.mxu0 %vm429_vm1, %v417_v47  ;;  %v749_v41 = vadd.f32 %v3562_v54, %v4870_v48 }
  0xff   : > { %3879 = vtanh.f32 %v733_v44  ;;  %v740_v60 = vpop.f32.mrf.mxu0  ;;  %3693 = vmatmul.mubr.bf16.gmra.mxu1 %v1304_v55  ;;  %v3862_v0 = vpop.eup %3861 }
 0x100   : > { %v741_v63 = vadd.f32 %v4870_v48, %v740_v60  ;;  %3881 = vtanh.f32 %v669_v56 }
 0x101   : > { %v3563_v1 = vpop.f32.mrf.mxu0  ;;  %v3864_v35 = vpop.eup %3863  ;;  %3883 = vtanh.f32 %v672_v59 }
 0x102   : > { %v752_v3 = vadd.f32 %v3563_v1, %v4870_v48  ;;  %3885 = vtanh.f32 %v741_v63 }
 0x103   : > { %v3866_v5 = vpop.eup %3865  ;;  %v743_v6 = vpop.f32.mrf.mxu0 }
 0x104   : > { %v3868_v7 = vpop.eup %3867  ;;  %v744_v8 = vadd.f32 %v4870_v48, %v743_v6  ;;  %v1305_v9 = vpack.c.bf16 %v3866_v5, %v3862_v0  ;;  %3887 = vtanh.f32 %v752_v3 }
 0x105   : > { %v3566_v10 = vpop.f32.mrf.mxu0  ;;  %3661 = vmatmul.mubr.msk.bf16.gmra.mxu0 %vm429_vm1, %v418_v2  ;;  %v1306_v11 = vpack.c.bf16 %v3864_v35, %v3868_v7  ;;  %v3870_v14 = vpop.eup %3869 }
 0x106   : > { %3889 = vtanh.f32 %v744_v8  ;;  %3696 = vmatprep.mubr.bf16.mxu1 %v1305_v9  ;;  %3664 = vmatprep.mubr.msk.bf16.mxu0 %vm429_vm1, %v419_v4  ;;  %v3872_v16 = vpop.eup %3871  ;;  %v765_v24 = vadd.f32 %v3566_v10, %v4870_v48 }
 0x107   : > { %3891 = vtanh.f32 %v749_v41  ;;  %v756_v15 = vpop.f32.mrf.mxu0  ;;  %3697 = vmatmul.mubr.bf16.gmra.mxu1 %v1306_v11  ;;  %v3874_v18 = vpop.eup %3873  ;;  %v1299_v28 = vpack.c.bf16 %v3872_v16, %v3870_v14 }
 0x108   : > { %v757_v17 = vadd.f32 %v4870_v48, %v756_v15 }
 0x109   : > { %v3567_v19 = vpop.f32.mrf.mxu0  ;;  %v3876_v21 = vpop.eup %3875 }
 0x10a   : > { %v768_v22 = vadd.f32 %v3567_v19, %v4870_v48  ;;  %3893 = vtanh.f32 %v757_v17 }
 0x10b   : > { %v3878_v23 = vpop.eup %3877  ;;  %v759_v25 = vpop.f32.mrf.mxu0 }
 0x10c   : > { %v3880_v26 = vpop.eup %3879  ;;  %v760_v27 = vadd.f32 %v4870_v48, %v759_v25  ;;  %v1307_v29 = vpack.c.bf16 %v3878_v23, %v3874_v18  ;;  %3895 = vtanh.f32 %v768_v22 }
 0x10d   : > { %v3570_v30 = vpop.f32.mrf.mxu0  ;;  %3665 = vmatmul.mubr.msk.bf16.gmra.mxu0 %vm429_vm1, %v420_v20  ;;  %v1308_v31 = vpack.c.bf16 %v3876_v21, %v3880_v26  ;;  %v3882_v32 = vpop.eup %3881 }
 0x10e   : > { %3897 = vtanh.f32 %v760_v27  ;;  %3684 = vmatprep.mubr.bf16.mxu0 %v1299_v28  ;;  %3700 = vmatprep.mubr.bf16.mxu1 %v1307_v29  ;;  %v3884_v34 = vpop.eup %3883  ;;  %v781_v38 = vadd.f32 %v3570_v30, %v4870_v48 }
 0x10f   : > { %3899 = vtanh.f32 %v765_v24  ;;  %v772_v33 = vpop.f32.mrf.mxu0  ;;  %3701 = vmatmul.mubr.bf16.gmra.mxu1 %v1308_v31  ;;  %v3886_v37 = vpop.eup %3885  ;;  %v1300_v45 = vpack.c.bf16 %v3884_v34, %v3882_v32 }
 0x110   : > { %v773_v36 = vadd.f32 %v4870_v48, %v772_v33 }
 0x111   : > { %v3571_v39 = vpop.f32.mrf.mxu0  ;;  %v3888_v40 = vpop.eup %3887 }
 0x112   : > { %v784_v42 = vadd.f32 %v3571_v39, %v4870_v48  ;;  %3901 = vtanh.f32 %v773_v36 }
 0x113   : > { %v3890_v43 = vpop.eup %3889  ;;  %v775_v46 = vpop.f32.mrf.mxu0 }
 0x114   : > { %v3892_v47 = vpop.eup %3891  ;;  %v776_v49 = vadd.f32 %v4870_v48, %v775_v46  ;;  %v1309_v44 = vpack.c.bf16 %v3890_v43, %v3886_v37  ;;  %3903 = vtanh.f32 %v784_v42 }
 0x115   : > { %v3574_v50 = vpop.f32.mrf.mxu0  ;;  %3685 = vmatmul.mubr.bf16.vlgmr.msra.gmra.mxu0 %v1300_v45  ;;  %v1310_v51 = vpack.c.bf16 %v3888_v40, %v3892_v47 }
 0x116   : > { %3905 = vtanh.f32 %v776_v49  ;;  %3704 = vmatprep.mubr.bf16.mxu1 %v1309_v44  ;;  %v797_v59 = vadd.f32 %v3574_v50, %v4870_v48 }
 0x117   : > { %3907 = vtanh.f32 %v781_v38  ;;  %v788_v52 = vpop.f32.mrf.mxu0  ;;  %3705 = vmatmul.mubr.bf16.gmra.mxu1 %v1310_v51  ;;  %v3894_v54 = vpop.eup %3893 }
 0x118   : > { %v789_v53 = vadd.f32 %v4870_v48, %v788_v52 }
 0x119   : > { %v3575_v55 = vpop.f32.mrf.mxu0  ;;  %v3896_v56 = vpop.eup %3895 }
 0x11a   : > { %v800_v57 = vadd.f32 %v3575_v55, %v4870_v48  ;;  %3909 = vtanh.f32 %v789_v53 }
 0x11b   : > { %v3898_v58 = vpop.eup %3897  ;;  %v791_v60 = vpop.f32.mrf.mxu0 }
 0x11c   : > { %v3900_v61 = vpop.eup %3899  ;;  %v792_v62 = vadd.f32 %v4870_v48, %v791_v60  ;;  %v1311_v63 = vpack.c.bf16 %v3898_v58, %v3894_v54  ;;  %3911 = vtanh.f32 %v800_v57 }
 0x11d   : > { %v3578_v0 = vpop.f32.mrf.mxu0  ;;  %v1312_v1 = vpack.c.bf16 %v3896_v56, %v3900_v61 }
 0x11e   : > { %3913 = vtanh.f32 %v792_v62  ;;  %3708 = vmatprep.mubr.bf16.mxu1 %v1311_v63  ;;  %v813_v7 = vadd.f32 %v3578_v0, %v4870_v48 }
 0x11f   : > { %3915 = vtanh.f32 %v797_v59  ;;  %v804_v2 = vpop.f32.mrf.mxu0  ;;  %3709 = vmatmul.mubr.bf16.gmra.mxu1 %v1312_v1  ;;  %v3902_v3 = vpop.eup %3901 }
 0x120   : > { %v805_v35 = vadd.f32 %v4870_v48, %v804_v2 }
 0x121   : > { %v3579_v4 = vpop.f32.mrf.mxu0  ;;  %v3904_v5 = vpop.eup %3903 }
 0x122   : > { %v816_v41 = vadd.f32 %v3579_v4, %v4870_v48  ;;  %3917 = vtanh.f32 %v805_v35 }
 0x123   : > { %v3906_v6 = vpop.eup %3905  ;;  %v807_v8 = vpop.f32.mrf.mxu0 }
 0x124   : > { %v3908_v9 = vpop.eup %3907  ;;  %v808_v10 = vadd.f32 %v4870_v48, %v807_v8  ;;  %v1313_v11 = vpack.c.bf16 %v3906_v6, %v3902_v3  ;;  %3919 = vtanh.f32 %v816_v41 }
 0x125   : > { %v3582_v12 = vpop.f32.mrf.mxu0  ;;  %v1314_v13 = vpack.c.bf16 %v3904_v5, %v3908_v9 }
 0x126   : > { %3921 = vtanh.f32 %v808_v10  ;;  %3712 = vmatprep.mubr.bf16.mxu1 %v1313_v11  ;;  %v829_v21 = vadd.f32 %v3582_v12, %v4870_v48 }
 0x127   : > { %3923 = vtanh.f32 %v813_v7  ;;  %v820_v14 = vpop.f32.mrf.mxu0  ;;  %3713 = vmatmul.mubr.bf16.gmra.mxu1 %v1314_v13  ;;  %v3910_v16 = vpop.eup %3909 }
 0x128   : > { %v821_v15 = vadd.f32 %v4870_v48, %v820_v14 }
 0x129   : > { %v3583_v17 = vpop.f32.mrf.mxu0  ;;  %v3912_v18 = vpop.eup %3911 }
 0x12a   : > { %v832_v19 = vadd.f32 %v3583_v17, %v4870_v48  ;;  %3925 = vtanh.f32 %v821_v15 }
 0x12b   : > { %v3914_v20 = vpop.eup %3913  ;;  %v823_v22 = vpop.f32.mrf.mxu0 }
 0x12c   : > { %v3916_v23 = vpop.eup %3915  ;;  %v824_v24 = vadd.f32 %v4870_v48, %v823_v22  ;;  %v1315_v25 = vpack.c.bf16 %v3914_v20, %v3910_v16  ;;  %3927 = vtanh.f32 %v832_v19 }
 0x12d   : > { %v3586_v26 = vpop.f32.mrf.mxu0  ;;  %v1316_v27 = vpack.c.bf16 %v3912_v18, %v3916_v23 }
 0x12e   : > { %3929 = vtanh.f32 %v824_v24  ;;  %3716 = vmatprep.mubr.bf16.mxu1 %v1315_v25  ;;  %v845_v36 = vadd.f32 %v3586_v26, %v4870_v48 }
 0x12f   : > { %3931 = vtanh.f32 %v829_v21  ;;  %v836_v28 = vpop.f32.mrf.mxu0  ;;  %3717 = vmatmul.mubr.bf16.gmra.mxu1 %v1316_v27  ;;  %v3918_v30 = vpop.eup %3917 }
 0x130   : > { %v837_v29 = vadd.f32 %v4870_v48, %v836_v28 }
 0x131   : > { %v3587_v31 = vpop.f32.mrf.mxu0  ;;  %v3920_v32 = vpop.eup %3919 }
 0x132   : > { %v848_v33 = vadd.f32 %v3587_v31, %v4870_v48  ;;  %3933 = vtanh.f32 %v837_v29 }
 0x133   : > { %v3922_v34 = vpop.eup %3921  ;;  %v839_v37 = vpop.f32.mrf.mxu0 }
 0x134   : > { %v3924_v39 = vpop.eup %3923  ;;  %v840_v40 = vadd.f32 %v4870_v48, %v839_v37  ;;  %v1317_v42 = vpack.c.bf16 %v3922_v34, %v3918_v30  ;;  %3935 = vtanh.f32 %v848_v33 }
 0x135   : > { %v3590_v43 = vpop.f32.mrf.mxu0  ;;  %v1318_v45 = vpack.c.bf16 %v3920_v32, %v3924_v39 }
 0x136   : > { %3937 = vtanh.f32 %v840_v40  ;;  %3720 = vmatprep.mubr.bf16.mxu1 %v1317_v42  ;;  %v861_v52 = vadd.f32 %v3590_v43, %v4870_v48 }
 0x137   : > { %3939 = vtanh.f32 %v845_v36  ;;  %v852_v38 = vpop.f32.mrf.mxu0  ;;  %3721 = vmatmul.mubr.bf16.gmra.mxu1 %v1318_v45  ;;  %v3926_v47 = vpop.eup %3925 }
 0x138   : > { %v853_v46 = vadd.f32 %v4870_v48, %v852_v38 }
 0x139   : > { %v3591_v49 = vpop.f32.mrf.mxu0  ;;  %v3928_v44 = vpop.eup %3927 }
 0x13a   : > { %v864_v50 = vadd.f32 %v3591_v49, %v4870_v48  ;;  %3941 = vtanh.f32 %v853_v46 }
 0x13b   : > { %v3930_v51 = vpop.eup %3929  ;;  %v855_v53 = vpop.f32.mrf.mxu0 }
 0x13c   : > { %v3932_v54 = vpop.eup %3931  ;;  %v856_v55 = vadd.f32 %v4870_v48, %v855_v53  ;;  %v1319_v56 = vpack.c.bf16 %v3930_v51, %v3926_v47  ;;  %3943 = vtanh.f32 %v864_v50 }
 0x13d   : > { %v3594_v57 = vpop.f32.mrf.mxu0  ;;  %v1320_v58 = vpack.c.bf16 %v3928_v44, %v3932_v54 }
 0x13e   : > { %3945 = vtanh.f32 %v856_v55  ;;  %3724 = vmatprep.mubr.bf16.mxu1 %v1319_v56  ;;  %v877_v2 = vadd.f32 %v3594_v57, %v4870_v48 }
 0x13f   : > { %3947 = vtanh.f32 %v861_v52  ;;  %v868_v59 = vpop.f32.mrf.mxu0  ;;  %3725 = vmatmul.mubr.bf16.gmra.mxu1 %v1320_v58  ;;  %v3934_v61 = vpop.eup %3933 }
 0x140   : > { %v869_v60 = vadd.f32 %v4870_v48, %v868_v59 }
 0x141   : > { %v3595_v62 = vpop.f32.mrf.mxu0  ;;  %v3936_v63 = vpop.eup %3935 }
 0x142   : > { %v880_v0 = vadd.f32 %v3595_v62, %v4870_v48  ;;  %3949 = vtanh.f32 %v869_v60 }
 0x143   : > { %v3938_v1 = vpop.eup %3937  ;;  %v871_v35 = vpop.f32.mrf.mxu0 }
 0x144   : > { %v3940_v3 = vpop.eup %3939  ;;  %v872_v4 = vadd.f32 %v4870_v48, %v871_v35  ;;  %v1321_v5 = vpack.c.bf16 %v3938_v1, %v3934_v61  ;;  %3951 = vtanh.f32 %v880_v0 }
 0x145   : > { %v3598_v41 = vpop.f32.mrf.mxu0  ;;  %v1322_v6 = vpack.c.bf16 %v3936_v63, %v3940_v3 }
 0x146   : > { %3953 = vtanh.f32 %v872_v4  ;;  %3728 = vmatprep.mubr.bf16.mxu1 %v1321_v5  ;;  %v893_v14 = vadd.f32 %v3598_v41, %v4870_v48 }
 0x147   : > { %3955 = vtanh.f32 %v877_v2  ;;  %v884_v7 = vpop.f32.mrf.mxu0  ;;  %3729 = vmatmul.mubr.bf16.gmra.mxu1 %v1322_v6  ;;  %v3942_v9 = vpop.eup %3941 }
 0x148   : > { %v885_v8 = vadd.f32 %v4870_v48, %v884_v7 }
 0x149   : > { %v3599_v10 = vpop.f32.mrf.mxu0  ;;  %v3944_v11 = vpop.eup %3943 }
 0x14a   : > { %v896_v12 = vadd.f32 %v3599_v10, %v4870_v48  ;;  %3957 = vtanh.f32 %v885_v8 }
 0x14b   : > { %v3946_v13 = vpop.eup %3945  ;;  %v887_v15 = vpop.f32.mrf.mxu0 }
 0x14c   : > { %v3948_v16 = vpop.eup %3947  ;;  %v888_v17 = vadd.f32 %v4870_v48, %v887_v15  ;;  %v1323_v18 = vpack.c.bf16 %v3946_v13, %v3942_v9  ;;  %3959 = vtanh.f32 %v896_v12 }
 0x14d   : > { %v3602_v19 = vpop.f32.mrf.mxu0  ;;  %v1324_v20 = vpack.c.bf16 %v3944_v11, %v3948_v16 }
 0x14e   : > { %3961 = vtanh.f32 %v888_v17  ;;  %3732 = vmatprep.mubr.bf16.mxu1 %v1323_v18  ;;  %v909_v28 = vadd.f32 %v3602_v19, %v4870_v48 }
 0x14f   : > { %3963 = vtanh.f32 %v893_v14  ;;  %v900_v21 = vpop.f32.mrf.mxu0  ;;  %3733 = vmatmul.mubr.bf16.gmra.mxu1 %v1324_v20  ;;  %v3950_v23 = vpop.eup %3949 }
 0x150   : > { %v901_v22 = vadd.f32 %v4870_v48, %v900_v21 }
 0x151   : > { %v3603_v24 = vpop.f32.mrf.mxu0  ;;  %v3952_v25 = vpop.eup %3951 }
 0x152   : > { %v912_v26 = vadd.f32 %v3603_v24, %v4870_v48  ;;  %3965 = vtanh.f32 %v901_v22 }
 0x153   : > { %v3954_v27 = vpop.eup %3953  ;;  %v903_v29 = vpop.f32.mrf.mxu0 }
 0x154   : > { %v3956_v30 = vpop.eup %3955  ;;  %v904_v31 = vadd.f32 %v4870_v48, %v903_v29  ;;  %v1325_v32 = vpack.c.bf16 %v3954_v27, %v3950_v23  ;;  %3967 = vtanh.f32 %v912_v26 }
 0x155   : > { %v3606_v33 = vpop.f32.mrf.mxu0  ;;  %v1326_v34 = vpack.c.bf16 %v3952_v25, %v3956_v30 }
 0x156   : > { %3969 = vtanh.f32 %v904_v31  ;;  %3736 = vmatprep.mubr.bf16.mxu1 %v1325_v32  ;;  %v925_v38 = vadd.f32 %v3606_v33, %v4870_v48 }
 0x157   : > { %3971 = vtanh.f32 %v909_v28  ;;  %v916_v36 = vpop.f32.mrf.mxu0  ;;  %3737 = vmatmul.mubr.bf16.gmra.mxu1 %v1326_v34  ;;  %v3958_v39 = vpop.eup %3957 }
 0x158   : > { %v917_v37 = vadd.f32 %v4870_v48, %v916_v36 }
 0x159   : > { %v3607_v40 = vpop.f32.mrf.mxu0  ;;  %v3960_v42 = vpop.eup %3959 }
 0x15a   : > { %v928_v43 = vadd.f32 %v3607_v40, %v4870_v48  ;;  %3973 = vtanh.f32 %v917_v37 }
 0x15b   : > { %v3962_v45 = vpop.eup %3961  ;;  %v919_v46 = vpop.f32.mrf.mxu0 }
 0x15c   : > { %v3964_v47 = vpop.eup %3963  ;;  %v920_v49 = vadd.f32 %v4870_v48, %v919_v46  ;;  %v1327_v44 = vpack.c.bf16 %v3962_v45, %v3958_v39  ;;  %3975 = vtanh.f32 %v928_v43 }
 0x15d   : > { %v3610_v50 = vpop.f32.mrf.mxu0  ;;  %v1328_v51 = vpack.c.bf16 %v3960_v42, %v3964_v47 }
 0x15e   : > { %3977 = vtanh.f32 %v920_v49  ;;  %3740 = vmatprep.mubr.bf16.mxu1 %v1327_v44  ;;  %v941_v59 = vadd.f32 %v3610_v50, %v4870_v48 }
 0x15f   : > { %3979 = vtanh.f32 %v925_v38  ;;  %v932_v52 = vpop.f32.mrf.mxu0  ;;  %3741 = vmatmul.mubr.bf16.gmra.mxu1 %v1328_v51  ;;  %v3966_v54 = vpop.eup %3965 }
 0x160   : > { %v933_v53 = vadd.f32 %v4870_v48, %v932_v52 }
 0x161   : > { %v3611_v55 = vpop.f32.mrf.mxu0  ;;  %v3968_v56 = vpop.eup %3967 }
 0x162   : > { %v944_v57 = vadd.f32 %v3611_v55, %v4870_v48  ;;  %3981 = vtanh.f32 %v933_v53 }
 0x163   : > { %v3970_v58 = vpop.eup %3969  ;;  %v935_v60 = vpop.f32.mrf.mxu0 }
 0x164   : > { %v3972_v61 = vpop.eup %3971  ;;  %v936_v62 = vadd.f32 %v4870_v48, %v935_v60  ;;  %v1329_v63 = vpack.c.bf16 %v3970_v58, %v3966_v54  ;;  %3983 = vtanh.f32 %v944_v57 }
 0x165   : > { %v3614_v0 = vpop.f32.mrf.mxu0  ;;  %v1330_v1 = vpack.c.bf16 %v3968_v56, %v3972_v61 }
 0x166   : > { %3985 = vtanh.f32 %v936_v62  ;;  %3744 = vmatprep.mubr.bf16.mxu1 %v1329_v63  ;;  %v957_v7 = vadd.f32 %v3614_v0, %v4870_v48 }
 0x167   : > { %3987 = vtanh.f32 %v941_v59  ;;  %v948_v2 = vpop.f32.mrf.mxu0  ;;  %3745 = vmatmul.mubr.bf16.gmra.mxu1 %v1330_v1  ;;  %v3974_v3 = vpop.eup %3973 }
 0x168   : > { %v949_v35 = vadd.f32 %v4870_v48, %v948_v2 }
 0x169   : > { %v3615_v4 = vpop.f32.mrf.mxu0  ;;  %v3976_v5 = vpop.eup %3975 }
 0x16a   : > { %v960_v41 = vadd.f32 %v3615_v4, %v4870_v48  ;;  %3989 = vtanh.f32 %v949_v35 }
 0x16b   : > { %v3978_v6 = vpop.eup %3977  ;;  %v951_v8 = vpop.f32.mrf.mxu0 }
 0x16c   : > { %v3980_v9 = vpop.eup %3979  ;;  %v952_v10 = vadd.f32 %v4870_v48, %v951_v8  ;;  %v1331_v11 = vpack.c.bf16 %v3978_v6, %v3974_v3  ;;  %3991 = vtanh.f32 %v960_v41 }
 0x16d   : > { %v3618_v12 = vpop.f32.mrf.mxu0  ;;  %v1332_v13 = vpack.c.bf16 %v3976_v5, %v3980_v9 }
 0x16e   : > { %3993 = vtanh.f32 %v952_v10  ;;  %3748 = vmatprep.mubr.bf16.mxu1 %v1331_v11  ;;  %v973_v21 = vadd.f32 %v3618_v12, %v4870_v48 }
 0x16f   : > { %3995 = vtanh.f32 %v957_v7  ;;  %v964_v14 = vpop.f32.mrf.mxu0  ;;  %3749 = vmatmul.mubr.bf16.gmra.mxu1 %v1332_v13  ;;  %v3982_v16 = vpop.eup %3981 }
 0x170   : > { %v965_v15 = vadd.f32 %v4870_v48, %v964_v14 }
 0x171   : > { %v3619_v17 = vpop.f32.mrf.mxu0  ;;  %v3984_v18 = vpop.eup %3983 }
 0x172   : > { %v976_v19 = vadd.f32 %v3619_v17, %v4870_v48  ;;  %3997 = vtanh.f32 %v965_v15 }
 0x173   : > { %v3986_v20 = vpop.eup %3985  ;;  %v967_v22 = vpop.f32.mrf.mxu0 }
 0x174   : > { %v3988_v23 = vpop.eup %3987  ;;  %v968_v24 = vadd.f32 %v4870_v48, %v967_v22  ;;  %v1333_v25 = vpack.c.bf16 %v3986_v20, %v3982_v16  ;;  %3999 = vtanh.f32 %v976_v19 }
 0x175   : > { %v3622_v26 = vpop.f32.mrf.mxu0  ;;  %v1334_v27 = vpack.c.bf16 %v3984_v18, %v3988_v23 }
 0x176   : > { %4001 = vtanh.f32 %v968_v24  ;;  %3752 = vmatprep.mubr.bf16.mxu1 %v1333_v25  ;;  %v989_v36 = vadd.f32 %v3622_v26, %v4870_v48 }
 0x177   : > { %4003 = vtanh.f32 %v973_v21  ;;  %v980_v28 = vpop.f32.mrf.mxu0  ;;  %3753 = vmatmul.mubr.bf16.gmra.mxu1 %v1334_v27  ;;  %v3990_v30 = vpop.eup %3989 }
 0x178   : > { %v981_v29 = vadd.f32 %v4870_v48, %v980_v28 }
 0x179   : > { %v3623_v31 = vpop.f32.mrf.mxu0  ;;  %v3992_v32 = vpop.eup %3991 }
 0x17a   : > { %v992_v33 = vadd.f32 %v3623_v31, %v4870_v48  ;;  %4005 = vtanh.f32 %v981_v29  ;;  %v5009_v31 = vld [vmem:[%s6806_s2] ss:$0 sm:$0xff] }
 0x17b   : > { %v3994_v34 = vpop.eup %3993  ;;  %v983_v37 = vpop.f32.mrf.mxu0 }
 0x17c   : > { %v3996_v39 = vpop.eup %3995  ;;  %v984_v40 = vadd.f32 %v4870_v48, %v983_v37  ;;  %v1335_v42 = vpack.c.bf16 %v3994_v34, %v3990_v30  ;;  %4007 = vtanh.f32 %v992_v33 }
 0x17d   : > { %v3626_v43 = vpop.f32.mrf.mxu0  ;;  %v1336_v45 = vpack.c.bf16 %v3992_v32, %v3996_v39 }
 0x17e   : > { %4009 = vtanh.f32 %v984_v40  ;;  %3756 = vmatprep.mubr.bf16.mxu1 %v1335_v42  ;;  %v1005_v52 = vadd.f32 %v3626_v43, %v4870_v48 }
 0x17f   : > { %4011 = vtanh.f32 %v989_v36  ;;  %v996_v38 = vpop.f32.mrf.mxu0  ;;  %3757 = vmatmul.mubr.bf16.gmra.mxu1 %v1336_v45  ;;  %v3998_v47 = vpop.eup %3997 }
 0x180   : > { %v997_v46 = vadd.f32 %v4870_v48, %v996_v38 }
 0x181   : > { %v3627_v49 = vpop.f32.mrf.mxu0  ;;  %v4000_v44 = vpop.eup %3999 }
 0x182   : > { %v1008_v50 = vadd.f32 %v3627_v49, %v4870_v48  ;;  %4013 = vtanh.f32 %v997_v46 }
 0x183   : > { %v4002_v51 = vpop.eup %4001  ;;  %v999_v53 = vpop.f32.mrf.mxu0 }
 0x184   : > { %v4004_v54 = vpop.eup %4003  ;;  %v1000_v55 = vadd.f32 %v4870_v48, %v999_v53  ;;  %v1337_v56 = vpack.c.bf16 %v4002_v51, %v3998_v47  ;;  %4015 = vtanh.f32 %v1008_v50 }
 0x185   : > { %v3630_v57 = vpop.f32.mrf.mxu0  ;;  %v1338_v58 = vpack.c.bf16 %v4000_v44, %v4004_v54 }
 0x186   : > { %4017 = vtanh.f32 %v1000_v55  ;;  %3760 = vmatprep.mubr.bf16.mxu1 %v1337_v56  ;;  %v1021_v2 = vadd.f32 %v3630_v57, %v4870_v48 }
 0x187   : > { %4019 = vtanh.f32 %v1005_v52  ;;  %v1012_v59 = vpop.f32.mrf.mxu0  ;;  %3761 = vmatmul.mubr.bf16.gmra.mxu1 %v1338_v58  ;;  %v4006_v61 = vpop.eup %4005 }
 0x188   : > { %v1013_v60 = vadd.f32 %v4870_v48, %v1012_v59 }
 0x189   : > { %v3631_v62 = vpop.f32.mrf.mxu0  ;;  %v4008_v63 = vpop.eup %4007 }
 0x18a   : > { %v1024_v0 = vadd.f32 %v3631_v62, %v4870_v48  ;;  %4021 = vtanh.f32 %v1013_v60 }
 0x18b   : > { %v4010_v1 = vpop.eup %4009  ;;  %v1015_v35 = vpop.f32.mrf.mxu0 }
 0x18c   : > { %v4012_v3 = vpop.eup %4011  ;;  %v1016_v4 = vadd.f32 %v4870_v48, %v1015_v35  ;;  %v1339_v5 = vpack.c.bf16 %v4010_v1, %v4006_v61  ;;  %4023 = vtanh.f32 %v1024_v0 }
 0x18d   : > { %v3634_v41 = vpop.f32.mrf.mxu0  ;;  %v1340_v6 = vpack.c.bf16 %v4008_v63, %v4012_v3 }
 0x18e   : > { %4025 = vtanh.f32 %v1016_v4  ;;  %3764 = vmatprep.mubr.bf16.mxu1 %v1339_v5  ;;  %v1037_v14 = vadd.f32 %v3634_v41, %v4870_v48 }
 0x18f   : > { %4027 = vtanh.f32 %v1021_v2  ;;  %v1028_v7 = vpop.f32.mrf.mxu0  ;;  %3765 = vmatmul.mubr.bf16.gmra.mxu1 %v1340_v6  ;;  %v4014_v9 = vpop.eup %4013 }
 0x190   : > { %v1029_v8 = vadd.f32 %v4870_v48, %v1028_v7 }
 0x191   : > { %v3635_v10 = vpop.f32.mrf.mxu0  ;;  %v4016_v11 = vpop.eup %4015 }
 0x192   : > { %v1040_v12 = vadd.f32 %v3635_v10, %v4870_v48  ;;  %4029 = vtanh.f32 %v1029_v8 }
 0x193   : > { %v4018_v13 = vpop.eup %4017  ;;  %v1031_v15 = vpop.f32.mrf.mxu0 }
 0x194   : > { %v4020_v16 = vpop.eup %4019  ;;  %v1032_v17 = vadd.f32 %v4870_v48, %v1031_v15  ;;  %v1341_v18 = vpack.c.bf16 %v4018_v13, %v4014_v9  ;;  %4031 = vtanh.f32 %v1040_v12  ;;  %v5027_v13 = vld [vmem:[%s6808_s4] ss:$0 sm:$0xff] }
 0x195   : > { %v3638_v19 = vpop.f32.mrf.mxu0  ;;  %v1342_v20 = vpack.c.bf16 %v4016_v11, %v4020_v16 }
 0x196   : > { %4033 = vtanh.f32 %v1032_v17  ;;  %3768 = vmatprep.mubr.bf16.mxu1 %v1341_v18  ;;  %v1053_v28 = vadd.f32 %v3638_v19, %v4870_v48 }
 0x197   : > { %4035 = vtanh.f32 %v1037_v14  ;;  %v1044_v21 = vpop.f32.mrf.mxu0  ;;  %3769 = vmatmul.mubr.bf16.gmra.mxu1 %v1342_v20  ;;  %v4022_v23 = vpop.eup %4021 }
 0x198   : > { %v1045_v22 = vadd.f32 %v4870_v48, %v1044_v21 }
 0x199   : > { %v3639_v24 = vpop.f32.mrf.mxu0  ;;  %v4024_v25 = vpop.eup %4023 }
 0x19a   : > { %v1056_v26 = vadd.f32 %v3639_v24, %v4870_v48  ;;  %4037 = vtanh.f32 %v1045_v22 }
 0x19b   : > { %v4026_v27 = vpop.eup %4025  ;;  %v1047_v29 = vpop.f32.mrf.mxu0 }
 0x19c   : > { %v4028_v30 = vpop.eup %4027  ;;  %v1048_v32 = vadd.f32 %v5009_v31, %v1047_v29  ;;  %v1343_v33 = vpack.c.bf16 %v4026_v27, %v4022_v23  ;;  %4039 = vtanh.f32 %v1056_v26 }
 0x19d   : > { %v3642_v34 = vpop.f32.mrf.mxu0  ;;  %v1344_v36 = vpack.c.bf16 %v4024_v25, %v4028_v30 }
 0x19e   : > { %4041 = vtanh.f32 %v1048_v32  ;;  %3772 = vmatprep.mubr.bf16.mxu1 %v1343_v33  ;;  %v1069_v38 = vadd.f32 %v5009_v31, %v3642_v34 }
 0x19f   : > { %4043 = vtanh.f32 %v1053_v28  ;;  %v1060_v37 = vpop.f32.mrf.mxu0  ;;  %3773 = vmatmul.mubr.bf16.gmra.mxu1 %v1344_v36  ;;  %v4030_v39 = vpop.eup %4029 }
 0x1a0   : > { %v1061_v48 = vadd.f32 %v5009_v31, %v1060_v37 }
 0x1a1   : > { %v3643_v40 = vpop.f32.mrf.mxu0  ;;  %v4032_v42 = vpop.eup %4031 }
 0x1a2   : > { %v1072_v43 = vadd.f32 %v5009_v31, %v3643_v40  ;;  %4045 = vtanh.f32 %v1061_v48 }
 0x1a3   : > { %v4034_v45 = vpop.eup %4033  ;;  %v1063_v46 = vpop.f32.mrf.mxu0 }
 0x1a4   : > { %v4036_v47 = vpop.eup %4035  ;;  %v1064_v49 = vadd.f32 %v5009_v31, %v1063_v46  ;;  %v1345_v44 = vpack.c.bf16 %v4034_v45, %v4030_v39  ;;  %4047 = vtanh.f32 %v1072_v43 }
 0x1a5   : > { %v3646_v50 = vpop.f32.mrf.mxu0  ;;  %v1346_v51 = vpack.c.bf16 %v4032_v42, %v4036_v47 }
 0x1a6   : > { %4049 = vtanh.f32 %v1064_v49  ;;  %3776 = vmatprep.mubr.bf16.mxu1 %v1345_v44  ;;  %v1085_v59 = vadd.f32 %v5009_v31, %v3646_v50 }
 0x1a7   : > { %4051 = vtanh.f32 %v1069_v38  ;;  %v1076_v52 = vpop.f32.mrf.mxu0  ;;  %3777 = vmatmul.mubr.bf16.gmra.mxu1 %v1346_v51  ;;  %v4038_v54 = vpop.eup %4037 }
 0x1a8   : > { %v1077_v53 = vadd.f32 %v5009_v31, %v1076_v52 }
 0x1a9   : > { %v3647_v55 = vpop.f32.mrf.mxu0  ;;  %v4040_v56 = vpop.eup %4039 }
 0x1aa   : > { %v1088_v57 = vadd.f32 %v5009_v31, %v3647_v55  ;;  %4053 = vtanh.f32 %v1077_v53 }
 0x1ab   : > { %v4042_v58 = vpop.eup %4041  ;;  %v1079_v60 = vpop.f32.mrf.mxu0 }
 0x1ac   : > { %v4044_v61 = vpop.eup %4043  ;;  %v1080_v62 = vadd.f32 %v5009_v31, %v1079_v60  ;;  %v1347_v63 = vpack.c.bf16 %v4042_v58, %v4038_v54  ;;  %4055 = vtanh.f32 %v1088_v57 }
 0x1ad   : > { %v3650_v0 = vpop.f32.mrf.mxu0  ;;  %v1348_v1 = vpack.c.bf16 %v4040_v56, %v4044_v61 }
 0x1ae   : > { %4057 = vtanh.f32 %v1080_v62  ;;  %3780 = vmatprep.mubr.bf16.mxu1 %v1347_v63  ;;  %v1101_v7 = vadd.f32 %v5009_v31, %v3650_v0 }
 0x1af   : > { %4059 = vtanh.f32 %v1085_v59  ;;  %v1092_v2 = vpop.f32.mrf.mxu0  ;;  %3781 = vmatmul.mubr.bf16.gmra.mxu1 %v1348_v1  ;;  %v4046_v3 = vpop.eup %4045 }
 0x1b0   : > { %v1093_v35 = vadd.f32 %v5009_v31, %v1092_v2 }
 0x1b1   : > { %v3651_v4 = vpop.f32.mrf.mxu0  ;;  %v4048_v5 = vpop.eup %4047 }
 0x1b2   : > { %v1104_v41 = vadd.f32 %v5009_v31, %v3651_v4  ;;  %4061 = vtanh.f32 %v1093_v35 }
 0x1b3   : > { %v4050_v6 = vpop.eup %4049  ;;  %v1095_v8 = vpop.f32.mrf.mxu0 }
 0x1b4   : > { %v4052_v9 = vpop.eup %4051  ;;  %v1096_v10 = vadd.f32 %v5009_v31, %v1095_v8  ;;  %v1349_v11 = vpack.c.bf16 %v4050_v6, %v4046_v3  ;;  %4063 = vtanh.f32 %v1104_v41 }
 0x1b5   : > { %v3654_v12 = vpop.f32.mrf.mxu0  ;;  %v1350_v14 = vpack.c.bf16 %v4048_v5, %v4052_v9 }
 0x1b6   : > { %4065 = vtanh.f32 %v1096_v10  ;;  %3784 = vmatprep.mubr.bf16.mxu1 %v1349_v11  ;;  %v1117_v25 = vadd.f32 %v5009_v31, %v3654_v12 }
 0x1b7   : > { %4067 = vtanh.f32 %v1101_v7  ;;  %v1108_v15 = vpop.f32.mrf.mxu0  ;;  %v3690_v16 = vpop.f32.mrf.mxu1  ;;  %3785 = vmatmul.mubr.bf16.gmra.mxu1 %v1350_v14 }
 0x1b8   : > { %v1109_v17 = vadd.f32 %v5009_v31, %v1108_v15  ;;  %v5031_v18 = vadd.f32 %v3690_v16, %v5027_v13  ;;  %v4054_v19 = vpop.eup %4053 }
 0x1b9   : > { %v3655_v20 = vpop.f32.mrf.mxu0  ;;  %v1484_v21 = vpop.f32.mrf.mxu1 }
 0x1ba   : > { %v4056_v22 = vpop.eup %4055  ;;  %v1120_v23 = vadd.f32 %v5009_v31, %v3655_v20  ;;  %1991 = vmax.xlane.f32.xlu0 %v5031_v18  ;;  %4069 = vtanh.f32 %v1109_v17  ;;  %v5041_v33 = vadd.f32 %v5027_v13, %v1484_v21 }
 0x1bb   : > { %v4058_v24 = vpop.eup %4057  ;;  %v1111_v26 = vpop.f32.mrf.mxu0 }
 0x1bc   : > { %v3691_v27 = vpop.f32.mrf.mxu1  ;;  %v4060_v28 = vpop.eup %4059  ;;  %v1112_v29 = vadd.f32 %v5009_v31, %v1111_v26  ;;  %v1351_v32 = vpack.c.bf16 %v4058_v24, %v4054_v19  ;;  %4071 = vtanh.f32 %v1120_v23 }
 0x1bd   : > { %v5038_v30 = vadd.f32 %v3691_v27, %v5027_v13  ;;  %v3658_v34 = vpop.f32.mrf.mxu0  ;;  %v1352_v37 = vpack.c.bf16 %v4056_v22, %v4060_v28 }
 0x1be   : > { %v1487_v36 = vpop.f32.mrf.mxu1  ;;  %4073 = vtanh.f32 %v1112_v29  ;;  %3788 = vmatprep.mubr.bf16.mxu1 %v1351_v32  ;;  %1987 = vmax.xlane.f32.xlu0 %v5041_v33  ;;  %v1133_v50 = vadd.f32 %v5009_v31, %v3658_v34 }
 0x1bf   : > { %1993 = vmax.xlane.f32.xlu1 %v5038_v30  ;;  %4075 = vtanh.f32 %v1117_v25  ;;  %v1124_v48 = vpop.f32.mrf.mxu0  ;;  %3789 = vmatmul.mubr.bf16.gmra.mxu1 %v1352_v37  ;;  %v5050_v43 = vadd.f32 %v5027_v13, %v1487_v36  ;;  %v4062_v45 = vpop.eup %4061 }
 0x1c0   : > { %v3694_v39 = vpop.f32.mrf.mxu1  ;;  %v1125_v40 = vadd.f32 %v5009_v31, %v1124_v48 }
 0x1c1   : > { %v5047_v42 = vadd.f32 %v3694_v39, %v5027_v13  ;;  %v3659_v38 = vpop.f32.mrf.mxu0  ;;  %v4064_v47 = vpop.eup %4063 }
 0x1c2   : > { %v1500_v46 = vpop.f32.mrf.mxu1  ;;  %v1136_v49 = vadd.f32 %v5009_v31, %v3659_v38  ;;  %4077 = vtanh.f32 %v1125_v40 }
 0x1c3   : > { %1989 = vmax.xlane.f32.xlu1 %v5050_v43  ;;  %v4066_v44 = vpop.eup %4065  ;;  %1999 = vmax.xlane.f32.xlu0 %v5047_v42  ;;  %v1127_v51 = vpop.f32.mrf.mxu0  ;;  %v5061_v57 = vadd.f32 %v5027_v13, %v1500_v46 }
 0x1c4   : > { %v3695_v52 = vpop.f32.mrf.mxu1  ;;  %v4068_v53 = vpop.eup %4067  ;;  %v1128_v54 = vadd.f32 %v5009_v31, %v1127_v51  ;;  %v1353_v56 = vpack.c.bf16 %v4066_v44, %v4062_v45  ;;  %4079 = vtanh.f32 %v1136_v49 }
 0x1c5   : > { %v5058_v55 = vadd.f32 %v3695_v52, %v5027_v13  ;;  %v3662_v58 = vpop.f32.mrf.mxu0  ;;  %v1354_v60 = vpack.c.bf16 %v4064_v47, %v4068_v53 }
 0x1c6   : > { %v1503_v59 = vpop.f32.mrf.mxu1  ;;  %4081 = vtanh.f32 %v1128_v54  ;;  %3792 = vmatprep.mubr.bf16.mxu1 %v1353_v56  ;;  %v1149_v6 = vadd.f32 %v5009_v31, %v3662_v58 }
 0x1c7   : > { %2001 = vmax.xlane.f32.xlu1 %v5058_v55  ;;  %4083 = vtanh.f32 %v1133_v50  ;;  %1995 = vmax.xlane.f32.xlu0 %v5061_v57  ;;  %v1140_v61 = vpop.f32.mrf.mxu0  ;;  %v5070_v1 = vadd.f32 %v5027_v13, %v1503_v59  ;;  %v4070_v2 = vpop.eup %4069 }
 0x1c8   : > { %v3698_v62 = vpop.f32.mrf.mxu1  ;;  %3793 = vmatmul.mubr.bf16.gmra.mxu1 %v1354_v60  ;;  %v1141_v63 = vadd.f32 %v5009_v31, %v1140_v61 }
 0x1c9   : > { %v5067_v0 = vadd.f32 %v3698_v62, %v5027_v13  ;;  %v3663_v35 = vpop.f32.mrf.mxu0  ;;  %v4072_v4 = vpop.eup %4071 }
 0x1ca   : > { %v1516_v3 = vpop.f32.mrf.mxu1  ;;  %v1152_v5 = vadd.f32 %v5009_v31, %v3663_v35  ;;  %4085 = vtanh.f32 %v1141_v63 }
 0x1cb   : > { %1997 = vmax.xlane.f32.xlu1 %v5070_v1  ;;  %v4074_v41 = vpop.eup %4073  ;;  %2007 = vmax.xlane.f32.xlu0 %v5067_v0  ;;  %v1143_v7 = vpop.f32.mrf.mxu0  ;;  %v5081_v14 = vadd.f32 %v5027_v13, %v1516_v3 }
 0x1cc   : > { %v3699_v8 = vpop.f32.mrf.mxu1  ;;  %v4076_v9 = vpop.eup %4075  ;;  %v1144_v10 = vadd.f32 %v5009_v31, %v1143_v7  ;;  %v1355_v12 = vpack.c.bf16 %v4074_v41, %v4070_v2  ;;  %4087 = vtanh.f32 %v1152_v5 }
 0x1cd   : > { %v5078_v11 = vadd.f32 %v3699_v8, %v5027_v13  ;;  %v3666_v15 = vpop.f32.mrf.mxu0  ;;  %v1356_v17 = vpack.c.bf16 %v4072_v4, %v4076_v9 }
 0x1ce   : > { %v1519_v16 = vpop.f32.mrf.mxu1  ;;  %4089 = vtanh.f32 %v1144_v10  ;;  %3796 = vmatprep.mubr.bf16.mxu1 %v1355_v12  ;;  %v1165_v32 = vadd.f32 %v5009_v31, %v3666_v15 }
 0x1cf   : > { %2009 = vmax.xlane.f32.xlu1 %v5078_v11  ;;  %4091 = vtanh.f32 %v1149_v6  ;;  %2003 = vmax.xlane.f32.xlu0 %v5081_v14  ;;  %v1156_v19 = vpop.f32.mrf.mxu0  ;;  %v5090_v23 = vadd.f32 %v5027_v13, %v1519_v16  ;;  %v4078_v24 = vpop.eup %4077 }
 0x1d0   : > { %v3702_v20 = vpop.f32.mrf.mxu1  ;;  %3797 = vmatmul.mubr.bf16.gmra.mxu1 %v1356_v17  ;;  %v1157_v21 = vadd.f32 %v5009_v31, %v1156_v19 }
 0x1d1   : > { %v5087_v22 = vadd.f32 %v3702_v20, %v5027_v13  ;;  %v3667_v25 = vpop.f32.mrf.mxu0  ;;  %v4080_v27 = vpop.eup %4079 }
 0x1d2   : > { %v1532_v26 = vpop.f32.mrf.mxu1  ;;  %v1168_v28 = vadd.f32 %v5009_v31, %v3667_v25  ;;  %4093 = vtanh.f32 %v1157_v21 }
 0x1d3   : > { %2005 = vmax.xlane.f32.xlu1 %v5090_v23  ;;  %v4082_v29 = vpop.eup %4081  ;;  %2015 = vmax.xlane.f32.xlu0 %v5087_v22  ;;  %v1159_v34 = vpop.f32.mrf.mxu0  ;;  %v5101_v45 = vadd.f32 %v5027_v13, %v1532_v26 }
 0x1d4   : > { %v3703_v36 = vpop.f32.mrf.mxu1  ;;  %v4084_v37 = vpop.eup %4083  ;;  %v1160_v48 = vadd.f32 %v5009_v31, %v1159_v34  ;;  %v1357_v40 = vpack.c.bf16 %v4082_v29, %v4078_v24  ;;  %4095 = vtanh.f32 %v1168_v28 }
 0x1d5   : > { %v5098_v39 = vadd.f32 %v3703_v36, %v5027_v13  ;;  %v3686_v38 = vpop.f32.mrf.mxu0  ;;  %v1358_v47 = vpack.c.bf16 %v4080_v27, %v4084_v37 }
 0x1d6   : > { %v1535_v46 = vpop.f32.mrf.mxu1  ;;  %4097 = vtanh.f32 %v1160_v48  ;;  %3800 = vmatprep.mubr.bf16.mxu1 %v1357_v40  ;;  %v5106_v44 = vadd.f32 %v3686_v38, %v5027_v13 }
 0x1d7   : > { %2017 = vmax.xlane.f32.xlu1 %v5098_v39  ;;  %4099 = vtanh.f32 %v1165_v32  ;;  %2011 = vmax.xlane.f32.xlu0 %v5101_v45  ;;  %v1468_v49 = vpop.f32.mrf.mxu0  ;;  %v4086_v51 = vpop.eup %4085  ;;  %v5114_v59 = vadd.f32 %v5027_v13, %v1535_v46 }
 0x1d8   : > { %v3706_v31 = vpop.f32.mrf.mxu1  ;;  %3801 = vmatmul.mubr.bf16.gmra.mxu1 %v1358_v47  ;;  %v5109_v50 = vadd.f32 %v5027_v13, %v1468_v49 }
 0x1d9   : > { %v4088_v53 = vpop.eup %4087  ;;  %v5117_v61 = vadd.f32 %v3706_v31, %v5027_v13  ;;  %v3687_v62 = vpop.f32.mrf.mxu0 }
 0x1da   : > { %v1548_v52 = vpop.f32.mrf.mxu1  ;;  %v5122_v3 = vadd.f32 %v3687_v62, %v5027_v13 }
 0x1db   : > { %1983 = vmax.xlane.f32.xlu1 %v5106_v44  ;;  %v4090_v54 = vpop.eup %4089  ;;  %1979 = vmax.xlane.f32.xlu0 %v5109_v50  ;;  %v5125_v5 = vadd.f32 %v5027_v13, %v1548_v52  ;;  %v1471_v7 = vpop.f32.mrf.mxu0 }
 0x1dc   : > { %v3707_v56 = vpop.f32.mrf.mxu1  ;;  %v4092_v58 = vpop.eup %4091  ;;  %v1359_v60 = vpack.c.bf16 %v4090_v54, %v4086_v51  ;;  %v5133_v16 = vadd.f32 %v5027_v13, %v1471_v7 }
 0x1dd   : > { %v1360_v2 = vpack.c.bf16 %v4088_v53, %v4092_v58  ;;  %v5130_v12 = vadd.f32 %v3707_v56, %v5027_v13 }
 0x1de   : > { %v1551_v63 = vpop.f32.mrf.mxu1  ;;  %3804 = vmatprep.mubr.bf16.mxu1 %v1359_v60 }
 0x1df   : > { %2013 = vmax.xlane.f32.xlu1 %v5114_v59  ;;  %2023 = vmax.xlane.f32.xlu0 %v5117_v61  ;;  %v4094_v4 = vpop.eup %4093  ;;  %v5138_v21 = vadd.f32 %v5027_v13, %v1551_v63 }
 0x1e0   : > { %v3710_v35 = vpop.f32.mrf.mxu1  ;;  %3805 = vmatmul.mubr.bf16.gmra.mxu1 %v1360_v2 }
 0x1e1   : > { %v4096_v6 = vpop.eup %4095  ;;  %v5141_v24 = vadd.f32 %v3710_v35, %v5027_v13 }
 0x1e2   : > { %v1564_v41 = vpop.f32.mrf.mxu1 }
 0x1e3   : > { %1985 = vmax.xlane.f32.xlu1 %v5122_v3  ;;  %v4098_v8 = vpop.eup %4097  ;;  %2019 = vmax.xlane.f32.xlu0 %v5125_v5  ;;  %v5149_v28 = vadd.f32 %v5027_v13, %v1564_v41 }
 0x1e4   : > { %v3711_v9 = vpop.f32.mrf.mxu1  ;;  %v4100_v10 = vpop.eup %4099  ;;  %v1361_v15 = vpack.c.bf16 %v4098_v8, %v4094_v4 }
 0x1e5   : > { %v1362_v19 = vpack.c.bf16 %v4096_v6, %v4100_v10  ;;  %v5146_v27 = vadd.f32 %v3711_v9, %v5027_v13 }
 0x1e6   : > { %v1567_v17 = vpop.f32.mrf.mxu1  ;;  %3808 = vmatprep.mubr.bf16.mxu1 %v1361_v15 }
 0x1e7   : > { %2025 = vmax.xlane.f32.xlu1 %v5130_v12  ;;  %1981 = vmax.xlane.f32.xlu0 %v5133_v16  ;;  %v5154_v34 = vadd.f32 %v5027_v13, %v1567_v17 }
 0x1e8   : > { %v3714_v20 = vpop.f32.mrf.mxu1  ;;  %3809 = vmatmul.mubr.bf16.gmra.mxu1 %v1362_v19 }
 0x1e9   : > { %v5157_v36 = vadd.f32 %v3714_v20, %v5027_v13 }
 0x1ea   : > { %v1580_v25 = vpop.f32.mrf.mxu1 }
 0x1eb   : > { %2021 = vmax.xlane.f32.xlu1 %v5138_v21  ;;  %2031 = vmax.xlane.f32.xlu0 %v5141_v24  ;;  %v5165_v38 = vadd.f32 %v5027_v13, %v1580_v25 }
 0x1ec   : > { %v3715_v26 = vpop.f32.mrf.mxu1 }
 0x1ed   : > { %v5162_v40 = vadd.f32 %v3715_v26, %v5027_v13 }
 0x1ee   : > { %v1583_v29 = vpop.f32.mrf.mxu1 }
 0x1ef   : > { %2033 = vmax.xlane.f32.xlu1 %v5146_v27  ;;  %2027 = vmax.xlane.f32.xlu0 %v5149_v28  ;;  %v5170_v49 = vadd.f32 %v5027_v13, %v1583_v29 }
 0x1f0   : > { %v3718_v32 = vpop.f32.mrf.mxu1 }
 0x1f1   : > { %v5173_v31 = vadd.f32 %v3718_v32, %v5027_v13 }
 0x1f2   : > { %v1596_v37 = vpop.f32.mrf.mxu1 }
 0x1f3   : > { %2029 = vmax.xlane.f32.xlu1 %v5154_v34  ;;  %2039 = vmax.xlane.f32.xlu0 %v5157_v36  ;;  %v5181_v54 = vadd.f32 %v5027_v13, %v1596_v37 }
 0x1f4   : > { %v3719_v48 = vpop.f32.mrf.mxu1 }
 0x1f5   : > { %v5178_v53 = vadd.f32 %v3719_v48, %v5027_v13 }
 0x1f6   : > { %v1599_v46 = vpop.f32.mrf.mxu1 }
 0x1f7   : > { %2041 = vmax.xlane.f32.xlu1 %v5162_v40  ;;  %2035 = vmax.xlane.f32.xlu0 %v5165_v38  ;;  %v5186_v60 = vadd.f32 %v5027_v13, %v1599_v46 }
 0x1f8   : > { %v3722_v47 = vpop.f32.mrf.mxu1 }
 0x1f9   : > { %v5189_v62 = vadd.f32 %v3722_v47, %v5027_v13 }
 0x1fa   : > { %v1612_v51 = vpop.f32.mrf.mxu1 }
 0x1fb   : > { %2037 = vmax.xlane.f32.xlu1 %v5170_v49  ;;  %2047 = vmax.xlane.f32.xlu0 %v5173_v31  ;;  %v5197_v4 = vadd.f32 %v5027_v13, %v1612_v51 }
 0x1fc   : > { %v3723_v52 = vpop.f32.mrf.mxu1 }
 0x1fd   : > { %v5194_v35 = vadd.f32 %v3723_v52, %v5027_v13 }
 0x1fe   : > { %v1615_v56 = vpop.f32.mrf.mxu1 }
 0x1ff   : > { %2049 = vmax.xlane.f32.xlu1 %v5178_v53  ;;  %2043 = vmax.xlane.f32.xlu0 %v5181_v54  ;;  %v5202_v7 = vadd.f32 %v5027_v13, %v1615_v56 }
 0x200   : > { %v3726_v58 = vpop.f32.mrf.mxu1 }
 0x201   : > { %v5205_v8 = vadd.f32 %v3726_v58, %v5027_v13 }
 0x202   : > { %v1628_v63 = vpop.f32.mrf.mxu1 }
 0x203   : > { %2045 = vmax.xlane.f32.xlu1 %v5186_v60  ;;  %2055 = vmax.xlane.f32.xlu0 %v5189_v62  ;;  %v5213_v17 = vadd.f32 %v5027_v13, %v1628_v63 }
 0x204   : > { %v3727_v2 = vpop.f32.mrf.mxu1 }
 0x205   : > { %v5210_v15 = vadd.f32 %v3727_v2, %v5027_v13  ;;  %6953 = vst [vmem:[#allocation2_spill] sm:$0xff] %v5213_v17 }
 0x206   : > { %v1631_v41 = vpop.f32.mrf.mxu1 }
 0x207   : > { %2057 = vmax.xlane.f32.xlu1 %v5194_v35  ;;  %2051 = vmax.xlane.f32.xlu0 %v5197_v4  ;;  %v5218_v25 = vadd.f32 %v5027_v13, %v1631_v41 }
 0x208   : > { %v3730_v6 = vpop.f32.mrf.mxu1 }
 0x209   : > { %6954 = vst [vmem:[#allocation3_spill] sm:$0xff] %v5218_v25  ;;  %v5221_v26 = vadd.f32 %v3730_v6, %v5027_v13 }
 0x20a   : > { %v1644_v9 = vpop.f32.mrf.mxu1 }
 0x20b   : > { %2053 = vmax.xlane.f32.xlu1 %v5202_v7  ;;  %2063 = vmax.xlane.f32.xlu0 %v5205_v8  ;;  %6955 = vst [vmem:[#allocation4_spill] sm:$0xff] %v5221_v26  ;;  %v5229_v48 = vadd.f32 %v5027_v13, %v1644_v9 }
 0x20c   : > { %v3731_v10 = vpop.f32.mrf.mxu1 }
 0x20d   : > { %v5226_v37 = vadd.f32 %v3731_v10, %v5027_v13  ;;  %6957 = vst [vmem:[#allocation6_spill] sm:$0xff] %v5229_v48 }
 0x20e   : > { %v1647_v19 = vpop.f32.mrf.mxu1 }
 0x20f   : > { %2065 = vmax.xlane.f32.xlu1 %v5210_v15  ;;  %2059 = vmax.xlane.f32.xlu0 %v5213_v17  ;;  %6956 = vst [vmem:[#allocation5_spill] sm:$0xff] %v5226_v37  ;;  %v5234_v51 = vadd.f32 %v5027_v13, %v1647_v19 }
 0x210   : > { %v3734_v20 = vpop.f32.mrf.mxu1 }
 0x211   : > { %6958 = vst [vmem:[#allocation7_spill] sm:$0xff] %v5234_v51  ;;  %v5237_v52 = vadd.f32 %v3734_v20, %v5027_v13 }
 0x212   : > { %v1660_v29 = vpop.f32.mrf.mxu1 }
 0x213   : > { %2061 = vmax.xlane.f32.xlu1 %v5218_v25  ;;  %2071 = vmax.xlane.f32.xlu0 %v5221_v26  ;;  %6959 = vst [vmem:[#allocation8_spill] sm:$0xff] %v5237_v52  ;;  %v5245_v2 = vadd.f32 %v5027_v13, %v1660_v29 }
 0x214   : > { %v3735_v32 = vpop.f32.mrf.mxu1 }
 0x215   : > { %v5242_v63 = vadd.f32 %v3735_v32, %v5027_v13  ;;  %6961 = vst [vmem:[#allocation10_spill] sm:$0xff] %v5245_v2 }
 0x216   : > { %v1663_v46 = vpop.f32.mrf.mxu1 }
 0x217   : > { %2073 = vmax.xlane.f32.xlu1 %v5226_v37  ;;  %2067 = vmax.xlane.f32.xlu0 %v5229_v48  ;;  %6960 = vst [vmem:[#allocation9_spill] sm:$0xff] %v5242_v63  ;;  %v5250_v9 = vadd.f32 %v5027_v13, %v1663_v46 }
 0x218   : > { %v3738_v47 = vpop.f32.mrf.mxu1 }
 0x219   : > { %6962 = vst [vmem:[#allocation11_spill] sm:$0xff] %v5250_v9  ;;  %v5253_v10 = vadd.f32 %v3738_v47, %v5027_v13 }
 0x21a   : > { %v1676_v56 = vpop.f32.mrf.mxu1 }
 0x21b   : > { %2069 = vmax.xlane.f32.xlu1 %v5234_v51  ;;  %2079 = vmax.xlane.f32.xlu0 %v5237_v52  ;;  %6963 = vst [vmem:[#allocation12_spill] sm:$0xff] %v5253_v10  ;;  %v5261_v32 = vadd.f32 %v5027_v13, %v1676_v56 }
 0x21c   : > { %v3739_v58 = vpop.f32.mrf.mxu1 }
 0x21d   : > { %v5258_v29 = vadd.f32 %v3739_v58, %v5027_v13  ;;  %6965 = vst [vmem:[#allocation14_spill] sm:$0xff] %v5261_v32 }
 0x21e   : > { %v1679_v41 = vpop.f32.mrf.mxu1 }
 0x21f   : > { %2081 = vmax.xlane.f32.xlu1 %v5242_v63  ;;  %2075 = vmax.xlane.f32.xlu0 %v5245_v2  ;;  %6964 = vst [vmem:[#allocation13_spill] sm:$0xff] %v5258_v29  ;;  %v5266_v47 = vadd.f32 %v5027_v13, %v1679_v41 }
 0x220   : > { %v3742_v6 = vpop.f32.mrf.mxu1 }
 0x221   : > { %6966 = vst [vmem:[#allocation15_spill] sm:$0xff] %v5266_v47 }
 0x222   : > { %v1692_v19 = vpop.f32.mrf.mxu1 }
 0x223   : > { %2077 = vmax.xlane.f32.xlu1 %v5250_v9  ;;  %2087 = vmax.xlane.f32.xlu0 %v5253_v10  ;;  %v5269_v9 = vadd.f32 %v3742_v6, %v5027_v13 }
 0x224   : > { %v3743_v20 = vpop.f32.mrf.mxu1 }
 0x225   : > { %6967 = vst [vmem:[#allocation16_spill] sm:$0xff] %v5269_v9  ;;  %v5274_v56 = vadd.f32 %v3743_v20, %v5027_v13 }
 0x226   : > { %v1695_v2 = vpop.f32.mrf.mxu1 }
 0x227   : > { %2089 = vmax.xlane.f32.xlu1 %v5258_v29  ;;  %2083 = vmax.xlane.f32.xlu0 %v5261_v32  ;;  %6968 = vst [vmem:[#allocation17_spill] sm:$0xff] %v5274_v56  ;;  %v5277_v29 = vadd.f32 %v5027_v13, %v1692_v19  ;;  %v5282_v6 = vadd.f32 %v5027_v13, %v1695_v2 }
 0x228   : > { %v3746_v46 = vpop.f32.mrf.mxu1 }
 0x229   : > { %6969 = vst [vmem:[#allocation18_spill] sm:$0xff] %v5277_v29  ;;  %6970 = vst [vmem:[#allocation19_spill] sm:$0xff] %v5282_v6 }
 0x22a   : > { %v1708_v10 = vpop.f32.mrf.mxu1 }
 0x22b   : > { %2085 = vmax.xlane.f32.xlu1 %v5266_v47  ;;  %2095 = vmax.xlane.f32.xlu0 %v5269_v9  ;;  %v5285_v47 = vadd.f32 %v3746_v46, %v5027_v13 }
 0x22c   : > { %v3747_v58 = vpop.f32.mrf.mxu1 }
 0x22d   : > { %6971 = vst [vmem:[#allocation20_spill] sm:$0xff] %v5285_v47  ;;  %v5290_v19 = vadd.f32 %v3747_v58, %v5027_v13 }
 0x22e   : > { %v1711_v32 = vpop.f32.mrf.mxu1 }
 0x22f   : > { %2097 = vmax.xlane.f32.xlu1 %v5274_v56  ;;  %2091 = vmax.xlane.f32.xlu0 %v5277_v29  ;;  %6972 = vst [vmem:[#allocation21_spill] sm:$0xff] %v5290_v19  ;;  %v5293_v56 = vadd.f32 %v5027_v13, %v1708_v10  ;;  %v5298_v46 = vadd.f32 %v5027_v13, %v1711_v32 }
 0x230   : > { %v3750_v41 = vpop.f32.mrf.mxu1 }
 0x231   : > { %6973 = vst [vmem:[#allocation22_spill] sm:$0xff] %v5293_v56  ;;  %6974 = vst [vmem:[#allocation23_spill] sm:$0xff] %v5298_v46 }
 0x232   : > { %v1724_v9 = vpop.f32.mrf.mxu1 }
 0x233   : > { %2093 = vmax.xlane.f32.xlu1 %v5282_v6  ;;  %2103 = vmax.xlane.f32.xlu0 %v5285_v47  ;;  %v5301_v6 = vadd.f32 %v3750_v41, %v5027_v13 }
 0x234   : > { %v3751_v20 = vpop.f32.mrf.mxu1 }
 0x235   : > { %6975 = vst [vmem:[#allocation24_spill] sm:$0xff] %v5301_v6  ;;  %v5306_v10 = vadd.f32 %v3751_v20, %v5027_v13 }
 0x236   : > { %v1727_v29 = vpop.f32.mrf.mxu1 }
 0x237   : > { %2105 = vmax.xlane.f32.xlu1 %v5290_v19  ;;  %2099 = vmax.xlane.f32.xlu0 %v5293_v56  ;;  %6976 = vst [vmem:[#allocation25_spill] sm:$0xff] %v5306_v10  ;;  %v5309_v19 = vadd.f32 %v5027_v13, %v1724_v9  ;;  %v5314_v41 = vadd.f32 %v5027_v13, %v1727_v29 }
 0x238   : > { %v3754_v2 = vpop.f32.mrf.mxu1 }
 0x239   : > { %6977 = vst [vmem:[#allocation26_spill] sm:$0xff] %v5309_v19  ;;  %6978 = vst [vmem:[#allocation27_spill] sm:$0xff] %v5314_v41 }
 0x23a   : > { %v1740_v47 = vpop.f32.mrf.mxu1 }
 0x23b   : > { %2101 = vmax.xlane.f32.xlu1 %v5298_v46  ;;  %2111 = vmax.xlane.f32.xlu0 %v5301_v6  ;;  %v5317_v46 = vadd.f32 %v3754_v2, %v5027_v13 }
 0x23c   : > { %v3755_v58 = vpop.f32.mrf.mxu1 }
 0x23d   : > { %6979 = vst [vmem:[#allocation28_spill] sm:$0xff] %v5317_v46  ;;  %v5322_v63 = vadd.f32 %v3755_v58, %v5027_v13 }
 0x23e   : > { %v1743_v56 = vpop.f32.mrf.mxu1 }
 0x23f   : > { %2113 = vmax.xlane.f32.xlu1 %v5306_v10  ;;  %2107 = vmax.xlane.f32.xlu0 %v5309_v19  ;;  %6980 = vst [vmem:[#allocation29_spill] sm:$0xff] %v5322_v63  ;;  %v5325_v10 = vadd.f32 %v5027_v13, %v1740_v47  ;;  %v5330_v52 = vadd.f32 %v5027_v13, %v1743_v56 }
 0x240   : > { %v3758_v32 = vpop.f32.mrf.mxu1 }
 0x241   : > { %6981 = vst [vmem:[#allocation30_spill] sm:$0xff] %v5325_v10  ;;  %6982 = vst [vmem:[#allocation31_spill] sm:$0xff] %v5330_v52 }
 0x242   : > { %v1756_v6 = vpop.f32.mrf.mxu1 }
 0x243   : > { %2109 = vmax.xlane.f32.xlu1 %v5314_v41  ;;  %2119 = vmax.xlane.f32.xlu0 %v5317_v46  ;;  %v1992_v20 = vpop.xlane.xlu0 %1991  ;;  %v5333_v46 = vadd.f32 %v3758_v32, %v5027_v13  ;;  %v5341_v48 = vadd.f32 %v5027_v13, %v1756_v6 }
 0x244   : > { %v3759_v9 = vpop.f32.mrf.mxu1  ;;  %v2241_v56 = vsub.f32 %v5031_v18, %v1992_v20 }
 0x245   : > { %6983 = vst [vmem:[#allocation32_spill] sm:$0xff] %v5333_v46  ;;  %6985 = vst [vmem:[#allocation34_spill] sm:$0xff] %v5341_v48 }
 0x246   : > { %v1759_v19 = vpop.f32.mrf.mxu1 }
 0x247   : > { %2121 = vmax.xlane.f32.xlu1 %v5322_v63  ;;  %2115 = vmax.xlane.f32.xlu0 %v5325_v10  ;;  %v1988_v41 = vpop.xlane.xlu0 %1987  ;;  %v5338_v63 = vadd.f32 %v3759_v9, %v5027_v13  ;;  %v2375_v9 = vmul.f32 1.442695, %v2241_v56 }
 0x248   : > { %v1994_v29 = vpop.xlane.xlu1 %1993  ;;  %v3762_v2 = vpop.f32.mrf.mxu1  ;;  %v2239_v6 = vsub.f32 %v5041_v33, %v1988_v41 }
 0x249   : > { %6984 = vst [vmem:[#allocation33_spill] sm:$0xff] %v5338_v63  ;;  %v5351_v25 = vadd.f32 %v3762_v2, %v5027_v13  ;;  %4101 = vpow2.f32 %v2375_v9 }
 0x24a   : > { %v1772_v51 = vpop.f32.mrf.mxu1 }
 0x24b   : > { %2117 = vmax.xlane.f32.xlu1 %v5330_v52  ;;  %2127 = vmax.xlane.f32.xlu0 %v5333_v46  ;;  %v5347_v52 = vadd.f32 %v5027_v13, %v1759_v19  ;;  %v2242_v46 = vsub.f32 %v5038_v30, %v1994_v29  ;;  %6987 = vst [vmem:[#allocation36_spill] sm:$0xff] %v5351_v25  ;;  %v2371_v29 = vmul.f32 1.442695, %v2239_v6 }
 0x24c   : > { %v3763_v47 = vpop.f32.mrf.mxu1  ;;  %v1990_v58 = vpop.xlane.xlu1 %1989  ;;  %v5363_v2 = vadd.f32 %v5027_v13, %v1772_v51 }
 0x24d   : > { %v2000_v10 = vpop.xlane.xlu0 %1999  ;;  %6986 = vst [vmem:[#allocation35_spill] sm:$0xff] %v5347_v52  ;;  %v2377_v20 = vmul.f32 1.442695, %v2242_v46  ;;  %v2240_v19 = vsub.f32 %v5050_v43, %v1990_v58 }
 0x24e   : > { %v1775_v37 = vpop.f32.mrf.mxu1  ;;  %6989 = vst [vmem:[#allocation38_spill] sm:$0xff] %v5363_v2 }
 0x24f   : > { %2129 = vmax.xlane.f32.xlu1 %v5338_v63  ;;  %2123 = vmax.xlane.f32.xlu0 %v5341_v48  ;;  %v5357_v48 = vadd.f32 %v3763_v47, %v5027_v13  ;;  %4103 = vpow2.f32 %v2377_v20  ;;  %v2373_v46 = vmul.f32 1.442695, %v2240_v19  ;;  %v5370_v47 = vadd.f32 %v5027_v13, %v1775_v37 }
 0x250   : > { %v2002_v32 = vpop.xlane.xlu1 %2001  ;;  %v3766_v17 = vpop.f32.mrf.mxu1  ;;  %4105 = vpow2.f32 %v2371_v29  ;;  %v2245_v37 = vsub.f32 %v5047_v42, %v2000_v10 }
 0x251   : > { %v1996_v26 = vpop.xlane.xlu0 %1995  ;;  %6988 = vst [vmem:[#allocation37_spill] sm:$0xff] %v5357_v48  ;;  %6990 = vst [vmem:[#allocation39_spill] sm:$0xff] %v5370_v47  ;;  %v5375_v58 = vadd.f32 %v3766_v17, %v5027_v13  ;;  %4107 = vpow2.f32 %v2373_v46  ;;  %v2246_v29 = vsub.f32 %v5058_v55, %v2002_v32 }
 0x252   : > { %v1788_v33 = vpop.f32.mrf.mxu1  ;;  %v2243_v42 = vsub.f32 %v5061_v57, %v1996_v26 }
 0x253   : > { %2125 = vmax.xlane.f32.xlu1 %v5347_v52  ;;  %2135 = vmax.xlane.f32.xlu0 %v5351_v25  ;;  %6991 = vst [vmem:[#allocation40_spill] sm:$0xff] %v5375_v58  ;;  %v5388_v20 = vadd.f32 %v5027_v13, %v1788_v33 }
 0x254   : > { %v1998_v18 = vpop.xlane.xlu1 %1997  ;;  %v3767_v51 = vpop.f32.mrf.mxu1 }
 0x255   : > { %v5360_v30 = vpop.xlane.xlu0 %2007  ;;  %v5382_v9 = vadd.f32 %v3767_v51, %v5027_v13  ;;  %6993 = vst [vmem:[#allocation42_spill] sm:$0xff] %v5388_v20  ;;  %v2244_v55 = vsub.f32 %v5070_v1, %v1998_v18 }
 0x256   : > { %v1791_v17 = vpop.f32.mrf.mxu1  ;;  %v5401_v33 = vpop.eup %4101 }
 0x257   : > { %2137 = vmax.xlane.f32.xlu1 %v5357_v48  ;;  %2131 = vmax.xlane.f32.xlu0 %v5363_v2  ;;  %6992 = vst [vmem:[#allocation41_spill] sm:$0xff] %v5382_v9  ;;  %v5396_v46 = vadd.f32 %v5027_v13, %v1791_v17 }
 0x258   : > { %v5367_v41 = vpop.xlane.xlu1 %2009  ;;  %v3770_v10 = vpop.f32.mrf.mxu1 }
 0x259   : > { %v5372_v43 = vpop.xlane.xlu0 %2003  ;;  %6994 = vst [vmem:[#allocation43_spill] sm:$0xff] %v5396_v46  ;;  %v5423_v18 = vadd.f32 %v3770_v10, %v5027_v13 }
 0x25b   : > { %2133 = vmax.xlane.f32.xlu1 %v5370_v47  ;;  %2143 = vmax.xlane.f32.xlu0 %v5375_v58  ;;  %v2383_v58 = vmul.f32 1.442695, %v2245_v37  ;;  %v2379_v37 = vmul.f32 1.442695, %v2243_v42  ;;  %v1804_v47 = vpop.f32.mrf.mxu1  ;;  %6995 = vst [vmem:[#allocation44_spill] sm:$0xff] %v5423_v18 }
 0x25c   : > { %v5379_v56 = vpop.xlane.xlu1 %2005  ;;  %v5410_v17 = vpop.eup %4103 }
 0x25d   : > { %v5384_v6 = vpop.xlane.xlu0 %2015  ;;  %4109 = vpow2.f32 %v2383_v58  ;;  %v5412_v57 = vpop.eup %4105 }
 0x25e   : > { %v5420_v1 = vpop.eup %4107  ;;  %v3771_v58 = vpop.f32.mrf.mxu1 }
 0x25f   : > { %2145 = vmax.xlane.f32.xlu1 %v5382_v9  ;;  %2139 = vmax.xlane.f32.xlu0 %v5388_v20  ;;  %v2385_v9 = vmul.f32 1.442695, %v2246_v29  ;;  %v5430_v2 = vadd.f32 %v3771_v58, %v5027_v13 }
 0x260   : > { %v5392_v19 = vpop.xlane.xlu1 %2017  ;;  %v1807_v10 = vpop.f32.mrf.mxu1 }
 0x261   : > { %v5398_v51 = vpop.xlane.xlu0 %2011  ;;  %4111 = vpow2.f32 %v2385_v9  ;;  %6996 = vst [vmem:[#allocation45_spill] sm:$0xff] %v5430_v2  ;;  %v5446_v58 = vadd.f32 %v5027_v13, %v1807_v10 }
 0x262   : > { %4113 = vpow2.f32 %v2379_v37  ;;  %v5437_v37 = vadd.f32 %v5027_v13, %v1804_v47 }
 0x263   : > { %2141 = vmax.xlane.f32.xlu1 %v5396_v46  ;;  %2631 = vadd.xlane.f32.xlu0 %v5401_v33  ;;  %v2381_v46 = vmul.f32 1.442695, %v2244_v55  ;;  %v2249_v55 = vsub.f32 %v5067_v0, %v5360_v30  ;;  %6998 = vst [vmem:[#allocation47_spill] sm:$0xff] %v5446_v58  ;;  %v2247_v0 = vsub.f32 %v5081_v14, %v5372_v43  ;;  %v3774_v30 = vpop.f32.mrf.mxu1 }
 0x264   : > { %v5405_v20 = vpop.xlane.xlu1 %1983  ;;  %6997 = vst [vmem:[#allocation46_spill] sm:$0xff] %v5437_v37 }
 0x265   : > { %v5408_v32 = vpop.xlane.xlu0 %1979  ;;  %4115 = vpow2.f32 %v2381_v46  ;;  %v2250_v46 = vsub.f32 %v5078_v11, %v5367_v41  ;;  %v2391_v25 = vmul.f32 1.442695, %v2249_v55  ;;  %v2248_v11 = vsub.f32 %v5090_v23, %v5379_v56  ;;  %v1820_v14 = vpop.f32.mrf.mxu1 }
 0x266   : > { %v2387_v55 = vmul.f32 1.442695, %v2247_v0  ;;  %v5475_v56 = vadd.f32 %v3774_v30, %v5027_v13 }
 0x267   : > { %2633 = vadd.xlane.f32.xlu1 %v5410_v17  ;;  %2627 = vadd.xlane.f32.xlu0 %v5412_v57  ;;  %4117 = vpow2.f32 %v2391_v25  ;;  %v3775_v25 = vpop.f32.mrf.mxu1 }
 0x268   : > { %v5416_v26 = vpop.xlane.xlu1 %2013  ;;  %7001 = vst [vmem:[#allocation50_spill] sm:$0xff] %v5475_v56  ;;  %v5482_v63 = vadd.f32 %v3775_v25, %v5027_v13 }
 0x269   : > { %v5418_v29 = vpop.xlane.xlu0 %2023  ;;  %v1823_v30 = vpop.f32.mrf.mxu1 }
 0x26a   : > { %v5452_v47 = vpop.eup %4109  ;;  %7002 = vst [vmem:[#allocation51_spill] sm:$0xff] %v5482_v63  ;;  %v5498_v25 = vadd.f32 %v5027_v13, %v1823_v30 }
 0x26b   : > { %2629 = vadd.xlane.f32.xlu1 %v5420_v1  ;;  %2151 = vmax.xlane.f32.xlu0 %v5423_v18 }
 0x26c   : > { %v5427_v42 = vpop.xlane.xlu1 %1985  ;;  %7004 = vst [vmem:[#allocation53_spill] sm:$0xff] %v5498_v25 }
 0x26d   : > { %v5432_v9 = vpop.xlane.xlu0 %2019 }
 0x26e   : > { %v5462_v10 = vpop.eup %4111 }
 0x26f   : > { %2153 = vmax.xlane.f32.xlu1 %v5430_v2  ;;  %2147 = vmax.xlane.f32.xlu0 %v5437_v37  ;;  %v2393_v2 = vmul.f32 1.442695, %v2250_v46  ;;  %v5464_v43 = vpop.eup %4113  ;;  %v2389_v46 = vmul.f32 1.442695, %v2248_v11  ;;  %v2253_v11 = vsub.f32 %v5087_v22, %v5384_v6  ;;  %v2251_v22 = vsub.f32 %v5101_v45, %v5398_v51  ;;  %v3778_v6 = vpop.f32.mrf.mxu1 }
 0x270   : > { %v5441_v18 = vpop.xlane.xlu1 %2025  ;;  %6999 = vst [vmem:[#allocation48_spill] sm:$0xff] %v5464_v43 }
 0x271   : > { %v5448_v48 = vpop.xlane.xlu0 %1981  ;;  %4119 = vpow2.f32 %v2393_v2  ;;  %v1836_v45 = vpop.f32.mrf.mxu1 }
 0x272   : > { %v5472_v23 = vpop.eup %4115  ;;  %4121 = vpow2.f32 %v2387_v55  ;;  %v5489_v55 = vadd.f32 %v5027_v13, %v1820_v14 }
 0x273   : > { %2149 = vmax.xlane.f32.xlu1 %v5446_v58  ;;  %2639 = vadd.xlane.f32.xlu0 %v5452_v47  ;;  %7000 = vst [vmem:[#allocation49_spill] sm:$0xff] %v5472_v23  ;;  %4123 = vpow2.f32 %v2389_v46  ;;  %v2254_v46 = vsub.f32 %v5098_v39, %v5392_v19  ;;  %v2252_v39 = vsub.f32 %v5114_v59, %v5416_v26 }
 0x274   : > { %v5456_v37 = vpop.xlane.xlu1 %2021  ;;  %7003 = vst [vmem:[#allocation52_spill] sm:$0xff] %v5489_v55  ;;  %v5504_v14 = vpop.eup %4117  ;;  %v5527_v26 = vadd.f32 %v3778_v6, %v5027_v13 }
 0x275   : > { %v5460_v41 = vpop.xlane.xlu0 %2031  ;;  %7005 = vst [vmem:[#allocation54_spill] sm:$0xff] %v5504_v14 }
 0x276   : > { %7009 = vst [vmem:[#allocation58_spill] sm:$0xff] %v5527_v26 }
 0x277   : > { %2641 = vadd.xlane.f32.xlu1 %v5462_v10  ;;  %2635 = vadd.xlane.f32.xlu0 %v5464_v43  ;;  %v2399_v43 = vmul.f32 1.442695, %v2253_v11  ;;  %v2395_v11 = vmul.f32 1.442695, %v2251_v22 }
 0x278   : > { %v5468_v58 = vpop.xlane.xlu1 %2033 }
 0x279   : > { %v5470_v52 = vpop.xlane.xlu0 %2027  ;;  %4125 = vpow2.f32 %v2399_v43  ;;  %v3779_v43 = vpop.f32.mrf.mxu1 }
 0x27b   : > { %2637 = vadd.xlane.f32.xlu1 %v5472_v23  ;;  %2159 = vmax.xlane.f32.xlu0 %v5475_v56  ;;  %v1839_v6 = vpop.f32.mrf.mxu1 }
 0x27c   : > { %v5479_v0 = vpop.xlane.xlu1 %2029 }
 0x27d   : > { %v5484_v2 = vpop.xlane.xlu0 %2039 }
 0x27e   : > { %v5514_v30 = vpop.eup %4119 }
 0x27f   : > { %2161 = vmax.xlane.f32.xlu1 %v5482_v63  ;;  %2155 = vmax.xlane.f32.xlu0 %v5489_v55  ;;  %v2401_v63 = vmul.f32 1.442695, %v2254_v46  ;;  %7006 = vst [vmem:[#allocation55_spill] sm:$0xff] %v5514_v30  ;;  %v5516_v51 = vpop.eup %4121  ;;  %v2397_v46 = vmul.f32 1.442695, %v2252_v39  ;;  %v2237_v39 = vsub.f32 %v5106_v44, %v5405_v20  ;;  %v2235_v44 = vsub.f32 %v5109_v50, %v5408_v32  ;;  %v3782_v20 = vpop.f32.mrf.mxu1 }
 0x280   : > { %v5493_v56 = vpop.xlane.xlu1 %2041  ;;  %7007 = vst [vmem:[#allocation56_spill] sm:$0xff] %v5516_v51  ;;  %v5524_v59 = vpop.eup %4123  ;;  %v2257_v50 = vsub.f32 %v5117_v61, %v5418_v29  ;;  %v2255_v29 = vsub.f32 %v5125_v5, %v5432_v9  ;;  %v2256_v5 = vsub.f32 %v5138_v21, %v5456_v37 }
 0x281   : > { %v5500_v23 = vpop.xlane.xlu0 %2035  ;;  %4127 = vpow2.f32 %v2401_v63  ;;  %7008 = vst [vmem:[#allocation57_spill] sm:$0xff] %v5524_v59  ;;  %v1852_v32 = vpop.f32.mrf.mxu1 }
 0x282   : > { %4129 = vpow2.f32 %v2395_v11  ;;  %v5541_v11 = vadd.f32 %v5027_v13, %v1836_v45  ;;  %v2407_v61 = vmul.f32 1.442695, %v2257_v50 }
 0x283   : > { %2157 = vmax.xlane.f32.xlu1 %v5498_v25  ;;  %2647 = vadd.xlane.f32.xlu0 %v5504_v14  ;;  %4131 = vpow2.f32 %v2397_v46  ;;  %v2238_v46 = vsub.f32 %v5122_v3, %v5427_v42 }
 0x284   : > { %v5508_v55 = vpop.xlane.xlu1 %2037  ;;  %7011 = vst [vmem:[#allocation60_spill] sm:$0xff] %v5541_v11 }
 0x285   : > { %v5512_v19 = vpop.xlane.xlu0 %2047 }
 0x286   : > { %v5556_v45 = vpop.eup %4125 }
 0x287   : > { %2649 = vadd.xlane.f32.xlu1 %v5514_v30  ;;  %2643 = vadd.xlane.f32.xlu0 %v5516_v51  ;;  %v5534_v51 = vadd.f32 %v3779_v43, %v5027_v13  ;;  %v5550_v43 = vadd.f32 %v5027_v13, %v1839_v6  ;;  %v2367_v30 = vmul.f32 1.442695, %v2237_v39  ;;  %v2236_v13 = vsub.f32 %v5133_v16, %v5448_v48 }
 0x288   : > { %v5520_v25 = vpop.xlane.xlu1 %2049  ;;  %v2363_v39 = vmul.f32 1.442695, %v2235_v44  ;;  %v2258_v16 = vsub.f32 %v5130_v12, %v5441_v18  ;;  %v5587_v44 = vld [vmem:[%s6808_s4] ss:$0 sm:$0xff] }
 0x289   : > { %v5522_v14 = vpop.xlane.xlu0 %2043  ;;  %7010 = vst [vmem:[#allocation59_spill] sm:$0xff] %v5534_v51  ;;  %7012 = vst [vmem:[#allocation61_spill] sm:$0xff] %v5550_v43  ;;  %4133 = vpow2.f32 %v2367_v30  ;;  %v2365_v48 = vmul.f32 1.442695, %v2236_v13 }
 0x28a   : > { %v2409_v18 = vmul.f32 1.442695, %v2258_v16 }
 0x28b   : > { %2645 = vadd.xlane.f32.xlu1 %v5524_v59  ;;  %2167 = vmax.xlane.f32.xlu0 %v5527_v26 }
 0x28c   : > { %v5531_v22 = vpop.xlane.xlu1 %2045 }
 0x28d   : > { %v5536_v63 = vpop.xlane.xlu0 %2055 }
 0x28e   : > { %v5566_v42 = vpop.eup %4127 }
 0x28f   : > { %2169 = vmax.xlane.f32.xlu1 %v5534_v51  ;;  %2163 = vmax.xlane.f32.xlu0 %v5541_v11  ;;  %v2369_v51 = vmul.f32 1.442695, %v2238_v46  ;;  %v5570_v6 = vpop.eup %4129 }
 0x290   : > { %v5545_v26 = vpop.xlane.xlu1 %2057  ;;  %7013 = vst [vmem:[#allocation62_spill] sm:$0xff] %v5570_v6  ;;  %v5580_v30 = vpop.eup %4131 }
 0x291   : > { %v5552_v59 = vpop.xlane.xlu0 %2051  ;;  %4135 = vpow2.f32 %v2369_v51  ;;  %v5590_v51 = vadd.f32 %v5587_v44, %v3782_v20  ;;  %v2403_v20 = vmul.f32 1.442695, %v2255_v29 }
 0x292   : > { %4137 = vpow2.f32 %v2363_v39  ;;  %v5604_v39 = vadd.f32 %v5587_v44, %v1852_v32 }
 0x293   : > { %2165 = vmax.xlane.f32.xlu1 %v5550_v43  ;;  %2655 = vadd.xlane.f32.xlu0 %v5556_v45  ;;  %7014 = vst [vmem:[#allocation63_spill] sm:$0xff] %v5590_v51  ;;  %4139 = vpow2.f32 %v2365_v48 }
 0x294   : > { %v5560_v11 = vpop.xlane.xlu1 %2053  ;;  %4141 = vpow2.f32 %v2407_v61  ;;  %7016 = vst [vmem:[#allocation65_spill] sm:$0xff] %v5604_v39 }
 0x295   : > { %v5564_v3 = vpop.xlane.xlu0 %2063  ;;  %4143 = vpow2.f32 %v2409_v18  ;;  %v2261_v18 = vsub.f32 %v5141_v24, %v5460_v41  ;;  %v2259_v24 = vsub.f32 %v5149_v28, %v5470_v52 }
 0x296   : > { %4145 = vpow2.f32 %v2403_v20  ;;  %v5615_v37 = vpop.eup %4133 }
 0x297   : > { %2657 = vadd.xlane.f32.xlu1 %v5566_v42  ;;  %2651 = vadd.xlane.f32.xlu0 %v5570_v6  ;;  %v3783_v6 = vpop.f32.mrf.mxu1  ;;  %7018 = vst [vmem:[#allocation67_spill] sm:$0xff] %v5615_v37 }
 0x298   : > { %v5574_v46 = vpop.xlane.xlu1 %2065  ;;  %v5597_v13 = vadd.f32 %v5587_v44, %v3783_v6  ;;  %v2405_v6 = vmul.f32 1.442695, %v2256_v5 }
 0x299   : > { %v5578_v43 = vpop.xlane.xlu0 %2059  ;;  %v1855_v50 = vpop.f32.mrf.mxu1 }
 0x29a   : > { %7015 = vst [vmem:[#allocation64_spill] sm:$0xff] %v5597_v13  ;;  %v5611_v48 = vadd.f32 %v5587_v44, %v1855_v50  ;;  %4147 = vpow2.f32 %v2405_v6  ;;  %v2262_v50 = vsub.f32 %v5146_v27, %v5468_v58  ;;  %v2260_v27 = vsub.f32 %v5154_v34, %v5479_v0 }
 0x29b   : > { %2653 = vadd.xlane.f32.xlu1 %v5580_v30  ;;  %2175 = vmax.xlane.f32.xlu0 %v5590_v51 }
 0x29c   : > { %v5594_v12 = vpop.xlane.xlu1 %2061  ;;  %7017 = vst [vmem:[#allocation66_spill] sm:$0xff] %v5611_v48 }
 0x29d   : > { %v5601_v9 = vpop.xlane.xlu0 %2071 }
 0x29e   : > { %v5623_v29 = vpop.eup %4135 }
 0x29f   : > { %2177 = vmax.xlane.f32.xlu1 %v5597_v13  ;;  %2171 = vmax.xlane.f32.xlu0 %v5604_v39  ;;  %7019 = vst [vmem:[#allocation68_spill] sm:$0xff] %v5623_v29  ;;  %v5627_v5 = vpop.eup %4137  ;;  %v2415_v39 = vmul.f32 1.442695, %v2261_v18  ;;  %v3786_v13 = vpop.f32.mrf.mxu1  ;;  %v2411_v18 = vmul.f32 1.442695, %v2259_v24 }
 0x2a0   : > { %v5608_v16 = vpop.xlane.xlu1 %2073  ;;  %7020 = vst [vmem:[#allocation69_spill] sm:$0xff] %v5627_v5  ;;  %v5637_v6 = vpop.eup %4139  ;;  %v5664_v0 = vadd.f32 %v5587_v44, %v3786_v13  ;;  %v2265_v13 = vsub.f32 %v5157_v36, %v5484_v2  ;;  %v2263_v36 = vsub.f32 %v5165_v38, %v5500_v23 }
 0x2a1   : > { %v5613_v21 = vpop.xlane.xlu0 %2067  ;;  %7021 = vst [vmem:[#allocation70_spill] sm:$0xff] %v5637_v6  ;;  %v5641_v41 = vpop.eup %4141  ;;  %4149 = vpow2.f32 %v2415_v39 }
 0x2a2   : > { %7022 = vst [vmem:[#allocation71_spill] sm:$0xff] %v5641_v41  ;;  %7026 = vst [vmem:[#allocation75_spill] sm:$0xff] %v5664_v0 }
 0x2a3   : > { %2173 = vmax.xlane.f32.xlu1 %v5611_v48  ;;  %2623 = vadd.xlane.f32.xlu0 %v5615_v37  ;;  %v1868_v37 = vpop.f32.mrf.mxu1 }
 0x2a4   : > { %v5619_v32 = vpop.xlane.xlu1 %2069 }
 0x2a5   : > { %v5621_v61 = vpop.xlane.xlu0 %2079  ;;  %v3787_v39 = vpop.f32.mrf.mxu1 }
 0x2a7   : > { %2625 = vadd.xlane.f32.xlu1 %v5623_v29  ;;  %2619 = vadd.xlane.f32.xlu0 %v5627_v5  ;;  %v2417_v5 = vmul.f32 1.442695, %v2262_v50  ;;  %v5651_v29 = vpop.eup %4143  ;;  %v2413_v50 = vmul.f32 1.442695, %v2260_v27  ;;  %v5676_v27 = vadd.f32 %v5587_v44, %v1868_v37  ;;  %v2423_v37 = vmul.f32 1.442695, %v2265_v13 }
 0x2a8   : > { %v5631_v20 = vpop.xlane.xlu1 %2081  ;;  %7023 = vst [vmem:[#allocation72_spill] sm:$0xff] %v5651_v29  ;;  %v5653_v28 = vpop.eup %4145  ;;  %v2419_v13 = vmul.f32 1.442695, %v2263_v36 }
 0x2a9   : > { %v5635_v48 = vpop.xlane.xlu0 %2075  ;;  %7024 = vst [vmem:[#allocation73_spill] sm:$0xff] %v5653_v28  ;;  %4151 = vpow2.f32 %v2417_v5  ;;  %v5661_v34 = vpop.eup %4147  ;;  %7028 = vst [vmem:[#allocation77_spill] sm:$0xff] %v5676_v27 }
 0x2aa   : > { %7025 = vst [vmem:[#allocation74_spill] sm:$0xff] %v5661_v34  ;;  %4153 = vpow2.f32 %v2411_v18  ;;  %v1871_v18 = vpop.f32.mrf.mxu1 }
 0x2ab   : > { %2621 = vadd.xlane.f32.xlu1 %v5637_v6  ;;  %2663 = vadd.xlane.f32.xlu0 %v5641_v41  ;;  %4155 = vpow2.f32 %v2413_v50  ;;  %v2266_v50 = vsub.f32 %v5162_v40, %v5493_v56 }
 0x2ac   : > { %v5645_v51 = vpop.xlane.xlu1 %2077  ;;  %4157 = vpow2.f32 %v2423_v37 }
 0x2ad   : > { %v5649_v58 = vpop.xlane.xlu0 %2087 }
 0x2ae   : > { %v5693_v2 = vpop.eup %4149 }
 0x2af   : > { %2665 = vadd.xlane.f32.xlu1 %v5651_v29  ;;  %2659 = vadd.xlane.f32.xlu0 %v5653_v28  ;;  %v5671_v28 = vadd.f32 %v5587_v44, %v3787_v39  ;;  %v3790_v29 = vpop.f32.mrf.mxu1  ;;  %7030 = vst [vmem:[#allocation79_spill] sm:$0xff] %v5693_v2 }
 0x2b0   : > { %v5657_v52 = vpop.xlane.xlu1 %2089 }
 0x2b1   : > { %v5659_v41 = vpop.xlane.xlu0 %2083  ;;  %7027 = vst [vmem:[#allocation76_spill] sm:$0xff] %v5671_v28  ;;  %v1884_v6 = vpop.f32.mrf.mxu1 }
 0x2b3   : > { %2661 = vadd.xlane.f32.xlu1 %v5661_v34  ;;  %2183 = vmax.xlane.f32.xlu0 %v5664_v0  ;;  %v5685_v34 = vadd.f32 %v5587_v44, %v1871_v18  ;;  %v2425_v18 = vmul.f32 1.442695, %v2266_v50  ;;  %v3791_v37 = vpop.f32.mrf.mxu1 }
 0x2b4   : > { %v5668_v24 = vpop.xlane.xlu1 %2085 }
 0x2b5   : > { %v5673_v5 = vpop.xlane.xlu0 %2095  ;;  %7029 = vst [vmem:[#allocation78_spill] sm:$0xff] %v5685_v34  ;;  %4159 = vpow2.f32 %v2425_v18  ;;  %v5728_v18 = vadd.f32 %v5587_v44, %v1884_v6 }
 0x2b6   : > { %v5703_v56 = vpop.eup %4151  ;;  %4161 = vpow2.f32 %v2419_v13  ;;  %v1887_v13 = vpop.f32.mrf.mxu1 }
 0x2b7   : > { %2185 = vmax.xlane.f32.xlu1 %v5671_v28  ;;  %2179 = vmax.xlane.f32.xlu0 %v5676_v27  ;;  %v2264_v28 = vsub.f32 %v5170_v49, %v5508_v55  ;;  %7031 = vst [vmem:[#allocation80_spill] sm:$0xff] %v5703_v56  ;;  %v5705_v38 = vpop.eup %4153  ;;  %v5716_v55 = vadd.f32 %v5587_v44, %v3790_v29  ;;  %7036 = vst [vmem:[#allocation85_spill] sm:$0xff] %v5728_v18 }
 0x2b8   : > { %v5682_v0 = vpop.xlane.xlu1 %2097  ;;  %7032 = vst [vmem:[#allocation81_spill] sm:$0xff] %v5705_v38  ;;  %v5713_v49 = vpop.eup %4155  ;;  %v2269_v29 = vsub.f32 %v5173_v31, %v5512_v19  ;;  %v2267_v31 = vsub.f32 %v5181_v54, %v5522_v14 }
 0x2b9   : > { %v5689_v39 = vpop.xlane.xlu0 %2091  ;;  %v2421_v50 = vmul.f32 1.442695, %v2264_v28  ;;  %7033 = vst [vmem:[#allocation82_spill] sm:$0xff] %v5713_v49  ;;  %7034 = vst [vmem:[#allocation83_spill] sm:$0xff] %v5716_v55  ;;  %v5745_v19 = vpop.eup %4157 }
 0x2ba   : > { %v2431_v6 = vmul.f32 1.442695, %v2269_v29  ;;  %7038 = vst [vmem:[#allocation87_spill] sm:$0xff] %v5745_v19  ;;  %v2427_v29 = vmul.f32 1.442695, %v2267_v31 }
 0x2bb   : > { %2181 = vmax.xlane.f32.xlu1 %v5685_v34  ;;  %2671 = vadd.xlane.f32.xlu0 %v5693_v2  ;;  %4163 = vpow2.f32 %v2421_v50  ;;  %v2270_v50 = vsub.f32 %v5178_v53, %v5520_v25 }
 0x2bc   : > { %v5697_v27 = vpop.xlane.xlu1 %2093  ;;  %4165 = vpow2.f32 %v2431_v6 }
 0x2bd   : > { %v5701_v40 = vpop.xlane.xlu0 %2103 }
 0x2bf   : > { %2673 = vadd.xlane.f32.xlu1 %v5703_v56  ;;  %2667 = vadd.xlane.f32.xlu0 %v5705_v38  ;;  %v5723_v38 = vadd.f32 %v5587_v44, %v3791_v37  ;;  %v3794_v56 = vpop.f32.mrf.mxu1 }
 0x2c0   : > { %v5709_v23 = vpop.xlane.xlu1 %2105 }
 0x2c1   : > { %v5711_v34 = vpop.xlane.xlu0 %2099  ;;  %7035 = vst [vmem:[#allocation84_spill] sm:$0xff] %v5723_v38  ;;  %v1900_v2 = vpop.f32.mrf.mxu1 }
 0x2c2   : > { %v5755_v25 = vpop.eup %4159 }
 0x2c3   : > { %2669 = vadd.xlane.f32.xlu1 %v5713_v49  ;;  %2191 = vmax.xlane.f32.xlu0 %v5716_v55  ;;  %v5737_v49 = vadd.f32 %v5587_v44, %v1887_v13  ;;  %v2433_v13 = vmul.f32 1.442695, %v2270_v50  ;;  %7039 = vst [vmem:[#allocation88_spill] sm:$0xff] %v5755_v25  ;;  %v5757_v54 = vpop.eup %4161  ;;  %v3795_v6 = vpop.f32.mrf.mxu1 }
 0x2c4   : > { %v5720_v36 = vpop.xlane.xlu1 %2101  ;;  %7040 = vst [vmem:[#allocation89_spill] sm:$0xff] %v5757_v54 }
 0x2c5   : > { %v5725_v28 = vpop.xlane.xlu0 %2111  ;;  %7037 = vst [vmem:[#allocation86_spill] sm:$0xff] %v5737_v49  ;;  %4167 = vpow2.f32 %v2433_v13  ;;  %v5780_v13 = vadd.f32 %v5587_v44, %v1900_v2 }
 0x2c6   : > { %4169 = vpow2.f32 %v2427_v29  ;;  %v1903_v29 = vpop.f32.mrf.mxu1 }
 0x2c7   : > { %2193 = vmax.xlane.f32.xlu1 %v5723_v38  ;;  %2187 = vmax.xlane.f32.xlu0 %v5728_v18  ;;  %v2268_v38 = vsub.f32 %v5186_v60, %v5531_v22  ;;  %v5768_v22 = vadd.f32 %v5587_v44, %v3794_v56  ;;  %7044 = vst [vmem:[#allocation93_spill] sm:$0xff] %v5780_v13 }
 0x2c8   : > { %v5734_v55 = vpop.xlane.xlu1 %2113  ;;  %v5765_v60 = vpop.eup %4163  ;;  %v2273_v56 = vsub.f32 %v5189_v62, %v5536_v63  ;;  %v2271_v62 = vsub.f32 %v5197_v4, %v5552_v59 }
 0x2c9   : > { %v5741_v37 = vpop.xlane.xlu0 %2107  ;;  %v2429_v50 = vmul.f32 1.442695, %v2268_v38  ;;  %7041 = vst [vmem:[#allocation90_spill] sm:$0xff] %v5765_v60  ;;  %7042 = vst [vmem:[#allocation91_spill] sm:$0xff] %v5768_v22  ;;  %v5797_v63 = vpop.eup %4165 }
 0x2ca   : > { %v2439_v2 = vmul.f32 1.442695, %v2273_v56  ;;  %7046 = vst [vmem:[#allocation95_spill] sm:$0xff] %v5797_v63  ;;  %v2435_v56 = vmul.f32 1.442695, %v2271_v62 }
 0x2cb   : > { %2189 = vmax.xlane.f32.xlu1 %v5737_v49  ;;  %2679 = vadd.xlane.f32.xlu0 %v5745_v19  ;;  %4171 = vpow2.f32 %v2429_v50  ;;  %v2274_v50 = vsub.f32 %v5194_v35, %v5545_v26 }
 0x2cc   : > { %v5749_v18 = vpop.xlane.xlu1 %2109  ;;  %4173 = vpow2.f32 %v2439_v2 }
 0x2cd   : > { %v5753_v53 = vpop.xlane.xlu0 %2119 }
 0x2cf   : > { %2681 = vadd.xlane.f32.xlu1 %v5755_v25  ;;  %2675 = vadd.xlane.f32.xlu0 %v5757_v54  ;;  %v5775_v54 = vadd.f32 %v5587_v44, %v3795_v6  ;;  %v3798_v25 = vpop.f32.mrf.mxu1 }
 0x2d0   : > { %v5761_v14 = vpop.xlane.xlu1 %2121 }
 0x2d1   : > { %v5763_v49 = vpop.xlane.xlu0 %2115  ;;  %7043 = vst [vmem:[#allocation92_spill] sm:$0xff] %v5775_v54  ;;  %v1916_v19 = vpop.f32.mrf.mxu1 }
 0x2d2   : > { %v5807_v26 = vpop.eup %4167 }
 0x2d3   : > { %2677 = vadd.xlane.f32.xlu1 %v5765_v60  ;;  %2199 = vmax.xlane.f32.xlu0 %v5768_v22  ;;  %v5789_v60 = vadd.f32 %v5587_v44, %v1903_v29  ;;  %v2441_v29 = vmul.f32 1.442695, %v2274_v50  ;;  %7047 = vst [vmem:[#allocation96_spill] sm:$0xff] %v5807_v26  ;;  %v5809_v4 = vpop.eup %4169  ;;  %v3799_v2 = vpop.f32.mrf.mxu1 }
 0x2d4   : > { %v5772_v31 = vpop.xlane.xlu1 %2117  ;;  %7048 = vst [vmem:[#allocation97_spill] sm:$0xff] %v5809_v4 }
 0x2d5   : > { %v5777_v38 = vpop.xlane.xlu0 %2127  ;;  %7045 = vst [vmem:[#allocation94_spill] sm:$0xff] %v5789_v60  ;;  %4175 = vpow2.f32 %v2441_v29  ;;  %v5832_v29 = vadd.f32 %v5587_v44, %v1916_v19 }
 0x2d6   : > { %4177 = vpow2.f32 %v2435_v56  ;;  %v1919_v56 = vpop.f32.mrf.mxu1 }
 0x2d7   : > { %2201 = vmax.xlane.f32.xlu1 %v5775_v54  ;;  %2195 = vmax.xlane.f32.xlu0 %v5780_v13  ;;  %v2272_v54 = vsub.f32 %v5202_v7, %v5560_v11  ;;  %v5820_v11 = vadd.f32 %v5587_v44, %v3798_v25  ;;  %7053 = vst [vmem:[#allocation102_spill] sm:$0xff] %v5832_v29 }
 0x2d8   : > { %v5786_v22 = vpop.xlane.xlu1 %2129  ;;  %v5817_v7 = vpop.eup %4171  ;;  %v2277_v25 = vsub.f32 %v5205_v8, %v5564_v3 }
 0x2d9   : > { %v5793_v6 = vpop.xlane.xlu0 %2123  ;;  %v2437_v50 = vmul.f32 1.442695, %v2272_v54  ;;  %7049 = vst [vmem:[#allocation98_spill] sm:$0xff] %v5817_v7  ;;  %7050 = vst [vmem:[#allocation99_spill] sm:$0xff] %v5820_v11  ;;  %v3802_v8 = vpop.f32.mrf.mxu1 }
 0x2da   : > { %v5849_v3 = vpop.eup %4173 }
 0x2db   : > { %2197 = vmax.xlane.f32.xlu1 %v5789_v60  ;;  %2687 = vadd.xlane.f32.xlu0 %v5797_v63  ;;  %4179 = vpow2.f32 %v2437_v50  ;;  %v5843_v50 = vadd.f32 %v5587_v44, %v1919_v56  ;;  %v2447_v63 = vmul.f32 1.442695, %v2277_v25 }
 0x2dc   : > { %v5801_v13 = vpop.xlane.xlu1 %2125 }
 0x2dd   : > { %v5805_v35 = vpop.xlane.xlu0 %2135  ;;  %7055 = vst [vmem:[#allocation104_spill] sm:$0xff] %v5843_v50  ;;  %4181 = vpow2.f32 %v2447_v63 }
 0x2df   : > { %2689 = vadd.xlane.f32.xlu1 %v5807_v26  ;;  %2683 = vadd.xlane.f32.xlu0 %v5809_v4  ;;  %v5827_v4 = vadd.f32 %v5587_v44, %v3799_v2  ;;  %v7056_v2 = vld [vmem:[#allocation2_spill] sm:$0xff] }
 0x2e0   : > { %v5813_v59 = vpop.xlane.xlu1 %2137  ;;  %v2275_v19 = vsub.f32 %v7056_v2, %v5578_v43  ;;  %7057 = vst [vmem:[#allocation2_spill] sm:$0xff] %v5849_v3  ;;  %v1932_v43 = vpop.f32.mrf.mxu1 }
 0x2e1   : > { %v5815_v60 = vpop.xlane.xlu0 %2131  ;;  %7051 = vst [vmem:[#allocation100_spill] sm:$0xff] %v5827_v4 }
 0x2e2   : > { %v2443_v56 = vmul.f32 1.442695, %v2275_v19  ;;  %v5866_v19 = vadd.f32 %v5587_v44, %v3802_v8  ;;  %v7065_v8 = vld [vmem:[#allocation4_spill] sm:$0xff] }
 0x2e3   : > { %2685 = vadd.xlane.f32.xlu1 %v5817_v7  ;;  %2207 = vmax.xlane.f32.xlu0 %v5820_v11  ;;  %v2278_v11 = vsub.f32 %v5210_v15, %v5574_v46  ;;  %v7058_v15 = vld [vmem:[#allocation3_spill] sm:$0xff] }
 0x2e4   : > { %v5824_v62 = vpop.xlane.xlu1 %2133  ;;  %v2276_v46 = vsub.f32 %v7058_v15, %v5594_v12  ;;  %7062 = vst [vmem:[#allocation107_spill] sm:$0xff] %v5866_v19 }
 0x2e5   : > { %v5829_v54 = vpop.xlane.xlu0 %2143 }
 0x2e6   : > { %7052 = vst [vmem:[#allocation101_spill] sm:$0xff] %v5829_v54  ;;  %v5857_v54 = vpop.eup %4175 }
 0x2e7   : > { %2209 = vmax.xlane.f32.xlu1 %v5827_v4  ;;  %2203 = vmax.xlane.f32.xlu0 %v5832_v29  ;;  %v2449_v4 = vmul.f32 1.442695, %v2278_v11  ;;  %7059 = vst [vmem:[#allocation3_spill] sm:$0xff] %v5857_v54  ;;  %v5859_v25 = vpop.eup %4177  ;;  %v2445_v11 = vmul.f32 1.442695, %v2276_v46  ;;  %v5876_v46 = vadd.f32 %v5587_v44, %v1932_v43 }
 0x2e8   : > { %v5840_v7 = vpop.xlane.xlu1 %2145  ;;  %7060 = vst [vmem:[#allocation105_spill] sm:$0xff] %v5859_v25  ;;  %v5863_v15 = vpop.eup %4179 }
 0x2e9   : > { %7054 = vst [vmem:[#allocation103_spill] sm:$0xff] %v5840_v7  ;;  %v5847_v26 = vpop.xlane.xlu0 %2139  ;;  %7061 = vst [vmem:[#allocation106_spill] sm:$0xff] %v5863_v15 }
 0x2ea   : > { %7064 = vst [vmem:[#allocation109_spill] sm:$0xff] %v5876_v46 }
 0x2eb   : > { %2205 = vmax.xlane.f32.xlu1 %v5843_v50  ;;  %2695 = vadd.xlane.f32.xlu0 %v5849_v3  ;;  %v3803_v50 = vpop.f32.mrf.mxu1 }
 0x2ec   : > { %v5855_v29 = vpop.xlane.xlu1 %2141 }
 0x2ed   : > { %v2632_v7 = vpop.xlane.xlu0 %2631 }
 0x2ee   : > { %4183 = vrcp.f32 %v2632_v7 }
 0x2ef   : > { %2697 = vadd.xlane.f32.xlu1 %v5857_v54  ;;  %4185 = vpow2.f32 %v2449_v4  ;;  %2691 = vadd.xlane.f32.xlu0 %v5859_v25  ;;  %v5871_v4 = vadd.f32 %v5587_v44, %v3803_v50 }
 0x2f0   : > { %v2634_v12 = vpop.xlane.xlu1 %2633  ;;  %4187 = vpow2.f32 %v2443_v56  ;;  %v2281_v56 = vsub.f32 %v7065_v8, %v5601_v9  ;;  %v5893_v8 = vpop.eup %4181 }
 0x2f1   : > { %v2628_v2 = vpop.xlane.xlu0 %2627  ;;  %4189 = vrcp.f32 %v2634_v12  ;;  %7063 = vst [vmem:[#allocation108_spill] sm:$0xff] %v5871_v4  ;;  %v1935_v12 = vpop.f32.mrf.mxu1 }
 0x2f2   : > { %4191 = vrcp.f32 %v2628_v2  ;;  %v2455_v25 = vmul.f32 1.442695, %v2281_v56 }
 0x2f3   : > { %2693 = vadd.xlane.f32.xlu1 %v5863_v15  ;;  %4193 = vpow2.f32 %v2445_v11  ;;  %2215 = vmax.xlane.f32.xlu0 %v5866_v19  ;;  %v7066_v11 = vld [vmem:[#allocation5_spill] sm:$0xff]  ;;  %v7068_v19 = vld [vmem:[#allocation6_spill] sm:$0xff]  ;;  %v3806_v9 = vpop.f32.mrf.mxu1 }
 0x2f4   : > { %v2630_v63 = vpop.xlane.xlu1 %2629  ;;  %v2282_v2 = vsub.f32 %v7066_v11, %v5608_v16  ;;  %v2279_v43 = vsub.f32 %v7068_v19, %v5613_v21 }
 0x2f5   : > { %4195 = vrcp.f32 %v2630_v63  ;;  %v5873_v7 = vpop.xlane.xlu0 %2151  ;;  %v5887_v63 = vadd.f32 %v5587_v44, %v1935_v12  ;;  %v7070_v12 = vld [vmem:[#allocation7_spill] sm:$0xff]  ;;  %v1948_v3 = vpop.f32.mrf.mxu1 }
 0x2f6   : > { %v2457_v16 = vmul.f32 1.442695, %v2282_v2  ;;  %v2280_v21 = vsub.f32 %v7070_v12, %v5619_v32  ;;  %v2451_v11 = vmul.f32 1.442695, %v2279_v43  ;;  %4197 = vpow2.f32 %v2455_v25 }
 0x2f7   : > { %2217 = vmax.xlane.f32.xlu1 %v5871_v4  ;;  %2211 = vmax.xlane.f32.xlu0 %v5876_v46  ;;  %7067 = vst [vmem:[#allocation4_spill] sm:$0xff] %v5887_v63 }
 0x2f8   : > { %v5884_v50 = vpop.xlane.xlu1 %2153  ;;  %v2453_v2 = vmul.f32 1.442695, %v2280_v21 }
 0x2f9   : > { %v5891_v15 = vpop.xlane.xlu0 %2147 }
 0x2fa   : > { %7069 = vst [vmem:[#allocation5_spill] sm:$0xff] %v5891_v15 }
 0x2fb   : > { %2213 = vmax.xlane.f32.xlu1 %v5887_v63  ;;  %v4184_v4 = vpop.eup %4183  ;;  %2703 = vadd.xlane.f32.xlu0 %v5893_v8 }
 0x2fc   : > { %v5906_v19 = vpop.xlane.xlu1 %2149  ;;  %v5908_v56 = vpop.eup %4185  ;;  %v2888_v63 = vmul.f32 %v4184_v4, %v5401_v33 }
 0x2fd   : > { %7071 = vst [vmem:[#allocation6_spill] sm:$0xff] %v5908_v56  ;;  %v2640_v46 = vpop.xlane.xlu0 %2639  ;;  %v5911_v54 = vpop.eup %4187 }
 0x2fe   : > { %v4190_v15 = vpop.eup %4189  ;;  %3138 = vst.msk [vmem:[%s5901_s6 + $0x30] sm:$0xff] %vm3131_vm2, %v2888_v63  ;;  %4199 = vrcp.f32 %v2640_v46  ;;  %v5922_v46 = vadd.f32 %v5587_v44, %v3806_v9 }
 0x2ff   : > { %2705 = vadd.xlane.f32.xlu1 %v5908_v56  ;;  %v4192_v32 = vpop.eup %4191  ;;  %4201 = vpow2.f32 %v2457_v16  ;;  %v2890_v43 = vmul.f32 %v4190_v15, %v5410_v17  ;;  %2699 = vadd.xlane.f32.xlu0 %v5911_v54  ;;  %v3807_v56 = vpop.f32.mrf.mxu1  ;;  %v5939_v16 = vadd.f32 %v5587_v44, %v1948_v3 }
 0x300   : > { %v2642_v33 = vpop.xlane.xlu1 %2641  ;;  %v5918_v4 = vpop.eup %4193  ;;  %4203 = vpow2.f32 %v2451_v11  ;;  %v2884_v25 = vmul.f32 %v4192_v32, %v5412_v57  ;;  %v5932_v15 = vadd.f32 %v5587_v44, %v3807_v56  ;;  %v7076_v32 = vld [vmem:[#allocation9_spill] sm:$0xff] }
 0x301   : > { %7072 = vst [vmem:[#allocation7_spill] sm:$0xff] %v5918_v4  ;;  %v2636_v63 = vpop.xlane.xlu0 %2635  ;;  %3139 = vst.msk [vmem:[%s5901_s6 + $0x38] sm:$0xff] %vm3131_vm2, %v2890_v43  ;;  %4205 = vrcp.f32 %v2642_v33  ;;  %v1951_v11 = vpop.f32.mrf.mxu1  ;;  %v7078_v33 = vld [vmem:[#allocation10_spill] sm:$0xff] }
 0x302   : > { %v4196_v12 = vpop.eup %4195  ;;  %3136 = vst.msk [vmem:[%s5901_s6 + $0x20] sm:$0xff] %vm3131_vm2, %v2884_v25  ;;  %4207 = vrcp.f32 %v2636_v63  ;;  %7073 = vst [vmem:[#allocation110_spill] sm:$0xff] %v5932_v15  ;;  %v5950_v43 = vadd.f32 %v5587_v44, %v1951_v11  ;;  %v2283_v3 = vsub.f32 %v7078_v33, %v5635_v48 }
 0x303   : > { %v2886_v17 = vmul.f32 %v4196_v12, %v5420_v1  ;;  %2701 = vadd.xlane.f32.xlu1 %v5918_v4  ;;  %4209 = vpow2.f32 %v2453_v2  ;;  %2223 = vmax.xlane.f32.xlu0 %v5922_v46  ;;  %7074 = vst [vmem:[#allocation111_spill] sm:$0xff] %v5939_v16  ;;  %v7075_v1 = vld [vmem:[#allocation8_spill] sm:$0xff]  ;;  %v2286_v2 = vsub.f32 %v7076_v32, %v5631_v20  ;;  %v5956_v12 = vpop.eup %4197 }
 0x304   : > { %v2638_v57 = vpop.xlane.xlu1 %2637  ;;  %v2285_v21 = vsub.f32 %v7075_v1, %v5621_v61  ;;  %7077 = vst [vmem:[#allocation8_spill] sm:$0xff] %v5950_v43  ;;  %v3810_v61 = vpop.f32.mrf.mxu1  ;;  %7079 = vst [vmem:[#allocation9_spill] sm:$0xff] %v5956_v12  ;;  %v2459_v48 = vmul.f32 1.442695, %v2283_v3 }
 0x305   : > { %3137 = vst.msk [vmem:[%s5901_s6 + $0x28] sm:$0xff] %vm3131_vm2, %v2886_v17  ;;  %4211 = vrcp.f32 %v2638_v57  ;;  %v5936_v9 = vpop.xlane.xlu0 %2159  ;;  %v2465_v17 = vmul.f32 1.442695, %v2286_v2  ;;  %v7080_v57 = vld [vmem:[#allocation11_spill] sm:$0xff] }
 0x306   : > { %v2463_v63 = vmul.f32 1.442695, %v2285_v21  ;;  %v2284_v1 = vsub.f32 %v7080_v57, %v5645_v51  ;;  %v7084_v57 = vld [vmem:[#allocation48_spill] sm:$0xff] }
 0x307   : > { %2225 = vmax.xlane.f32.xlu1 %v5932_v15  ;;  %2219 = vmax.xlane.f32.xlu0 %v5939_v16  ;;  %v1964_v16 = vpop.f32.mrf.mxu1 }
 0x308   : > { %v5947_v56 = vpop.xlane.xlu1 %2161  ;;  %4213 = vpow2.f32 %v2463_v63  ;;  %v2461_v3 = vmul.f32 1.442695, %v2284_v1 }
 0x309   : > { %v5954_v25 = vpop.xlane.xlu0 %2155 }
 0x30b   : > { %2221 = vmax.xlane.f32.xlu1 %v5950_v43  ;;  %v4200_v20 = vpop.eup %4199  ;;  %2711 = vadd.xlane.f32.xlu0 %v5956_v12  ;;  %v7082_v43 = vld [vmem:[#allocation12_spill] sm:$0xff]  ;;  %v5982_v12 = vadd.f32 %v5587_v44, %v3810_v61 }
 0x30c   : > { %v5962_v11 = vpop.xlane.xlu1 %2157  ;;  %v5964_v32 = vpop.eup %4201  ;;  %v2896_v21 = vmul.f32 %v4200_v20, %v5452_v47  ;;  %v2289_v2 = vsub.f32 %v7082_v43, %v5649_v58  ;;  %v7083_v58 = vld [vmem:[#allocation13_spill] sm:$0xff] }
 0x30d   : > { %7081 = vst [vmem:[#allocation10_spill] sm:$0xff] %v5964_v32  ;;  %v2648_v33 = vpop.xlane.xlu0 %2647  ;;  %v5967_v4 = vpop.eup %4203  ;;  %v2290_v43 = vsub.f32 %v7083_v58, %v5657_v52 }
 0x30e   : > { %v4206_v15 = vpop.eup %4205  ;;  %3142 = vst.msk [vmem:[%s5901_s6 + $0x50] sm:$0xff] %vm3131_vm2, %v2896_v21  ;;  %4215 = vrcp.f32 %v2648_v33  ;;  %v2471_v1 = vmul.f32 1.442695, %v2289_v2 }
 0x30f   : > { %2713 = vadd.xlane.f32.xlu1 %v5964_v32  ;;  %v4208_v51 = vpop.eup %4207  ;;  %4217 = vpow2.f32 %v2465_v17  ;;  %v2898_v47 = vmul.f32 %v4206_v15, %v5462_v10  ;;  %2707 = vadd.xlane.f32.xlu0 %v5967_v4  ;;  %v3811_v17 = vpop.f32.mrf.mxu1  ;;  %v7085_v10 = vld [vmem:[#allocation14_spill] sm:$0xff]  ;;  %v2473_v2 = vmul.f32 1.442695, %v2290_v43  ;;  %v7089_v43 = vld [vmem:[#allocation17_spill] sm:$0xff] }
 0x310   : > { %v2650_v63 = vpop.xlane.xlu1 %2649  ;;  %v5976_v20 = vpop.eup %4209  ;;  %4219 = vpow2.f32 %v2459_v48  ;;  %v2892_v21 = vmul.f32 %v4208_v51, %v7084_v57  ;;  %v2287_v15 = vsub.f32 %v7085_v10, %v5659_v41  ;;  %v7086_v48 = vld [vmem:[#allocation49_spill] sm:$0xff]  ;;  %v5994_v51 = vadd.f32 %v5587_v44, %v3811_v17  ;;  %v7087_v41 = vld [vmem:[#allocation15_spill] sm:$0xff]  ;;  %v7088_v57 = vld [vmem:[#allocation16_spill] sm:$0xff] }
 0x311   : > { %v2644_v33 = vpop.xlane.xlu0 %2643  ;;  %3143 = vst.msk [vmem:[%s5901_s6 + $0x58] sm:$0xff] %vm3131_vm2, %v2898_v47  ;;  %4221 = vrcp.f32 %v2650_v63  ;;  %v2288_v58 = vsub.f32 %v7087_v41, %v5668_v24 }
 0x312   : > { %v4212_v32 = vpop.eup %4211  ;;  %3140 = vst.msk [vmem:[%s5901_s6 + $0x40] sm:$0xff] %vm3131_vm2, %v2892_v21  ;;  %4223 = vrcp.f32 %v2644_v33  ;;  %v2467_v63 = vmul.f32 1.442695, %v2287_v15  ;;  %v2293_v21 = vsub.f32 %v7088_v57, %v5673_v5  ;;  %v2294_v33 = vsub.f32 %v7089_v43, %v5682_v0 }
 0x313   : > { %v2894_v52 = vmul.f32 %v4212_v32, %v7086_v48  ;;  %2709 = vadd.xlane.f32.xlu1 %v5976_v20  ;;  %4225 = vpow2.f32 %v2461_v3  ;;  %2231 = vmax.xlane.f32.xlu0 %v5982_v12  ;;  %v6003_v32 = vadd.f32 %v5587_v44, %v1964_v16  ;;  %v1967_v3 = vpop.f32.mrf.mxu1  ;;  %v2469_v16 = vmul.f32 1.442695, %v2288_v58  ;;  %v7093_v58 = vld [vmem:[#allocation54_spill] sm:$0xff] }
 0x314   : > { %v2646_v61 = vpop.xlane.xlu1 %2645  ;;  %v6014_v17 = vadd.f32 %v5587_v44, %v1967_v3  ;;  %v2479_v5 = vmul.f32 1.442695, %v2293_v21  ;;  %v7094_v21 = vld [vmem:[#allocation20_spill] sm:$0xff] }
 0x315   : > { %3141 = vst.msk [vmem:[%s5901_s6 + $0x48] sm:$0xff] %vm3131_vm2, %v2894_v52  ;;  %4227 = vrcp.f32 %v2646_v61  ;;  %v6000_v47 = vpop.xlane.xlu0 %2167  ;;  %v6020_v48 = vpop.eup %4213  ;;  %v2481_v52 = vmul.f32 1.442695, %v2294_v33  ;;  %v7091_v61 = vld [vmem:[#allocation19_spill] sm:$0xff]  ;;  %v2297_v43 = vsub.f32 %v7094_v21, %v5701_v40  ;;  %v7096_v40 = vld [vmem:[#allocation21_spill] sm:$0xff] }
 0x316   : > { %4229 = vpow2.f32 %v2471_v1  ;;  %v7090_v1 = vld [vmem:[#allocation18_spill] sm:$0xff]  ;;  %v2292_v44 = vsub.f32 %v7091_v61, %v5697_v27  ;;  %v2298_v61 = vsub.f32 %v7096_v40, %v5709_v23  ;;  %v7100_v23 = vld [vmem:[#allocation23_spill] sm:$0xff] }
 0x317   : > { %2233 = vmax.xlane.f32.xlu1 %v5994_v51  ;;  %2227 = vmax.xlane.f32.xlu0 %v6003_v32  ;;  %4231 = vpow2.f32 %v2473_v2  ;;  %v2291_v10 = vsub.f32 %v7090_v1, %v5689_v39  ;;  %v7095_v1 = vld [vmem:[#allocation55_spill] sm:$0xff] }
 0x318   : > { %v6011_v24 = vpop.xlane.xlu1 %2169  ;;  %4233 = vpow2.f32 %v2467_v63 }
 0x319   : > { %v6018_v15 = vpop.xlane.xlu0 %2163  ;;  %4235 = vpow2.f32 %v2469_v16  ;;  %v2475_v39 = vmul.f32 1.442695, %v2291_v10  ;;  %v2477_v16 = vmul.f32 1.442695, %v2292_v44 }
 0x31a   : > { %4237 = vpow2.f32 %v2479_v5 }
 0x31b   : > { %2229 = vmax.xlane.f32.xlu1 %v6014_v17  ;;  %v4216_v0 = vpop.eup %4215  ;;  %2719 = vadd.xlane.f32.xlu0 %v6020_v48 }
 0x31c   : > { %v6026_v2 = vpop.xlane.xlu1 %2165  ;;  %v6028_v41 = vpop.eup %4217  ;;  %v2904_v3 = vmul.f32 %v4216_v0, %v7093_v58  ;;  %v7097_v58 = vld [vmem:[#allocation56_spill] sm:$0xff] }
 0x31d   : > { %7092 = vst [vmem:[#allocation11_spill] sm:$0xff] %v6028_v41  ;;  %v2656_v63 = vpop.xlane.xlu0 %2655  ;;  %v6031_v57 = vpop.eup %4219 }
 0x31e   : > { %v4222_v33 = vpop.eup %4221  ;;  %3146 = vst.msk [vmem:[%s5901_s6 + $0x70] sm:$0xff] %vm3131_vm2, %v2904_v3  ;;  %4239 = vrcp.f32 %v2656_v63 }
 0x31f   : > { %2721 = vadd.xlane.f32.xlu1 %v6028_v41  ;;  %v4224_v27 = vpop.eup %4223  ;;  %4241 = vpow2.f32 %v2481_v52  ;;  %v2906_v10 = vmul.f32 %v4222_v33, %v7095_v1  ;;  %2715 = vadd.xlane.f32.xlu0 %v6031_v57  ;;  %v2487_v41 = vmul.f32 1.442695, %v2297_v43  ;;  %v7098_v52 = vld [vmem:[#allocation22_spill] sm:$0xff] }
 0x320   : > { %v2658_v0 = vpop.xlane.xlu1 %2657  ;;  %v6040_v5 = vpop.eup %4225  ;;  %4243 = vpow2.f32 %v2475_v39  ;;  %v2900_v3 = vmul.f32 %v4224_v27, %v7097_v58  ;;  %v2295_v44 = vsub.f32 %v7098_v52, %v5711_v34  ;;  %v7099_v39 = vld [vmem:[#allocation57_spill] sm:$0xff]  ;;  %v2296_v27 = vsub.f32 %v7100_v23, %v5720_v36 }
 0x321   : > { %v2652_v63 = vpop.xlane.xlu0 %2651  ;;  %3147 = vst.msk [vmem:[%s5901_s6 + $0x78] sm:$0xff] %vm3131_vm2, %v2906_v10  ;;  %4245 = vrcp.f32 %v2658_v0  ;;  %v2489_v34 = vmul.f32 1.442695, %v2298_v61  ;;  %v7101_v10 = vld [vmem:[#allocation24_spill] sm:$0xff] }
 0x322   : > { %v4228_v21 = vpop.eup %4227  ;;  %3144 = vst.msk [vmem:[%s5901_s6 + $0x60] sm:$0xff] %vm3131_vm2, %v2900_v3  ;;  %4247 = vrcp.f32 %v2652_v63  ;;  %v2301_v0 = vsub.f32 %v7101_v10, %v5725_v28  ;;  %v2483_v3 = vmul.f32 1.442695, %v2295_v44  ;;  %v2485_v61 = vmul.f32 1.442695, %v2296_v27 }
 0x323   : > { %v6049_v33 = vpop.eup %4229  ;;  %v2902_v1 = vmul.f32 %v4228_v21, %v7099_v39  ;;  %2717 = vadd.xlane.f32.xlu1 %v6040_v5  ;;  %4249 = vpow2.f32 %v2477_v16  ;;  %v7102_v16 = vld [vmem:[#allocation25_spill] sm:$0xff]  ;;  %v7103_v21 = vld [vmem:[#allocation26_spill] sm:$0xff] }
 0x324   : > { %2727 = vadd.xlane.f32.xlu0 %v6049_v33  ;;  %v2654_v43 = vpop.xlane.xlu1 %2653  ;;  %v6064_v58 = vpop.eup %4231  ;;  %v2302_v63 = vsub.f32 %v7102_v16, %v5734_v55  ;;  %v2299_v28 = vsub.f32 %v7103_v21, %v5741_v37  ;;  %v2495_v39 = vmul.f32 1.442695, %v2301_v0 }
 0x325   : > { %3145 = vst.msk [vmem:[%s5901_s6 + $0x68] sm:$0xff] %vm3131_vm2, %v2902_v1  ;;  %4251 = vrcp.f32 %v2654_v43  ;;  %v6062_v40 = vpop.xlane.xlu0 %2175  ;;  %v6068_v36 = vpop.eup %4233 }
 0x326   : > { %4253 = vpow2.f32 %v2487_v41  ;;  %v7104_v41 = vld [vmem:[#allocation27_spill] sm:$0xff]  ;;  %v6080_v55 = vpop.eup %4235  ;;  %v2497_v23 = vmul.f32 1.442695, %v2302_v63  ;;  %v2491_v27 = vmul.f32 1.442695, %v2299_v28 }
 0x327   : > { %2729 = vadd.xlane.f32.xlu1 %v6064_v58  ;;  %4255 = vpow2.f32 %v2489_v34  ;;  %v2300_v44 = vsub.f32 %v7104_v41, %v5749_v18  ;;  %v6082_v43 = vpop.eup %4237  ;;  %v7105_v34 = vld [vmem:[#allocation28_spill] sm:$0xff] }
 0x328   : > { %2723 = vadd.xlane.f32.xlu0 %v6068_v36  ;;  %v6074_v52 = vpop.xlane.xlu1 %2177  ;;  %4257 = vpow2.f32 %v2483_v3  ;;  %v2305_v10 = vsub.f32 %v7105_v34, %v5753_v53 }
 0x329   : > { %v6078_v1 = vpop.xlane.xlu0 %2171  ;;  %4259 = vpow2.f32 %v2485_v61  ;;  %v2493_v3 = vmul.f32 1.442695, %v2300_v44  ;;  %v7106_v61 = vld [vmem:[#allocation29_spill] sm:$0xff] }
 0x32a   : > { %4261 = vpow2.f32 %v2495_v39  ;;  %v2306_v28 = vsub.f32 %v7106_v61, %v5761_v14  ;;  %v2503_v39 = vmul.f32 1.442695, %v2305_v10  ;;  %v7108_v14 = vld [vmem:[#allocation62_spill] sm:$0xff] }
 0x32b   : > { %2725 = vadd.xlane.f32.xlu1 %v6080_v55  ;;  %v4240_v37 = vpop.eup %4239  ;;  %4263 = vpow2.f32 %v2497_v23 }
 0x32c   : > { %2735 = vadd.xlane.f32.xlu0 %v6082_v43  ;;  %v6088_v18 = vpop.xlane.xlu1 %2173  ;;  %v6090_v0 = vpop.eup %4241  ;;  %v2912_v16 = vmul.f32 %v4240_v37, %v5556_v45  ;;  %v7107_v45 = vld [vmem:[#allocation30_spill] sm:$0xff]  ;;  %v2505_v10 = vmul.f32 1.442695, %v2306_v28 }
 0x32d   : > { %v2624_v63 = vpop.xlane.xlu0 %2623  ;;  %v6093_v21 = vpop.eup %4243  ;;  %v2303_v44 = vsub.f32 %v7107_v45, %v5763_v49 }
 0x32e   : > { %v4246_v41 = vpop.eup %4245  ;;  %3150 = vst.msk [vmem:[%s5901_s6 + $0x90] sm:$0xff] %vm3131_vm2, %v2912_v16  ;;  %4265 = vrcp.f32 %v2624_v63 }
 0x32f   : > { %2737 = vadd.xlane.f32.xlu1 %v6090_v0  ;;  %v4248_v53 = vpop.eup %4247  ;;  %4267 = vpow2.f32 %v2491_v27  ;;  %v2914_v37 = vmul.f32 %v4246_v41, %v5566_v42  ;;  %v2499_v49 = vmul.f32 1.442695, %v2303_v44 }
 0x330   : > { %2731 = vadd.xlane.f32.xlu0 %v6093_v21  ;;  %v2626_v23 = vpop.xlane.xlu1 %2625  ;;  %v6104_v34 = vpop.eup %4249  ;;  %4269 = vpow2.f32 %v2493_v3  ;;  %v2908_v16 = vmul.f32 %v4248_v53, %v7108_v14  ;;  %v7109_v3 = vld [vmem:[#allocation31_spill] sm:$0xff]  ;;  %v7113_v14 = vld [vmem:[#allocation33_spill] sm:$0xff] }
 0x331   : > { %v2620_v63 = vpop.xlane.xlu0 %2619  ;;  %3151 = vst.msk [vmem:[%s5901_s6 + $0x98] sm:$0xff] %vm3131_vm2, %v2914_v37  ;;  %4271 = vrcp.f32 %v2626_v23  ;;  %v2304_v41 = vsub.f32 %v7109_v3, %v5772_v31  ;;  %v7110_v37 = vld [vmem:[#allocation32_spill] sm:$0xff] }
 0x332   : > { %v4252_v61 = vpop.eup %4251  ;;  %3148 = vst.msk [vmem:[%s5901_s6 + $0x80] sm:$0xff] %vm3131_vm2, %v2908_v16  ;;  %4273 = vrcp.f32 %v2620_v63  ;;  %v2310_v16 = vsub.f32 %v7113_v14, %v5786_v22 }
 0x333   : > { %v6109_v27 = vpop.eup %4253  ;;  %v2910_v42 = vmul.f32 %v4252_v61, %v5580_v30  ;;  %2733 = vadd.xlane.f32.xlu1 %v6104_v34  ;;  %4275 = vpow2.f32 %v2503_v39  ;;  %v2309_v30 = vsub.f32 %v7110_v37, %v5777_v38  ;;  %v2501_v31 = vmul.f32 1.442695, %v2304_v41 }
 0x334   : > { %2743 = vadd.xlane.f32.xlu0 %v6109_v27  ;;  %v2622_v53 = vpop.xlane.xlu1 %2621  ;;  %v6120_v28 = vpop.eup %4255 }
 0x335   : > { %3149 = vst.msk [vmem:[%s5901_s6 + $0x88] sm:$0xff] %vm3131_vm2, %v2910_v42  ;;  %4277 = vrcp.f32 %v2622_v53  ;;  %v2664_v45 = vpop.xlane.xlu0 %2663  ;;  %v6124_v23 = vpop.eup %4257  ;;  %v2511_v38 = vmul.f32 1.442695, %v2309_v30  ;;  %v7115_v42 = vld [vmem:[#allocation34_spill] sm:$0xff]  ;;  %v2513_v53 = vmul.f32 1.442695, %v2310_v16 }
 0x336   : > { %4279 = vrcp.f32 %v2664_v45  ;;  %7111 = vst [vmem:[#allocation12_spill] sm:$0xff] %v6124_v23  ;;  %v6128_v44 = vpop.eup %4259  ;;  %v7117_v45 = vld [vmem:[#allocation35_spill] sm:$0xff] }
 0x337   : > { %4281 = vpow2.f32 %v2505_v10  ;;  %2745 = vadd.xlane.f32.xlu1 %v6120_v28  ;;  %7112 = vst [vmem:[#allocation13_spill] sm:$0xff] %v6128_v44  ;;  %v6132_v61 = vpop.eup %4261  ;;  %v2307_v10 = vsub.f32 %v7115_v42, %v5793_v6  ;;  %v2308_v37 = vsub.f32 %v7117_v45, %v5801_v13  ;;  %v7118_v30 = vld [vmem:[#allocation67_spill] sm:$0xff]  ;;  %v7121_v13 = vld [vmem:[#allocation37_spill] sm:$0xff] }
 0x338   : > { %4283 = vpow2.f32 %v2499_v49  ;;  %2739 = vadd.xlane.f32.xlu0 %v6124_v23  ;;  %v2666_v39 = vpop.xlane.xlu1 %2665  ;;  %7114 = vst [vmem:[#allocation48_spill] sm:$0xff] %v6132_v61  ;;  %v6136_v3 = vpop.eup %4263 }
 0x339   : > { %4285 = vrcp.f32 %v2666_v39  ;;  %v2660_v63 = vpop.xlane.xlu0 %2659  ;;  %7116 = vst [vmem:[#allocation14_spill] sm:$0xff] %v6136_v3 }
 0x33a   : > { %4287 = vrcp.f32 %v2660_v63  ;;  %v2507_v63 = vmul.f32 1.442695, %v2307_v10 }
 0x33b   : > { %2741 = vadd.xlane.f32.xlu1 %v6128_v44  ;;  %v4266_v49 = vpop.eup %4265  ;;  %4289 = vpow2.f32 %v2501_v31  ;;  %v7120_v31 = vld [vmem:[#allocation36_spill] sm:$0xff] }
 0x33c   : > { %2751 = vadd.xlane.f32.xlu0 %v6132_v61  ;;  %v2662_v41 = vpop.xlane.xlu1 %2661  ;;  %v6140_v22 = vpop.eup %4267  ;;  %v2880_v39 = vmul.f32 %v4266_v49, %v7118_v30  ;;  %v2313_v42 = vsub.f32 %v7120_v31, %v5805_v35  ;;  %v2314_v49 = vsub.f32 %v7121_v13, %v5813_v59  ;;  %v2509_v35 = vmul.f32 1.442695, %v2308_v37  ;;  %v7123_v30 = vld [vmem:[#allocation38_spill] sm:$0xff]  ;;  %v7124_v31 = vld [vmem:[#allocation69_spill] sm:$0xff]  ;;  %v7126_v37 = vld [vmem:[#allocation39_spill] sm:$0xff] }
 0x33d   : > { %4291 = vrcp.f32 %v2662_v41  ;;  %v6145_v6 = vpop.xlane.xlu0 %2183  ;;  %v6147_v14 = vpop.eup %4269  ;;  %v7122_v41 = vld [vmem:[#allocation68_spill] sm:$0xff]  ;;  %v7125_v13 = vld [vmem:[#allocation70_spill] sm:$0xff] }
 0x33e   : > { %7119 = vst [vmem:[#allocation49_spill] sm:$0xff] %v6147_v14  ;;  %4293 = vpow2.f32 %v2511_v38  ;;  %v4272_v61 = vpop.eup %4271  ;;  %3134 = vst.msk [vmem:[%s5901_s6 + $0x10] sm:$0xff] %vm3131_vm2, %v2880_v39  ;;  %v2311_v39 = vsub.f32 %v7123_v30, %v5815_v60  ;;  %v2519_v59 = vmul.f32 1.442695, %v2313_v42  ;;  %v2521_v60 = vmul.f32 1.442695, %v2314_v49 }
 0x33f   : > { %2753 = vadd.xlane.f32.xlu1 %v6136_v3  ;;  %v4274_v16 = vpop.eup %4273  ;;  %v2882_v45 = vmul.f32 %v4272_v61, %v7122_v41  ;;  %4295 = vpow2.f32 %v2513_v53  ;;  %v7127_v30 = vld [vmem:[#allocation71_spill] sm:$0xff]  ;;  %v7129_v49 = vld [vmem:[#allocation101_spill] sm:$0xff] }
 0x340   : > { %2747 = vadd.xlane.f32.xlu0 %v6140_v22  ;;  %v6158_v38 = vpop.xlane.xlu1 %2185  ;;  %v6160_v10 = vpop.eup %4275  ;;  %v2876_v3 = vmul.f32 %v4274_v16, %v7124_v31  ;;  %4297 = vpow2.f32 %v2507_v63  ;;  %v2312_v16 = vsub.f32 %v7126_v37, %v5824_v62 }
 0x341   : > { %v6165_v44 = vpop.xlane.xlu0 %2179  ;;  %3135 = vst.msk [vmem:[%s5901_s6 + $0x18] sm:$0xff] %vm3131_vm2, %v2882_v45  ;;  %4299 = vpow2.f32 %v2509_v35 }
 0x342   : > { %v4278_v23 = vpop.eup %4277  ;;  %3132 = vst.msk [vmem:[%s5901_s6] sm:$0xff] %vm3131_vm2, %v2876_v3  ;;  %v2515_v3 = vmul.f32 1.442695, %v2311_v39  ;;  %4301 = vpow2.f32 %v2519_v59  ;;  %v2517_v35 = vmul.f32 1.442695, %v2312_v16  ;;  %v7132_v39 = vld [vmem:[#allocation73_spill] sm:$0xff] }
 0x343   : > { %v4280_v61 = vpop.eup %4279  ;;  %v2878_v41 = vmul.f32 %v4278_v23, %v7125_v13  ;;  %2749 = vadd.xlane.f32.xlu1 %v6147_v14  ;;  %v7130_v13 = vld [vmem:[#allocation40_spill] sm:$0xff] }
 0x344   : > { %v6173_v53 = vpop.eup %4281  ;;  %v2920_v63 = vmul.f32 %v4280_v61, %v7127_v30  ;;  %2759 = vadd.xlane.f32.xlu0 %v6160_v10  ;;  %v6179_v42 = vpop.xlane.xlu1 %2181  ;;  %v2317_v14 = vsub.f32 %v7130_v13, %v7129_v49  ;;  %v7131_v61 = vld [vmem:[#allocation72_spill] sm:$0xff]  ;;  %v7133_v49 = vld [vmem:[#allocation103_spill] sm:$0xff]  ;;  %v7134_v13 = vld [vmem:[#allocation41_spill] sm:$0xff] }
 0x345   : > { %v6181_v45 = vpop.eup %4283  ;;  %3133 = vst.msk [vmem:[%s5901_s6 + $0x8] sm:$0xff] %vm3131_vm2, %v2878_v41  ;;  %v2672_v23 = vpop.xlane.xlu0 %2671 }
 0x346   : > { %7128 = vst [vmem:[#allocation15_spill] sm:$0xff] %v6181_v45  ;;  %v4286_v31 = vpop.eup %4285  ;;  %3154 = vst.msk [vmem:[%s5901_s6 + $0xb0] sm:$0xff] %vm3131_vm2, %v2920_v63  ;;  %4303 = vrcp.f32 %v2672_v23  ;;  %v2318_v63 = vsub.f32 %v7134_v13, %v7133_v49  ;;  %v7140_v13 = vld [vmem:[#allocation44_spill] sm:$0xff] }
 0x347   : > { %v4288_v62 = vpop.eup %4287  ;;  %v2922_v37 = vmul.f32 %v4286_v31, %v7131_v61  ;;  %2761 = vadd.xlane.f32.xlu1 %v6173_v53  ;;  %4305 = vpow2.f32 %v2521_v60  ;;  %v2527_v61 = vmul.f32 1.442695, %v2317_v14  ;;  %v7135_v60 = vld [vmem:[#allocation42_spill] sm:$0xff]  ;;  %v7138_v14 = vld [vmem:[#allocation43_spill] sm:$0xff] }
 0x348   : > { %v2916_v41 = vmul.f32 %v4288_v62, %v7132_v39  ;;  %2755 = vadd.xlane.f32.xlu0 %v6181_v45  ;;  %v2674_v30 = vpop.xlane.xlu1 %2673  ;;  %v6193_v59 = vpop.eup %4289  ;;  %4307 = vpow2.f32 %v2515_v3  ;;  %v2315_v16 = vsub.f32 %v7135_v60, %v5847_v26  ;;  %v7137_v39 = vld [vmem:[#allocation74_spill] sm:$0xff]  ;;  %v2316_v49 = vsub.f32 %v7138_v14, %v5855_v29  ;;  %v7143_v60 = vld [vmem:[#allocation5_spill] sm:$0xff] }
 0x349   : > { %3155 = vst.msk [vmem:[%s5901_s6 + $0xb8] sm:$0xff] %vm3131_vm2, %v2922_v37  ;;  %v2668_v31 = vpop.xlane.xlu0 %2667  ;;  %4309 = vrcp.f32 %v2674_v30  ;;  %v2529_v37 = vmul.f32 1.442695, %v2318_v63  ;;  %v7142_v63 = vld [vmem:[#allocation45_spill] sm:$0xff] }
 0x34a   : > { %v4292_v23 = vpop.eup %4291  ;;  %3152 = vst.msk [vmem:[%s5901_s6 + $0xa0] sm:$0xff] %vm3131_vm2, %v2916_v41  ;;  %4311 = vrcp.f32 %v2668_v31  ;;  %v2523_v30 = vmul.f32 1.442695, %v2315_v16  ;;  %v2321_v31 = vsub.f32 %v7140_v13, %v5873_v7 }
 0x34b   : > { %v6203_v62 = vpop.eup %4293  ;;  %v2918_v45 = vmul.f32 %v4292_v23, %v7137_v39  ;;  %2757 = vadd.xlane.f32.xlu1 %v6193_v59  ;;  %4313 = vpow2.f32 %v2517_v35  ;;  %v2322_v23 = vsub.f32 %v7142_v63, %v5884_v50  ;;  %v7144_v39 = vld [vmem:[#allocation46_spill] sm:$0xff]  ;;  %v7147_v63 = vld [vmem:[#allocation47_spill] sm:$0xff] }
 0x34c   : > { %7136 = vst [vmem:[#allocation16_spill] sm:$0xff] %v6203_v62  ;;  %2767 = vadd.xlane.f32.xlu0 %v6203_v62  ;;  %v2670_v3 = vpop.xlane.xlu1 %2669  ;;  %v6214_v41 = vpop.eup %4295  ;;  %v2535_v7 = vmul.f32 1.442695, %v2321_v31 }
 0x34d   : > { %3153 = vst.msk [vmem:[%s5901_s6 + $0xa8] sm:$0xff] %vm3131_vm2, %v2918_v45  ;;  %4315 = vrcp.f32 %v2670_v3  ;;  %v6212_v26 = vpop.xlane.xlu0 %2191  ;;  %7139 = vst [vmem:[#allocation17_spill] sm:$0xff] %v6214_v41  ;;  %v6218_v35 = vpop.eup %4297  ;;  %v2525_v45 = vmul.f32 1.442695, %v2316_v49  ;;  %v2537_v13 = vmul.f32 1.442695, %v2322_v23 }
 0x34e   : > { %4317 = vpow2.f32 %v2527_v61  ;;  %7141 = vst [vmem:[#allocation18_spill] sm:$0xff] %v6218_v35  ;;  %v2319_v61 = vsub.f32 %v7144_v39, %v7143_v60  ;;  %v6230_v3 = vpop.eup %4299 }
 0x34f   : > { %2769 = vadd.xlane.f32.xlu1 %v6214_v41  ;;  %4319 = vpow2.f32 %v2529_v37  ;;  %7145 = vst [vmem:[#allocation19_spill] sm:$0xff] %v6230_v3  ;;  %v6232_v14 = vpop.eup %4301  ;;  %v2320_v37 = vsub.f32 %v7147_v63, %v5906_v19 }
 0x350   : > { %2763 = vadd.xlane.f32.xlu0 %v6218_v35  ;;  %v6224_v29 = vpop.xlane.xlu1 %2193  ;;  %4321 = vpow2.f32 %v2523_v30  ;;  %7146 = vst [vmem:[#allocation54_spill] sm:$0xff] %v6232_v14  ;;  %v2531_v39 = vmul.f32 1.442695, %v2319_v61  ;;  %v7149_v30 = vld [vmem:[#allocation79_spill] sm:$0xff]  ;;  %v7151_v61 = vld [vmem:[#allocation80_spill] sm:$0xff] }
 0x351   : > { %v6228_v16 = vpop.xlane.xlu0 %2187  ;;  %4323 = vpow2.f32 %v2525_v45  ;;  %v2533_v45 = vmul.f32 1.442695, %v2320_v37 }
 0x352   : > { %4325 = vpow2.f32 %v2535_v7 }
 0x353   : > { %2765 = vadd.xlane.f32.xlu1 %v6230_v3  ;;  %v4304_v50 = vpop.eup %4303  ;;  %v7150_v3 = vld [vmem:[#allocation50_spill] sm:$0xff] }
 0x354   : > { %2775 = vadd.xlane.f32.xlu0 %v6232_v14  ;;  %v6238_v49 = vpop.xlane.xlu1 %2189  ;;  %v6240_v60 = vpop.eup %4305  ;;  %v2928_v31 = vmul.f32 %v4304_v50, %v7149_v30  ;;  %v2325_v23 = vsub.f32 %v7150_v3, %v5936_v9  ;;  %v7152_v9 = vld [vmem:[#allocation51_spill] sm:$0xff]  ;;  %v7153_v30 = vld [vmem:[#allocation81_spill] sm:$0xff] }
 0x355   : > { %7148 = vst [vmem:[#allocation20_spill] sm:$0xff] %v6240_v60  ;;  %v2680_v35 = vpop.xlane.xlu0 %2679  ;;  %v6243_v41 = vpop.eup %4307  ;;  %v2326_v3 = vsub.f32 %v7152_v9, %v5947_v56  ;;  %v7157_v9 = vld [vmem:[#allocation58_spill] sm:$0xff] }
 0x356   : > { %v4310_v62 = vpop.eup %4309  ;;  %3158 = vst.msk [vmem:[%s5901_s6 + $0xd0] sm:$0xff] %vm3131_vm2, %v2928_v31  ;;  %4327 = vrcp.f32 %v2680_v35  ;;  %v2543_v14 = vmul.f32 1.442695, %v2325_v23 }
 0x357   : > { %2777 = vadd.xlane.f32.xlu1 %v6240_v60  ;;  %v4312_v19 = vpop.eup %4311  ;;  %4329 = vpow2.f32 %v2537_v13  ;;  %v2930_v50 = vmul.f32 %v4310_v62, %v7151_v61  ;;  %v7154_v13 = vld [vmem:[#allocation52_spill] sm:$0xff]  ;;  %v2545_v23 = vmul.f32 1.442695, %v2326_v3  ;;  %v7159_v3 = vld [vmem:[#allocation59_spill] sm:$0xff] }
 0x358   : > { %2771 = vadd.xlane.f32.xlu0 %v6243_v41  ;;  %v2682_v63 = vpop.xlane.xlu1 %2681  ;;  %v6252_v7 = vpop.eup %4313  ;;  %4331 = vpow2.f32 %v2531_v39  ;;  %v2924_v35 = vmul.f32 %v4312_v19, %v7153_v30  ;;  %v2323_v37 = vsub.f32 %v7154_v13, %v5954_v25  ;;  %v7155_v39 = vld [vmem:[#allocation82_spill] sm:$0xff]  ;;  %v7156_v19 = vld [vmem:[#allocation53_spill] sm:$0xff]  ;;  %v2329_v30 = vsub.f32 %v7157_v9, %v6000_v47  ;;  %v7160_v13 = vld [vmem:[#allocation60_spill] sm:$0xff] }
 0x359   : > { %v2676_v31 = vpop.xlane.xlu0 %2675  ;;  %3159 = vst.msk [vmem:[%s5901_s6 + $0xd8] sm:$0xff] %vm3131_vm2, %v2930_v50  ;;  %4333 = vrcp.f32 %v2682_v63  ;;  %v2324_v25 = vsub.f32 %v7156_v19, %v5962_v11  ;;  %v7163_v19 = vld [vmem:[#allocation61_spill] sm:$0xff] }
 0x35a   : > { %v4316_v60 = vpop.eup %4315  ;;  %3156 = vst.msk [vmem:[%s5901_s6 + $0xc0] sm:$0xff] %vm3131_vm2, %v2924_v35  ;;  %4335 = vrcp.f32 %v2676_v31  ;;  %v2330_v35 = vsub.f32 %v7159_v3, %v6011_v24  ;;  %v2551_v47 = vmul.f32 1.442695, %v2329_v30 }
 0x35b   : > { %v6261_v62 = vpop.eup %4317  ;;  %v2926_v61 = vmul.f32 %v4316_v60, %v7155_v39  ;;  %2773 = vadd.xlane.f32.xlu1 %v6252_v7  ;;  %4337 = vpow2.f32 %v2533_v45  ;;  %v2539_v60 = vmul.f32 1.442695, %v2323_v37  ;;  %v2541_v31 = vmul.f32 1.442695, %v2324_v25 }
 0x35c   : > { %2783 = vadd.xlane.f32.xlu0 %v6261_v62  ;;  %v2678_v56 = vpop.xlane.xlu1 %2677  ;;  %v6274_v63 = vpop.eup %4319 }
 0x35d   : > { %3157 = vst.msk [vmem:[%s5901_s6 + $0xc8] sm:$0xff] %vm3131_vm2, %v2926_v61  ;;  %4339 = vrcp.f32 %v2678_v56  ;;  %v6272_v50 = vpop.xlane.xlu0 %2199  ;;  %v6278_v45 = vpop.eup %4321  ;;  %v2553_v56 = vmul.f32 1.442695, %v2330_v35 }
 0x35e   : > { %4341 = vpow2.f32 %v2543_v14  ;;  %7158 = vst [vmem:[#allocation55_spill] sm:$0xff] %v6278_v45  ;;  %v2327_v14 = vsub.f32 %v7160_v13, %v6018_v15  ;;  %v6290_v39 = vpop.eup %4323 }
 0x35f   : > { %2785 = vadd.xlane.f32.xlu1 %v6274_v63  ;;  %4343 = vpow2.f32 %v2545_v23  ;;  %7161 = vst [vmem:[#allocation21_spill] sm:$0xff] %v6290_v39  ;;  %v6292_v61 = vpop.eup %4325  ;;  %v2328_v23 = vsub.f32 %v7163_v19, %v6026_v2 }
 0x360   : > { %2779 = vadd.xlane.f32.xlu0 %v6278_v45  ;;  %v6284_v11 = vpop.xlane.xlu1 %2201  ;;  %4345 = vpow2.f32 %v2539_v60  ;;  %7162 = vst [vmem:[#allocation56_spill] sm:$0xff] %v6292_v61  ;;  %v2547_v9 = vmul.f32 1.442695, %v2327_v14  ;;  %v7165_v60 = vld [vmem:[#allocation87_spill] sm:$0xff]  ;;  %v7167_v14 = vld [vmem:[#allocation88_spill] sm:$0xff] }
 0x361   : > { %v6288_v37 = vpop.xlane.xlu0 %2195  ;;  %4347 = vpow2.f32 %v2541_v31  ;;  %v2549_v31 = vmul.f32 1.442695, %v2328_v23 }
 0x362   : > { %4349 = vpow2.f32 %v2551_v47 }
 0x363   : > { %2781 = vadd.xlane.f32.xlu1 %v6290_v39  ;;  %v4328_v24 = vpop.eup %4327  ;;  %v7166_v39 = vld [vmem:[#allocation63_spill] sm:$0xff] }
 0x364   : > { %2791 = vadd.xlane.f32.xlu0 %v6292_v61  ;;  %v6298_v25 = vpop.xlane.xlu1 %2197  ;;  %v6300_v15 = vpop.eup %4329  ;;  %v2936_v30 = vmul.f32 %v4328_v24, %v7165_v60  ;;  %v2333_v35 = vsub.f32 %v7166_v39, %v6062_v40  ;;  %v7168_v40 = vld [vmem:[#allocation64_spill] sm:$0xff]  ;;  %v7169_v60 = vld [vmem:[#allocation89_spill] sm:$0xff] }
 0x365   : > { %7164 = vst [vmem:[#allocation22_spill] sm:$0xff] %v6300_v15  ;;  %v2688_v3 = vpop.xlane.xlu0 %2687  ;;  %v6303_v13 = vpop.eup %4331  ;;  %v2334_v39 = vsub.f32 %v7168_v40, %v6074_v52  ;;  %v7173_v40 = vld [vmem:[#allocation75_spill] sm:$0xff] }
 0x366   : > { %v4334_v45 = vpop.eup %4333  ;;  %3162 = vst.msk [vmem:[%s5901_s6 + $0xf0] sm:$0xff] %vm3131_vm2, %v2936_v30  ;;  %4351 = vrcp.f32 %v2688_v3  ;;  %v2559_v61 = vmul.f32 1.442695, %v2333_v35 }
 0x367   : > { %2793 = vadd.xlane.f32.xlu1 %v6300_v15  ;;  %v4336_v2 = vpop.eup %4335  ;;  %4353 = vpow2.f32 %v2553_v56  ;;  %v2938_v24 = vmul.f32 %v4334_v45, %v7167_v14  ;;  %v7170_v56 = vld [vmem:[#allocation65_spill] sm:$0xff]  ;;  %v2561_v35 = vmul.f32 1.442695, %v2334_v39  ;;  %v7175_v39 = vld [vmem:[#allocation76_spill] sm:$0xff] }
 0x368   : > { %2787 = vadd.xlane.f32.xlu0 %v6303_v13  ;;  %v2690_v19 = vpop.xlane.xlu1 %2689  ;;  %v6312_v47 = vpop.eup %4337  ;;  %4355 = vpow2.f32 %v2547_v9  ;;  %v2932_v30 = vmul.f32 %v4336_v2, %v7169_v60  ;;  %v2331_v23 = vsub.f32 %v7170_v56, %v6078_v1  ;;  %v7171_v9 = vld [vmem:[#allocation90_spill] sm:$0xff]  ;;  %v2337_v60 = vsub.f32 %v7173_v40, %v6145_v6  ;;  %v7176_v56 = vld [vmem:[#allocation77_spill] sm:$0xff] }
 0x369   : > { %v2684_v3 = vpop.xlane.xlu0 %2683  ;;  %3163 = vst.msk [vmem:[%s5901_s6 + $0xf8] sm:$0xff] %vm3131_vm2, %v2938_v24  ;;  %4357 = vrcp.f32 %v2690_v19  ;;  %v7172_v2 = vld [vmem:[#allocation66_spill] sm:$0xff] }
 0x36a   : > { %v4340_v15 = vpop.eup %4339  ;;  %3160 = vst.msk [vmem:[%s5901_s6 + $0xe0] sm:$0xff] %vm3131_vm2, %v2932_v30  ;;  %4359 = vrcp.f32 %v2684_v3  ;;  %v2332_v1 = vsub.f32 %v7172_v2, %v6088_v18  ;;  %v2338_v30 = vsub.f32 %v7175_v39, %v6158_v38  ;;  %v2567_v6 = vmul.f32 1.442695, %v2337_v60  ;;  %v7179_v2 = vld [vmem:[#allocation78_spill] sm:$0xff] }
 0x36b   : > { %v6321_v45 = vpop.eup %4341  ;;  %v2934_v14 = vmul.f32 %v4340_v15, %v7171_v9  ;;  %2789 = vadd.xlane.f32.xlu1 %v6312_v47  ;;  %4361 = vpow2.f32 %v2549_v31  ;;  %v2555_v15 = vmul.f32 1.442695, %v2331_v23 }
 0x36c   : > { %2799 = vadd.xlane.f32.xlu0 %v6321_v45  ;;  %v2686_v52 = vpop.xlane.xlu1 %2685  ;;  %v6334_v19 = vpop.eup %4343  ;;  %v2557_v3 = vmul.f32 1.442695, %v2332_v1 }
 0x36d   : > { %3161 = vst.msk [vmem:[%s5901_s6 + $0xe8] sm:$0xff] %vm3131_vm2, %v2934_v14  ;;  %4363 = vrcp.f32 %v2686_v52  ;;  %v6332_v24 = vpop.xlane.xlu0 %2207  ;;  %v6338_v31 = vpop.eup %4345  ;;  %v2569_v52 = vmul.f32 1.442695, %v2338_v30 }
 0x36e   : > { %4365 = vpow2.f32 %v2559_v61  ;;  %7174 = vst [vmem:[#allocation57_spill] sm:$0xff] %v6338_v31  ;;  %v2335_v61 = vsub.f32 %v7176_v56, %v6165_v44  ;;  %v6350_v9 = vpop.eup %4347 }
 0x36f   : > { %2801 = vadd.xlane.f32.xlu1 %v6334_v19  ;;  %4367 = vpow2.f32 %v2561_v35  ;;  %7177 = vst [vmem:[#allocation23_spill] sm:$0xff] %v6350_v9  ;;  %v6352_v14 = vpop.eup %4349  ;;  %v2336_v35 = vsub.f32 %v7179_v2, %v6179_v42 }
 0x370   : > { %2795 = vadd.xlane.f32.xlu0 %v6338_v31  ;;  %v6344_v18 = vpop.xlane.xlu1 %2209  ;;  %4369 = vpow2.f32 %v2555_v15  ;;  %7178 = vst [vmem:[#allocation24_spill] sm:$0xff] %v6352_v14  ;;  %v2563_v40 = vmul.f32 1.442695, %v2335_v61  ;;  %v7181_v15 = vld [vmem:[#allocation95_spill] sm:$0xff]  ;;  %v7183_v61 = vld [vmem:[#allocation96_spill] sm:$0xff] }
 0x371   : > { %v6348_v23 = vpop.xlane.xlu0 %2203  ;;  %4371 = vpow2.f32 %v2557_v3  ;;  %v2565_v3 = vmul.f32 1.442695, %v2336_v35 }
 0x372   : > { %4373 = vpow2.f32 %v2567_v6 }
 0x373   : > { %2797 = vadd.xlane.f32.xlu1 %v6350_v9  ;;  %v4352_v38 = vpop.eup %4351  ;;  %v7182_v9 = vld [vmem:[#allocation83_spill] sm:$0xff] }
 0x374   : > { %2807 = vadd.xlane.f32.xlu0 %v6352_v14  ;;  %v6358_v1 = vpop.xlane.xlu1 %2205  ;;  %v6360_v44 = vpop.eup %4353  ;;  %v2944_v60 = vmul.f32 %v4352_v38, %v7181_v15  ;;  %v2341_v30 = vsub.f32 %v7182_v9, %v6212_v26  ;;  %v7184_v26 = vld [vmem:[#allocation84_spill] sm:$0xff]  ;;  %v7185_v15 = vld [vmem:[#allocation97_spill] sm:$0xff] }
 0x375   : > { %7180 = vst [vmem:[#allocation25_spill] sm:$0xff] %v6360_v44  ;;  %v2696_v39 = vpop.xlane.xlu0 %2695  ;;  %v6363_v56 = vpop.eup %4355  ;;  %v2342_v9 = vsub.f32 %v7184_v26, %v6224_v29  ;;  %v7189_v26 = vld [vmem:[#allocation91_spill] sm:$0xff] }
 0x376   : > { %v4358_v31 = vpop.eup %4357  ;;  %3166 = vst.msk [vmem:[%s5901_s6 + $0x110] sm:$0xff] %vm3131_vm2, %v2944_v60  ;;  %4375 = vrcp.f32 %v2696_v39  ;;  %v2575_v14 = vmul.f32 1.442695, %v2341_v30 }
 0x377   : > { %2809 = vadd.xlane.f32.xlu1 %v6360_v44  ;;  %v4360_v42 = vpop.eup %4359  ;;  %4377 = vpow2.f32 %v2569_v52  ;;  %v2946_v38 = vmul.f32 %v4358_v31, %v7183_v61  ;;  %v7186_v52 = vld [vmem:[#allocation85_spill] sm:$0xff]  ;;  %v2577_v30 = vmul.f32 1.442695, %v2342_v9  ;;  %v7191_v9 = vld [vmem:[#allocation92_spill] sm:$0xff] }
 0x378   : > { %2803 = vadd.xlane.f32.xlu0 %v6363_v56  ;;  %v2698_v2 = vpop.xlane.xlu1 %2697  ;;  %v6372_v6 = vpop.eup %4361  ;;  %4379 = vpow2.f32 %v2563_v40  ;;  %v2940_v60 = vmul.f32 %v4360_v42, %v7185_v15  ;;  %v2339_v35 = vsub.f32 %v7186_v52, %v6228_v16  ;;  %v7187_v40 = vld [vmem:[#allocation98_spill] sm:$0xff]  ;;  %v2345_v15 = vsub.f32 %v7189_v26, %v6272_v50  ;;  %v7192_v52 = vld [vmem:[#allocation93_spill] sm:$0xff] }
 0x379   : > { %v2692_v39 = vpop.xlane.xlu0 %2691  ;;  %3167 = vst.msk [vmem:[%s5901_s6 + $0x118] sm:$0xff] %vm3131_vm2, %v2946_v38  ;;  %4381 = vrcp.f32 %v2698_v2  ;;  %v7188_v42 = vld [vmem:[#allocation86_spill] sm:$0xff] }
 0x37a   : > { %v4364_v44 = vpop.eup %4363  ;;  %3164 = vst.msk [vmem:[%s5901_s6 + $0x100] sm:$0xff] %vm3131_vm2, %v2940_v60  ;;  %4383 = vrcp.f32 %v2692_v39  ;;  %v2340_v16 = vsub.f32 %v7188_v42, %v6238_v49  ;;  %v2346_v60 = vsub.f32 %v7191_v9, %v6284_v11  ;;  %v2583_v50 = vmul.f32 1.442695, %v2345_v15  ;;  %v7195_v42 = vld [vmem:[#allocation94_spill] sm:$0xff] }
 0x37b   : > { %v6381_v31 = vpop.eup %4365  ;;  %v2942_v61 = vmul.f32 %v4364_v44, %v7187_v40  ;;  %2805 = vadd.xlane.f32.xlu1 %v6372_v6  ;;  %4385 = vpow2.f32 %v2565_v3  ;;  %v2571_v44 = vmul.f32 1.442695, %v2339_v35 }
 0x37c   : > { %2815 = vadd.xlane.f32.xlu0 %v6381_v31  ;;  %v2694_v29 = vpop.xlane.xlu1 %2693  ;;  %v6394_v2 = vpop.eup %4367  ;;  %v2573_v39 = vmul.f32 1.442695, %v2340_v16 }
 0x37d   : > { %3165 = vst.msk [vmem:[%s5901_s6 + $0x108] sm:$0xff] %vm3131_vm2, %v2942_v61  ;;  %4387 = vrcp.f32 %v2694_v29  ;;  %v6392_v38 = vpop.xlane.xlu0 %2215  ;;  %v6398_v3 = vpop.eup %4369  ;;  %v2585_v29 = vmul.f32 1.442695, %v2346_v60 }
 0x37e   : > { %4389 = vpow2.f32 %v2575_v14  ;;  %7190 = vst [vmem:[#allocation26_spill] sm:$0xff] %v6398_v3  ;;  %v2343_v14 = vsub.f32 %v7192_v52, %v6288_v37  ;;  %v6410_v40 = vpop.eup %4371 }
 0x37f   : > { %2817 = vadd.xlane.f32.xlu1 %v6394_v2  ;;  %4391 = vpow2.f32 %v2577_v30  ;;  %7193 = vst [vmem:[#allocation27_spill] sm:$0xff] %v6410_v40  ;;  %v6412_v61 = vpop.eup %4373  ;;  %v2344_v30 = vsub.f32 %v7195_v42, %v6298_v25 }
 0x380   : > { %2811 = vadd.xlane.f32.xlu0 %v6398_v3  ;;  %v6404_v49 = vpop.xlane.xlu1 %2217  ;;  %4393 = vpow2.f32 %v2571_v44  ;;  %7194 = vst [vmem:[#allocation28_spill] sm:$0xff] %v6412_v61  ;;  %v2579_v26 = vmul.f32 1.442695, %v2343_v14  ;;  %v7197_v44 = vld [vmem:[#allocation2_spill] sm:$0xff]  ;;  %v7199_v14 = vld [vmem:[#allocation3_spill] sm:$0xff] }
 0x381   : > { %v6408_v35 = vpop.xlane.xlu0 %2211  ;;  %4395 = vpow2.f32 %v2573_v39  ;;  %v2581_v39 = vmul.f32 1.442695, %v2344_v30 }
 0x382   : > { %4397 = vpow2.f32 %v2583_v50 }
 0x383   : > { %2813 = vadd.xlane.f32.xlu1 %v6410_v40  ;;  %v4376_v11 = vpop.eup %4375  ;;  %v7198_v40 = vld [vmem:[#allocation99_spill] sm:$0xff] }
 0x384   : > { %2823 = vadd.xlane.f32.xlu0 %v6412_v61  ;;  %v6418_v16 = vpop.xlane.xlu1 %2213  ;;  %v6420_v37 = vpop.eup %4377  ;;  %v2952_v15 = vmul.f32 %v4376_v11, %v7197_v44  ;;  %v2349_v60 = vsub.f32 %v7198_v40, %v6332_v24  ;;  %v7200_v24 = vld [vmem:[#allocation100_spill] sm:$0xff]  ;;  %v7201_v44 = vld [vmem:[#allocation105_spill] sm:$0xff] }
 0x385   : > { %7196 = vst [vmem:[#allocation29_spill] sm:$0xff] %v6420_v37  ;;  %v2704_v9 = vpop.xlane.xlu0 %2703  ;;  %v6423_v52 = vpop.eup %4379  ;;  %v2350_v40 = vsub.f32 %v7200_v24, %v6344_v18 }
 0x386   : > { %v4382_v3 = vpop.eup %4381  ;;  %3170 = vst.msk [vmem:[%s5901_s6 + $0x130] sm:$0xff] %vm3131_vm2, %v2952_v15  ;;  %4399 = vrcp.f32 %v2704_v9  ;;  %v2591_v61 = vmul.f32 1.442695, %v2349_v60 }
 0x387   : > { %2825 = vadd.xlane.f32.xlu1 %v6420_v37  ;;  %v4384_v25 = vpop.eup %4383  ;;  %4401 = vpow2.f32 %v2585_v29  ;;  %v2954_v11 = vmul.f32 %v4382_v3, %v7199_v14  ;;  %v7202_v29 = vld [vmem:[#allocation102_spill] sm:$0xff]  ;;  %v2593_v60 = vmul.f32 1.442695, %v2350_v40 }
 0x388   : > { %2819 = vadd.xlane.f32.xlu0 %v6423_v52  ;;  %v2706_v42 = vpop.xlane.xlu1 %2705  ;;  %v6432_v50 = vpop.eup %4385  ;;  %4403 = vpow2.f32 %v2579_v26  ;;  %v2948_v15 = vmul.f32 %v4384_v25, %v7201_v44  ;;  %v2347_v30 = vsub.f32 %v7202_v29, %v6348_v23  ;;  %v7203_v26 = vld [vmem:[#allocation106_spill] sm:$0xff]  ;;  %v7204_v25 = vld [vmem:[#allocation104_spill] sm:$0xff]  ;;  %v7207_v29 = vld [vmem:[#allocation109_spill] sm:$0xff] }
 0x389   : > { %v2700_v9 = vpop.xlane.xlu0 %2699  ;;  %3171 = vst.msk [vmem:[%s5901_s6 + $0x138] sm:$0xff] %vm3131_vm2, %v2954_v11  ;;  %4405 = vrcp.f32 %v2706_v42  ;;  %v2348_v23 = vsub.f32 %v7204_v25, %v6358_v1  ;;  %v7209_v25 = vld [vmem:[#allocation4_spill] sm:$0xff] }
 0x38a   : > { %v4388_v37 = vpop.eup %4387  ;;  %3168 = vst.msk [vmem:[%s5901_s6 + $0x120] sm:$0xff] %vm3131_vm2, %v2948_v15  ;;  %4407 = vrcp.f32 %v2700_v9  ;;  %v2587_v24 = vmul.f32 1.442695, %v2347_v30 }
 0x38b   : > { %v6441_v3 = vpop.eup %4389  ;;  %v2950_v14 = vmul.f32 %v4388_v37, %v7203_v26  ;;  %2821 = vadd.xlane.f32.xlu1 %v6432_v50  ;;  %4409 = vpow2.f32 %v2581_v39  ;;  %v7205_v37 = vld [vmem:[#allocation107_spill] sm:$0xff]  ;;  %v7206_v39 = vld [vmem:[#allocation108_spill] sm:$0xff]  ;;  %v2589_v9 = vmul.f32 1.442695, %v2348_v23  ;;  %v2351_v26 = vsub.f32 %v7207_v29, %v6408_v35 }
 0x38c   : > { %2831 = vadd.xlane.f32.xlu0 %v6441_v3  ;;  %v2702_v18 = vpop.xlane.xlu1 %2701  ;;  %v6452_v42 = vpop.eup %4391  ;;  %v2353_v44 = vsub.f32 %v7205_v37, %v6392_v38  ;;  %v2354_v40 = vsub.f32 %v7206_v39, %v6404_v49  ;;  %v2352_v37 = vsub.f32 %v7209_v25, %v6418_v16 }
 0x38d   : > { %3169 = vst.msk [vmem:[%s5901_s6 + $0x128] sm:$0xff] %vm3131_vm2, %v2950_v14  ;;  %4411 = vrcp.f32 %v2702_v18  ;;  %v2224_v11 = vpop.xlane.xlu0 %2223  ;;  %v6456_v15 = vpop.eup %4393  ;;  %v2595_v35 = vmul.f32 1.442695, %v2351_v26 }
 0x38e   : > { %4413 = vpow2.f32 %v2591_v61  ;;  %v6464_v30 = vpop.eup %4395  ;;  %v2599_v38 = vmul.f32 1.442695, %v2353_v44  ;;  %v2601_v49 = vmul.f32 1.442695, %v2354_v40  ;;  %v2357_v29 = vsub.f32 %v5922_v46, %v2224_v11  ;;  %v7212_v11 = vld [vmem:[#allocation110_spill] sm:$0xff] }
 0x38f   : > { %2833 = vadd.xlane.f32.xlu1 %v6452_v42  ;;  %4415 = vpow2.f32 %v2593_v60  ;;  %7208 = vst [vmem:[#allocation30_spill] sm:$0xff] %v6464_v30  ;;  %v6466_v14 = vpop.eup %4397  ;;  %v2597_v40 = vmul.f32 1.442695, %v2352_v37 }
 0x390   : > { %2827 = vadd.xlane.f32.xlu0 %v6456_v15  ;;  %v2226_v1 = vpop.xlane.xlu1 %2225  ;;  %4417 = vpow2.f32 %v2587_v24 }
 0x391   : > { %v2220_v61 = vpop.xlane.xlu0 %2219  ;;  %4419 = vpow2.f32 %v2589_v9  ;;  %v7211_v9 = vld [vmem:[#allocation6_spill] sm:$0xff] }
 0x392   : > { %4421 = vpow2.f32 %v2599_v38  ;;  %v2358_v38 = vsub.f32 %v7212_v11, %v2226_v1 }
 0x393   : > { %2829 = vadd.xlane.f32.xlu1 %v6464_v30  ;;  %v4400_v18 = vpop.eup %4399 }
 0x394   : > { %2839 = vadd.xlane.f32.xlu0 %v6466_v14  ;;  %v2222_v60 = vpop.xlane.xlu1 %2221  ;;  %v6472_v23 = vpop.eup %4401  ;;  %v2960_v24 = vmul.f32 %v4400_v18, %v5893_v8  ;;  %v2609_v1 = vmul.f32 1.442695, %v2358_v38 }
 0x395   : > { %v2712_v44 = vpop.xlane.xlu0 %2711  ;;  %v6475_v39 = vpop.eup %4403 }
 0x396   : > { %7210 = vst [vmem:[#allocation62_spill] sm:$0xff] %v6475_v39  ;;  %v4406_v30 = vpop.eup %4405  ;;  %3174 = vst.msk [vmem:[%s5901_s6 + $0x150] sm:$0xff] %vm3131_vm2, %v2960_v24  ;;  %4423 = vrcp.f32 %v2712_v44  ;;  %v7213_v44 = vld [vmem:[#allocation111_spill] sm:$0xff] }
 0x397   : > { %2841 = vadd.xlane.f32.xlu1 %v6472_v23  ;;  %v4408_v16 = vpop.eup %4407  ;;  %4425 = vpow2.f32 %v2601_v49  ;;  %v2962_v26 = vmul.f32 %v4406_v30, %v7211_v9  ;;  %v2607_v49 = vmul.f32 1.442695, %v2357_v29  ;;  %v2355_v37 = vsub.f32 %v7213_v44, %v2220_v61  ;;  %v7214_v9 = vld [vmem:[#allocation7_spill] sm:$0xff] }
 0x398   : > { %2835 = vadd.xlane.f32.xlu0 %v6475_v39  ;;  %v2714_v8 = vpop.xlane.xlu1 %2713  ;;  %v6483_v18 = vpop.eup %4409  ;;  %4427 = vpow2.f32 %v2595_v35  ;;  %v2956_v46 = vmul.f32 %v4408_v16, %v5911_v54  ;;  %v7215_v35 = vld [vmem:[#allocation8_spill] sm:$0xff] }
 0x399   : > { %v2708_v25 = vpop.xlane.xlu0 %2707  ;;  %3175 = vst.msk [vmem:[%s5901_s6 + $0x158] sm:$0xff] %vm3131_vm2, %v2962_v26  ;;  %4429 = vrcp.f32 %v2714_v8  ;;  %v2356_v29 = vsub.f32 %v7215_v35, %v2222_v60  ;;  %v2603_v26 = vmul.f32 1.442695, %v2355_v37 }
 0x39a   : > { %v4412_v24 = vpop.eup %4411  ;;  %3172 = vst.msk [vmem:[%s5901_s6 + $0x140] sm:$0xff] %vm3131_vm2, %v2956_v46  ;;  %4431 = vrcp.f32 %v2708_v25 }
 0x39b   : > { %v6490_v30 = vpop.eup %4413  ;;  %v2958_v39 = vmul.f32 %v4412_v24, %v7214_v9  ;;  %2837 = vadd.xlane.f32.xlu1 %v6483_v18  ;;  %4433 = vpow2.f32 %v2597_v40 }
 0x39c   : > { %2847 = vadd.xlane.f32.xlu0 %v6490_v30  ;;  %v2710_v54 = vpop.xlane.xlu1 %2709  ;;  %v6500_v16 = vpop.eup %4415 }
 0x39d   : > { %3173 = vst.msk [vmem:[%s5901_s6 + $0x148] sm:$0xff] %vm3131_vm2, %v2958_v39  ;;  %4435 = vrcp.f32 %v2710_v54  ;;  %v2232_v61 = vpop.xlane.xlu0 %2231  ;;  %v6502_v8 = vpop.eup %4417  ;;  %v2605_v39 = vmul.f32 1.442695, %v2356_v29  ;;  %v7216_v54 = vld [vmem:[#allocation9_spill] sm:$0xff] }
 0x39e   : > { %4437 = vpow2.f32 %v2607_v49  ;;  %v2361_v40 = vsub.f32 %v5982_v12, %v2232_v61  ;;  %v6507_v38 = vpop.eup %4419 }
 0x39f   : > { %2849 = vadd.xlane.f32.xlu1 %v6500_v16  ;;  %4439 = vpow2.f32 %v2609_v1  ;;  %v6510_v25 = vpop.eup %4421 }
 0x3a0   : > { %2843 = vadd.xlane.f32.xlu0 %v6502_v8  ;;  %v2234_v46 = vpop.xlane.xlu1 %2233  ;;  %4441 = vpow2.f32 %v2603_v26  ;;  %v2615_v49 = vmul.f32 1.442695, %v2361_v40  ;;  %v7217_v40 = vld [vmem:[#allocation10_spill] sm:$0xff] }
 0x3a1   : > { %v2228_v11 = vpop.xlane.xlu0 %2227  ;;  %v2362_v12 = vsub.f32 %v5994_v51, %v2234_v46  ;;  %4443 = vpow2.f32 %v2605_v39 }
 0x3a2   : > { %v2359_v60 = vsub.f32 %v6003_v32, %v2228_v11 }
 0x3a3   : > { %2845 = vadd.xlane.f32.xlu1 %v6507_v38  ;;  %v4424_v24 = vpop.eup %4423  ;;  %v2617_v39 = vmul.f32 1.442695, %v2362_v12 }
 0x3a4   : > { %v2611_v44 = vmul.f32 1.442695, %v2359_v60  ;;  %2855 = vadd.xlane.f32.xlu0 %v6510_v25  ;;  %v2230_v37 = vpop.xlane.xlu1 %2229  ;;  %v6515_v9 = vpop.eup %4425  ;;  %v2968_v1 = vmul.f32 %v4424_v24, %v7216_v54 }
 0x3a5   : > { %v2360_v32 = vsub.f32 %v6014_v17, %v2230_v37  ;;  %v2720_v35 = vpop.xlane.xlu0 %2719  ;;  %v6519_v29 = vpop.eup %4427 }
 0x3a6   : > { %4445 = vpow2.f32 %v2611_v44  ;;  %v4430_v61 = vpop.eup %4429  ;;  %3178 = vst.msk [vmem:[%s5901_s6 + $0x170] sm:$0xff] %vm3131_vm2, %v2968_v1 }
 0x3a7   : > { %v2613_v51 = vmul.f32 1.442695, %v2360_v32  ;;  %4447 = vrcp.f32 %v2720_v35  ;;  %2857 = vadd.xlane.f32.xlu1 %v6515_v9  ;;  %v4432_v26 = vpop.eup %4431  ;;  %v2970_v46 = vmul.f32 %v4430_v61, %v7217_v40 }
 0x3a8   : > { %4449 = vpow2.f32 %v2615_v49  ;;  %2851 = vadd.xlane.f32.xlu0 %v6519_v29  ;;  %v2722_v17 = vpop.xlane.xlu1 %2721  ;;  %v6526_v11 = vpop.eup %4433  ;;  %v2964_v60 = vmul.f32 %v4432_v26, %v5967_v4 }
 0x3a9   : > { %4451 = vpow2.f32 %v2613_v51  ;;  %v2716_v24 = vpop.xlane.xlu0 %2715  ;;  %3179 = vst.msk [vmem:[%s5901_s6 + $0x178] sm:$0xff] %vm3131_vm2, %v2970_v46 }
 0x3aa   : > { %v4436_v44 = vpop.eup %4435  ;;  %4453 = vrcp.f32 %v2722_v17  ;;  %3176 = vst.msk [vmem:[%s5901_s6 + $0x160] sm:$0xff] %vm3131_vm2, %v2964_v60 }
 0x3ab   : > { %v6531_v37 = vpop.eup %4437  ;;  %v2966_v49 = vmul.f32 %v4436_v44, %v5976_v20  ;;  %4455 = vrcp.f32 %v2716_v24  ;;  %2853 = vadd.xlane.f32.xlu1 %v6526_v11  ;;  %v7218_v44 = vld [vmem:[#allocation11_spill] sm:$0xff] }
 0x3ac   : > { %4457 = vpow2.f32 %v2617_v39  ;;  %2863 = vadd.xlane.f32.xlu0 %v6531_v37  ;;  %v2718_v12 = vpop.xlane.xlu1 %2717  ;;  %v6540_v54 = vpop.eup %4439 }
 0x3ad   : > { %3177 = vst.msk [vmem:[%s5901_s6 + $0x168] sm:$0xff] %vm3131_vm2, %v2966_v49  ;;  %4459 = vrcp.f32 %v2718_v12  ;;  %v2728_v4 = vpop.xlane.xlu0 %2727  ;;  %v6542_v1 = vpop.eup %4441 }
 0x3ae   : > { %4461 = vrcp.f32 %v2728_v4  ;;  %v6546_v35 = vpop.eup %4443 }
 0x3af   : > { %2865 = vadd.xlane.f32.xlu1 %v6540_v54 }
 0x3b0   : > { %2859 = vadd.xlane.f32.xlu0 %v6542_v1  ;;  %v2730_v20 = vpop.xlane.xlu1 %2729 }
 0x3b1   : > { %4463 = vrcp.f32 %v2730_v20  ;;  %v2724_v32 = vpop.xlane.xlu0 %2723 }
 0x3b2   : > { %4465 = vrcp.f32 %v2724_v32 }
 0x3b3   : > { %v6548_v61 = vpop.eup %4445  ;;  %2861 = vadd.xlane.f32.xlu1 %v6546_v35 }
 0x3b4   : > { %v4448_v51 = vpop.eup %4447  ;;  %2867 = vadd.xlane.f32.xlu0 %v6548_v61  ;;  %v2726_v26 = vpop.xlane.xlu1 %2725 }
 0x3b5   : > { %v6552_v40 = vpop.eup %4449  ;;  %v2976_v46 = vmul.f32 %v4448_v51, %v6020_v48  ;;  %4467 = vrcp.f32 %v2726_v26  ;;  %v2736_v39 = vpop.xlane.xlu0 %2735 }
 0x3b6   : > { %v6555_v17 = vpop.eup %4451  ;;  %4469 = vrcp.f32 %v2736_v39 }
 0x3b7   : > { %v4454_v60 = vpop.eup %4453  ;;  %3182 = vst.msk [vmem:[%s5901_s6 + $0x190] sm:$0xff] %vm3131_vm2, %v2976_v46  ;;  %2869 = vadd.xlane.f32.xlu1 %v6555_v17 }
 0x3b8   : > { %v4456_v24 = vpop.eup %4455  ;;  %v2978_v49 = vmul.f32 %v4454_v60, %v7218_v44  ;;  %2871 = vadd.xlane.f32.xlu0 %v6552_v40  ;;  %v2738_v12 = vpop.xlane.xlu1 %2737 }
 0x3b9   : > { %v6562_v48 = vpop.eup %4457  ;;  %v2972_v4 = vmul.f32 %v4456_v24, %v6031_v57  ;;  %4471 = vrcp.f32 %v2738_v12  ;;  %v2732_v20 = vpop.xlane.xlu0 %2731 }
 0x3ba   : > { %v4460_v32 = vpop.eup %4459  ;;  %3183 = vst.msk [vmem:[%s5901_s6 + $0x198] sm:$0xff] %vm3131_vm2, %v2978_v49  ;;  %4473 = vrcp.f32 %v2732_v20 }
 0x3bb   : > { %v4462_v51 = vpop.eup %4461  ;;  %3180 = vst.msk [vmem:[%s5901_s6 + $0x180] sm:$0xff] %vm3131_vm2, %v2972_v4  ;;  %v2974_v26 = vmul.f32 %v4460_v32, %v6040_v5  ;;  %2873 = vadd.xlane.f32.xlu1 %v6562_v48 }
 0x3bc   : > { %v2984_v46 = vmul.f32 %v4462_v51, %v6049_v33  ;;  %v2734_v39 = vpop.xlane.xlu1 %2733 }
 0x3bd   : > { %3181 = vst.msk [vmem:[%s5901_s6 + $0x188] sm:$0xff] %vm3131_vm2, %v2974_v26  ;;  %4475 = vrcp.f32 %v2734_v39  ;;  %v2744_v57 = vpop.xlane.xlu0 %2743 }
 0x3be   : > { %v4464_v60 = vpop.eup %4463  ;;  %3186 = vst.msk [vmem:[%s5901_s6 + $0x1b0] sm:$0xff] %vm3131_vm2, %v2984_v46  ;;  %4477 = vrcp.f32 %v2744_v57 }
 0x3bf   : > { %v4466_v24 = vpop.eup %4465  ;;  %v2986_v44 = vmul.f32 %v4464_v60, %v6064_v58 }
 0x3c0   : > { %v2980_v5 = vmul.f32 %v4466_v24, %v6068_v36  ;;  %v2746_v49 = vpop.xlane.xlu1 %2745 }
 0x3c1   : > { %3187 = vst.msk [vmem:[%s5901_s6 + $0x1b8] sm:$0xff] %vm3131_vm2, %v2986_v44  ;;  %4479 = vrcp.f32 %v2746_v49  ;;  %v2740_v33 = vpop.xlane.xlu0 %2739 }
 0x3c2   : > { %v4468_v12 = vpop.eup %4467  ;;  %3184 = vst.msk [vmem:[%s5901_s6 + $0x1a0] sm:$0xff] %vm3131_vm2, %v2980_v5  ;;  %4481 = vrcp.f32 %v2740_v33 }
 0x3c3   : > { %v4470_v4 = vpop.eup %4469  ;;  %v2982_v20 = vmul.f32 %v4468_v12, %v6080_v55  ;;  %v7219_v12 = vld [vmem:[#allocation12_spill] sm:$0xff] }
 0x3c4   : > { %v2992_v32 = vmul.f32 %v4470_v4, %v6082_v43  ;;  %v2742_v58 = vpop.xlane.xlu1 %2741 }
 0x3c5   : > { %3185 = vst.msk [vmem:[%s5901_s6 + $0x1a8] sm:$0xff] %vm3131_vm2, %v2982_v20  ;;  %4483 = vrcp.f32 %v2742_v58  ;;  %v2752_v36 = vpop.xlane.xlu0 %2751  ;;  %v7220_v58 = vld [vmem:[#allocation13_spill] sm:$0xff] }
 0x3c6   : > { %v4472_v51 = vpop.eup %4471  ;;  %3190 = vst.msk [vmem:[%s5901_s6 + $0x1d0] sm:$0xff] %vm3131_vm2, %v2992_v32  ;;  %4485 = vrcp.f32 %v2752_v36 }
 0x3c7   : > { %v4474_v26 = vpop.eup %4473  ;;  %v2994_v46 = vmul.f32 %v4472_v51, %v6090_v0  ;;  %v7221_v51 = vld [vmem:[#allocation48_spill] sm:$0xff] }
 0x3c8   : > { %v2988_v39 = vmul.f32 %v4474_v26, %v6093_v21  ;;  %v2754_v55 = vpop.xlane.xlu1 %2753 }
 0x3c9   : > { %3191 = vst.msk [vmem:[%s5901_s6 + $0x1d8] sm:$0xff] %vm3131_vm2, %v2994_v46  ;;  %4487 = vrcp.f32 %v2754_v55  ;;  %v2748_v43 = vpop.xlane.xlu0 %2747 }
 0x3ca   : > { %v4476_v57 = vpop.eup %4475  ;;  %3188 = vst.msk [vmem:[%s5901_s6 + $0x1c0] sm:$0xff] %vm3131_vm2, %v2988_v39  ;;  %4489 = vrcp.f32 %v2748_v43  ;;  %v7222_v43 = vld [vmem:[#allocation14_spill] sm:$0xff] }
 0x3cb   : > { %v4478_v60 = vpop.eup %4477  ;;  %v2990_v24 = vmul.f32 %v4476_v57, %v6104_v34 }
 0x3cc   : > { %v3000_v44 = vmul.f32 %v4478_v60, %v6109_v27  ;;  %v2750_v0 = vpop.xlane.xlu1 %2749 }
 0x3cd   : > { %3189 = vst.msk [vmem:[%s5901_s6 + $0x1c8] sm:$0xff] %vm3131_vm2, %v2990_v24  ;;  %4491 = vrcp.f32 %v2750_v0  ;;  %v2760_v21 = vpop.xlane.xlu0 %2759 }
 0x3ce   : > { %v4480_v5 = vpop.eup %4479  ;;  %3194 = vst.msk [vmem:[%s5901_s6 + $0x1f0] sm:$0xff] %vm3131_vm2, %v3000_v44  ;;  %4493 = vrcp.f32 %v2760_v21 }
 0x3cf   : > { %v4482_v49 = vpop.eup %4481  ;;  %v3002_v33 = vmul.f32 %v4480_v5, %v6120_v28  ;;  %v7223_v5 = vld [vmem:[#allocation49_spill] sm:$0xff] }
 0x3d0   : > { %v2996_v4 = vmul.f32 %v4482_v49, %v7219_v12  ;;  %v2762_v34 = vpop.xlane.xlu1 %2761 }
 0x3d1   : > { %3195 = vst.msk [vmem:[%s5901_s6 + $0x1f8] sm:$0xff] %vm3131_vm2, %v3002_v33  ;;  %4495 = vrcp.f32 %v2762_v34  ;;  %v2756_v27 = vpop.xlane.xlu0 %2755 }
 0x3d2   : > { %v4484_v20 = vpop.eup %4483  ;;  %3192 = vst.msk [vmem:[%s5901_s6 + $0x1e0] sm:$0xff] %vm3131_vm2, %v2996_v4  ;;  %4497 = vrcp.f32 %v2756_v27 }
 0x3d3   : > { %v4486_v32 = vpop.eup %4485  ;;  %v2998_v36 = vmul.f32 %v4484_v20, %v7220_v58  ;;  %v7224_v20 = vld [vmem:[#allocation15_spill] sm:$0xff] }
 0x3d4   : > { %v3008_v26 = vmul.f32 %v4486_v32, %v7221_v51  ;;  %v2758_v28 = vpop.xlane.xlu1 %2757 }
 0x3d5   : > { %3193 = vst.msk [vmem:[%s5901_s6 + $0x1e8] sm:$0xff] %vm3131_vm2, %v2998_v36  ;;  %4499 = vrcp.f32 %v2758_v28  ;;  %v2768_v46 = vpop.xlane.xlu0 %2767  ;;  %v7225_v28 = vld [vmem:[#allocation16_spill] sm:$0xff] }
 0x3d6   : > { %v4488_v39 = vpop.eup %4487  ;;  %3198 = vst.msk [vmem:[%s5901_s6 + $0x210] sm:$0xff] %vm3131_vm2, %v3008_v26  ;;  %4501 = vrcp.f32 %v2768_v46 }
 0x3d7   : > { %v4490_v55 = vpop.eup %4489  ;;  %v3010_v57 = vmul.f32 %v4488_v39, %v7222_v43 }
 0x3d8   : > { %v3004_v60 = vmul.f32 %v4490_v55, %v6140_v22  ;;  %v2770_v24 = vpop.xlane.xlu1 %2769 }
 0x3d9   : > { %3199 = vst.msk [vmem:[%s5901_s6 + $0x218] sm:$0xff] %vm3131_vm2, %v3010_v57  ;;  %4503 = vrcp.f32 %v2770_v24  ;;  %v2764_v44 = vpop.xlane.xlu0 %2763  ;;  %v7226_v57 = vld [vmem:[#allocation17_spill] sm:$0xff]  ;;  %v7227_v24 = vld [vmem:[#allocation18_spill] sm:$0xff] }
 0x3da   : > { %v4492_v0 = vpop.eup %4491  ;;  %3196 = vst.msk [vmem:[%s5901_s6 + $0x200] sm:$0xff] %vm3131_vm2, %v3004_v60  ;;  %4505 = vrcp.f32 %v2764_v44 }
 0x3db   : > { %v4494_v21 = vpop.eup %4493  ;;  %v3006_v49 = vmul.f32 %v4492_v0, %v7223_v5 }
 0x3dc   : > { %v3016_v33 = vmul.f32 %v4494_v21, %v6160_v10  ;;  %v2766_v12 = vpop.xlane.xlu1 %2765 }
 0x3dd   : > { %3197 = vst.msk [vmem:[%s5901_s6 + $0x208] sm:$0xff] %vm3131_vm2, %v3006_v49  ;;  %4507 = vrcp.f32 %v2766_v12  ;;  %v2776_v22 = vpop.xlane.xlu0 %2775  ;;  %v7228_v49 = vld [vmem:[#allocation19_spill] sm:$0xff]  ;;  %v7229_v12 = vld [vmem:[#allocation54_spill] sm:$0xff] }
 0x3de   : > { %v4496_v4 = vpop.eup %4495  ;;  %3202 = vst.msk [vmem:[%s5901_s6 + $0x230] sm:$0xff] %vm3131_vm2, %v3016_v33  ;;  %4509 = vrcp.f32 %v2776_v22 }
 0x3df   : > { %v4498_v34 = vpop.eup %4497  ;;  %v3018_v27 = vmul.f32 %v4496_v4, %v6173_v53 }
 0x3e0   : > { %v3012_v32 = vmul.f32 %v4498_v34, %v7224_v20  ;;  %v2778_v58 = vpop.xlane.xlu1 %2777 }
 0x3e1   : > { %3203 = vst.msk [vmem:[%s5901_s6 + $0x238] sm:$0xff] %vm3131_vm2, %v3018_v27  ;;  %4511 = vrcp.f32 %v2778_v58  ;;  %v2772_v10 = vpop.xlane.xlu0 %2771 }
 0x3e2   : > { %v4500_v36 = vpop.eup %4499  ;;  %3200 = vst.msk [vmem:[%s5901_s6 + $0x220] sm:$0xff] %vm3131_vm2, %v3012_v32  ;;  %4513 = vrcp.f32 %v2772_v10  ;;  %v7230_v32 = vld [vmem:[#allocation20_spill] sm:$0xff] }
 0x3e3   : > { %v4502_v51 = vpop.eup %4501  ;;  %v3014_v26 = vmul.f32 %v4500_v36, %v6193_v59 }
 0x3e4   : > { %v3024_v46 = vmul.f32 %v4502_v51, %v7225_v28  ;;  %v2774_v53 = vpop.xlane.xlu1 %2773 }
 0x3e5   : > { %3201 = vst.msk [vmem:[%s5901_s6 + $0x228] sm:$0xff] %vm3131_vm2, %v3014_v26  ;;  %4515 = vrcp.f32 %v2774_v53  ;;  %v2784_v39 = vpop.xlane.xlu0 %2783 }
 0x3e6   : > { %v4504_v55 = vpop.eup %4503  ;;  %3206 = vst.msk [vmem:[%s5901_s6 + $0x250] sm:$0xff] %vm3131_vm2, %v3024_v46  ;;  %4517 = vrcp.f32 %v2784_v39 }
 0x3e7   : > { %v4506_v43 = vpop.eup %4505  ;;  %v3026_v60 = vmul.f32 %v4504_v55, %v7226_v57 }
 0x3e8   : > { %v3020_v44 = vmul.f32 %v4506_v43, %v7227_v24  ;;  %v2786_v59 = vpop.xlane.xlu1 %2785 }
 0x3e9   : > { %3207 = vst.msk [vmem:[%s5901_s6 + $0x258] sm:$0xff] %vm3131_vm2, %v3026_v60  ;;  %4519 = vrcp.f32 %v2786_v59  ;;  %v2780_v0 = vpop.xlane.xlu0 %2779  ;;  %v7231_v60 = vld [vmem:[#allocation55_spill] sm:$0xff] }
 0x3ea   : > { %v4508_v21 = vpop.eup %4507  ;;  %3204 = vst.msk [vmem:[%s5901_s6 + $0x240] sm:$0xff] %vm3131_vm2, %v3020_v44  ;;  %4521 = vrcp.f32 %v2780_v0  ;;  %v7232_v0 = vld [vmem:[#allocation21_spill] sm:$0xff] }
 0x3eb   : > { %v4510_v5 = vpop.eup %4509  ;;  %v3022_v33 = vmul.f32 %v4508_v21, %v7228_v49 }
 0x3ec   : > { %v3032_v22 = vmul.f32 %v4510_v5, %v7229_v12  ;;  %v2782_v4 = vpop.xlane.xlu1 %2781  ;;  %v7233_v5 = vld [vmem:[#allocation56_spill] sm:$0xff] }
 0x3ed   : > { %3205 = vst.msk [vmem:[%s5901_s6 + $0x248] sm:$0xff] %vm3131_vm2, %v3022_v33  ;;  %4523 = vrcp.f32 %v2782_v4  ;;  %v2792_v34 = vpop.xlane.xlu0 %2791  ;;  %v7234_v4 = vld [vmem:[#allocation22_spill] sm:$0xff] }
 0x3ee   : > { %v4512_v27 = vpop.eup %4511  ;;  %3210 = vst.msk [vmem:[%s5901_s6 + $0x270] sm:$0xff] %vm3131_vm2, %v3032_v22  ;;  %4525 = vrcp.f32 %v2792_v34 }
 0x3ef   : > { %v4514_v20 = vpop.eup %4513  ;;  %v3034_v58 = vmul.f32 %v4512_v27, %v7230_v32 }
 0x3f0   : > { %v3028_v10 = vmul.f32 %v4514_v20, %v6243_v41  ;;  %v2794_v36 = vpop.xlane.xlu1 %2793 }
 0x3f1   : > { %3211 = vst.msk [vmem:[%s5901_s6 + $0x278] sm:$0xff] %vm3131_vm2, %v3034_v58  ;;  %4527 = vrcp.f32 %v2794_v36  ;;  %v2788_v51 = vpop.xlane.xlu0 %2787 }
 0x3f2   : > { %v4516_v26 = vpop.eup %4515  ;;  %3208 = vst.msk [vmem:[%s5901_s6 + $0x260] sm:$0xff] %vm3131_vm2, %v3028_v10  ;;  %4529 = vrcp.f32 %v2788_v51 }
 0x3f3   : > { %v4518_v28 = vpop.eup %4517  ;;  %v3030_v46 = vmul.f32 %v4516_v26, %v6252_v7 }
 0x3f4   : > { %v3040_v53 = vmul.f32 %v4518_v28, %v6261_v62  ;;  %v2790_v39 = vpop.xlane.xlu1 %2789 }
 0x3f5   : > { %3209 = vst.msk [vmem:[%s5901_s6 + $0x268] sm:$0xff] %vm3131_vm2, %v3030_v46  ;;  %4531 = vrcp.f32 %v2790_v39  ;;  %v2800_v41 = vpop.xlane.xlu0 %2799  ;;  %v7235_v39 = vld [vmem:[#allocation57_spill] sm:$0xff] }
 0x3f6   : > { %v4520_v55 = vpop.eup %4519  ;;  %3214 = vst.msk [vmem:[%s5901_s6 + $0x290] sm:$0xff] %vm3131_vm2, %v3040_v53  ;;  %4533 = vrcp.f32 %v2800_v41 }
 0x3f7   : > { %v4522_v43 = vpop.eup %4521  ;;  %v3042_v57 = vmul.f32 %v4520_v55, %v6274_v63 }
 0x3f8   : > { %v3036_v24 = vmul.f32 %v4522_v43, %v7231_v60  ;;  %v2802_v7 = vpop.xlane.xlu1 %2801 }
 0x3f9   : > { %3215 = vst.msk [vmem:[%s5901_s6 + $0x298] sm:$0xff] %vm3131_vm2, %v3042_v57  ;;  %4535 = vrcp.f32 %v2802_v7  ;;  %v2796_v62 = vpop.xlane.xlu0 %2795  ;;  %v7236_v57 = vld [vmem:[#allocation23_spill] sm:$0xff] }
 0x3fa   : > { %v4524_v44 = vpop.eup %4523  ;;  %3212 = vst.msk [vmem:[%s5901_s6 + $0x280] sm:$0xff] %vm3131_vm2, %v3036_v24  ;;  %4537 = vrcp.f32 %v2796_v62  ;;  %v7237_v24 = vld [vmem:[#allocation24_spill] sm:$0xff] }
 0x3fb   : > { %v4526_v59 = vpop.eup %4525  ;;  %v3038_v21 = vmul.f32 %v4524_v44, %v7232_v0  ;;  %v7238_v0 = vld [vmem:[#allocation25_spill] sm:$0xff] }
 0x3fc   : > { %v3048_v49 = vmul.f32 %v4526_v59, %v7233_v5  ;;  %v2798_v63 = vpop.xlane.xlu1 %2797 }
 0x3fd   : > { %3213 = vst.msk [vmem:[%s5901_s6 + $0x288] sm:$0xff] %vm3131_vm2, %v3038_v21  ;;  %4539 = vrcp.f32 %v2798_v63  ;;  %v2808_v33 = vpop.xlane.xlu0 %2807 }
 0x3fe   : > { %v4528_v12 = vpop.eup %4527  ;;  %3218 = vst.msk [vmem:[%s5901_s6 + $0x2b0] sm:$0xff] %vm3131_vm2, %v3048_v49  ;;  %4541 = vrcp.f32 %v2808_v33 }
 0x3ff   : > { %v4530_v22 = vpop.eup %4529  ;;  %v3050_v34 = vmul.f32 %v4528_v12, %v7234_v4 }
 0x400   : > { %v3044_v27 = vmul.f32 %v4530_v22, %v6303_v13  ;;  %v2810_v20 = vpop.xlane.xlu1 %2809 }
 0x401   : > { %3219 = vst.msk [vmem:[%s5901_s6 + $0x2b8] sm:$0xff] %vm3131_vm2, %v3050_v34  ;;  %4543 = vrcp.f32 %v2810_v20  ;;  %v2804_v32 = vpop.xlane.xlu0 %2803 }
 0x402   : > { %v4532_v58 = vpop.eup %4531  ;;  %3216 = vst.msk [vmem:[%s5901_s6 + $0x2a0] sm:$0xff] %vm3131_vm2, %v3044_v27  ;;  %4545 = vrcp.f32 %v2804_v32 }
 0x403   : > { %v4534_v10 = vpop.eup %4533  ;;  %v3046_v36 = vmul.f32 %v4532_v58, %v6312_v47  ;;  %v7239_v58 = vld [vmem:[#allocation26_spill] sm:$0xff] }
 0x404   : > { %v3056_v51 = vmul.f32 %v4534_v10, %v6321_v45  ;;  %v2806_v26 = vpop.xlane.xlu1 %2805 }
 0x405   : > { %3217 = vst.msk [vmem:[%s5901_s6 + $0x2a8] sm:$0xff] %vm3131_vm2, %v3046_v36  ;;  %4547 = vrcp.f32 %v2806_v26  ;;  %v2816_v13 = vpop.xlane.xlu0 %2815  ;;  %v7240_v26 = vld [vmem:[#allocation27_spill] sm:$0xff] }
 0x406   : > { %v4536_v28 = vpop.eup %4535  ;;  %3222 = vst.msk [vmem:[%s5901_s6 + $0x2d0] sm:$0xff] %vm3131_vm2, %v3056_v51  ;;  %4549 = vrcp.f32 %v2816_v13 }
 0x407   : > { %v4538_v46 = vpop.eup %4537  ;;  %v3058_v53 = vmul.f32 %v4536_v28, %v6334_v19  ;;  %v7241_v28 = vld [vmem:[#allocation28_spill] sm:$0xff] }
 0x408   : > { %v3052_v41 = vmul.f32 %v4538_v46, %v7235_v39  ;;  %v2818_v47 = vpop.xlane.xlu1 %2817 }
 0x409   : > { %3223 = vst.msk [vmem:[%s5901_s6 + $0x2d8] sm:$0xff] %vm3131_vm2, %v3058_v53  ;;  %4551 = vrcp.f32 %v2818_v47  ;;  %v2812_v45 = vpop.xlane.xlu0 %2811  ;;  %v7242_v47 = vld [vmem:[#allocation29_spill] sm:$0xff] }
 0x40a   : > { %v4540_v55 = vpop.eup %4539  ;;  %3220 = vst.msk [vmem:[%s5901_s6 + $0x2c0] sm:$0xff] %vm3131_vm2, %v3052_v41  ;;  %4553 = vrcp.f32 %v2812_v45 }
 0x40b   : > { %v4542_v43 = vpop.eup %4541  ;;  %v3054_v60 = vmul.f32 %v4540_v55, %v7236_v57 }
 0x40c   : > { %v3064_v7 = vmul.f32 %v4542_v43, %v7237_v24  ;;  %v2814_v19 = vpop.xlane.xlu1 %2813 }
 0x40d   : > { %3221 = vst.msk [vmem:[%s5901_s6 + $0x2c8] sm:$0xff] %vm3131_vm2, %v3054_v60  ;;  %4555 = vrcp.f32 %v2814_v19  ;;  %v2824_v62 = vpop.xlane.xlu0 %2823 }
 0x40e   : > { %v4544_v44 = vpop.eup %4543  ;;  %3226 = vst.msk [vmem:[%s5901_s6 + $0x2f0] sm:$0xff] %vm3131_vm2, %v3064_v7  ;;  %4557 = vrcp.f32 %v2824_v62 }
 0x40f   : > { %v4546_v59 = vpop.eup %4545  ;;  %v3066_v21 = vmul.f32 %v4544_v44, %v7238_v0 }
 0x410   : > { %v3060_v5 = vmul.f32 %v4546_v59, %v6363_v56  ;;  %v2826_v49 = vpop.xlane.xlu1 %2825 }
 0x411   : > { %3227 = vst.msk [vmem:[%s5901_s6 + $0x2f8] sm:$0xff] %vm3131_vm2, %v3066_v21  ;;  %4559 = vrcp.f32 %v2826_v49  ;;  %v2820_v63 = vpop.xlane.xlu0 %2819 }
 0x412   : > { %v4548_v33 = vpop.eup %4547  ;;  %3224 = vst.msk [vmem:[%s5901_s6 + $0x2e0] sm:$0xff] %vm3131_vm2, %v3060_v5  ;;  %4561 = vrcp.f32 %v2820_v63  ;;  %v7243_v63 = vld [vmem:[#allocation30_spill] sm:$0xff] }
 0x413   : > { %v4550_v12 = vpop.eup %4549  ;;  %v3062_v22 = vmul.f32 %v4548_v33, %v6372_v6 }
 0x414   : > { %v3072_v4 = vmul.f32 %v4550_v12, %v6381_v31  ;;  %v2822_v34 = vpop.xlane.xlu1 %2821 }
 0x415   : > { %3225 = vst.msk [vmem:[%s5901_s6 + $0x2e8] sm:$0xff] %vm3131_vm2, %v3062_v22  ;;  %4563 = vrcp.f32 %v2822_v34  ;;  %v2832_v56 = vpop.xlane.xlu0 %2831 }
 0x416   : > { %v4552_v27 = vpop.eup %4551  ;;  %3230 = vst.msk [vmem:[%s5901_s6 + $0x310] sm:$0xff] %vm3131_vm2, %v3072_v4  ;;  %4565 = vrcp.f32 %v2832_v56  ;;  %v7244_v56 = vld [vmem:[#allocation62_spill] sm:$0xff] }
 0x417   : > { %v4554_v20 = vpop.eup %4553  ;;  %v3074_v32 = vmul.f32 %v4552_v27, %v6394_v2 }
 0x418   : > { %v3068_v10 = vmul.f32 %v4554_v20, %v7239_v58  ;;  %v2834_v6 = vpop.xlane.xlu1 %2833 }
 0x419   : > { %3231 = vst.msk [vmem:[%s5901_s6 + $0x318] sm:$0xff] %vm3131_vm2, %v3074_v32  ;;  %4567 = vrcp.f32 %v2834_v6  ;;  %v2828_v31 = vpop.xlane.xlu0 %2827 }
 0x41a   : > { %v4556_v36 = vpop.eup %4555  ;;  %3228 = vst.msk [vmem:[%s5901_s6 + $0x300] sm:$0xff] %vm3131_vm2, %v3068_v10  ;;  %4569 = vrcp.f32 %v2828_v31 }
 0x41b   : > { %v4558_v51 = vpop.eup %4557  ;;  %v3070_v13 = vmul.f32 %v4556_v36, %v7240_v26 }
 0x41c   : > { %v3080_v46 = vmul.f32 %v4558_v51, %v7241_v28  ;;  %v2830_v2 = vpop.xlane.xlu1 %2829 }
 0x41d   : > { %3229 = vst.msk [vmem:[%s5901_s6 + $0x308] sm:$0xff] %vm3131_vm2, %v3070_v13  ;;  %4571 = vrcp.f32 %v2830_v2  ;;  %v2840_v53 = vpop.xlane.xlu0 %2839 }
 0x41e   : > { %v4560_v39 = vpop.eup %4559  ;;  %3234 = vst.msk [vmem:[%s5901_s6 + $0x330] sm:$0xff] %vm3131_vm2, %v3080_v46  ;;  %4573 = vrcp.f32 %v2840_v53 }
 0x41f   : > { %v4562_v41 = vpop.eup %4561  ;;  %v3082_v45 = vmul.f32 %v4560_v39, %v7242_v47 }
 0x420   : > { %v3076_v55 = vmul.f32 %v4562_v41, %v6423_v52  ;;  %v2842_v43 = vpop.xlane.xlu1 %2841 }
 0x421   : > { %3235 = vst.msk [vmem:[%s5901_s6 + $0x338] sm:$0xff] %vm3131_vm2, %v3082_v45  ;;  %4575 = vrcp.f32 %v2842_v43  ;;  %v2836_v57 = vpop.xlane.xlu0 %2835 }
 0x422   : > { %v4564_v60 = vpop.eup %4563  ;;  %3232 = vst.msk [vmem:[%s5901_s6 + $0x320] sm:$0xff] %vm3131_vm2, %v3076_v55  ;;  %4577 = vrcp.f32 %v2836_v57 }
 0x423   : > { %v4566_v24 = vpop.eup %4565  ;;  %v3078_v7 = vmul.f32 %v4564_v60, %v6432_v50 }
 0x424   : > { %v3088_v19 = vmul.f32 %v4566_v24, %v6441_v3  ;;  %v2838_v62 = vpop.xlane.xlu1 %2837 }
 0x425   : > { %3233 = vst.msk [vmem:[%s5901_s6 + $0x328] sm:$0xff] %vm3131_vm2, %v3078_v7  ;;  %4579 = vrcp.f32 %v2838_v62  ;;  %v2848_v52 = vpop.xlane.xlu0 %2847 }
 0x426   : > { %v4568_v44 = vpop.eup %4567  ;;  %3238 = vst.msk [vmem:[%s5901_s6 + $0x350] sm:$0xff] %vm3131_vm2, %v3088_v19  ;;  %4581 = vrcp.f32 %v2848_v52 }
 0x427   : > { %v4570_v59 = vpop.eup %4569  ;;  %v3090_v0 = vmul.f32 %v4568_v44, %v6452_v42 }
 0x428   : > { %v3084_v21 = vmul.f32 %v4570_v59, %v6456_v15  ;;  %v2850_v50 = vpop.xlane.xlu1 %2849 }
 0x429   : > { %3239 = vst.msk [vmem:[%s5901_s6 + $0x358] sm:$0xff] %vm3131_vm2, %v3090_v0  ;;  %4583 = vrcp.f32 %v2850_v50  ;;  %v2844_v3 = vpop.xlane.xlu0 %2843 }
 0x42a   : > { %v4572_v5 = vpop.eup %4571  ;;  %3236 = vst.msk [vmem:[%s5901_s6 + $0x340] sm:$0xff] %vm3131_vm2, %v3084_v21  ;;  %4585 = vrcp.f32 %v2844_v3 }
 0x42b   : > { %v4574_v49 = vpop.eup %4573  ;;  %v3086_v33 = vmul.f32 %v4572_v5, %v7243_v63 }
 0x42c   : > { %v3096_v12 = vmul.f32 %v4574_v49, %v6466_v14  ;;  %v2846_v42 = vpop.xlane.xlu1 %2845 }
 0x42d   : > { %3237 = vst.msk [vmem:[%s5901_s6 + $0x348] sm:$0xff] %vm3131_vm2, %v3086_v33  ;;  %4587 = vrcp.f32 %v2846_v42  ;;  %v2856_v15 = vpop.xlane.xlu0 %2855 }
 0x42e   : > { %v4576_v22 = vpop.eup %4575  ;;  %3242 = vst.msk [vmem:[%s5901_s6 + $0x370] sm:$0xff] %vm3131_vm2, %v3096_v12  ;;  %4589 = vrcp.f32 %v2856_v15 }
 0x42f   : > { %v4578_v4 = vpop.eup %4577  ;;  %v3098_v34 = vmul.f32 %v4576_v22, %v6472_v23 }
 0x430   : > { %v3092_v27 = vmul.f32 %v4578_v4, %v7244_v56  ;;  %v2858_v20 = vpop.xlane.xlu1 %2857 }
 0x431   : > { %3243 = vst.msk [vmem:[%s5901_s6 + $0x378] sm:$0xff] %vm3131_vm2, %v3098_v34  ;;  %4591 = vrcp.f32 %v2858_v20  ;;  %v2852_v14 = vpop.xlane.xlu0 %2851 }
 0x432   : > { %v4580_v32 = vpop.eup %4579  ;;  %3240 = vst.msk [vmem:[%s5901_s6 + $0x360] sm:$0xff] %vm3131_vm2, %v3092_v27  ;;  %4593 = vrcp.f32 %v2852_v14 }
 0x433   : > { %v4582_v58 = vpop.eup %4581  ;;  %v3094_v10 = vmul.f32 %v4580_v32, %v6483_v18 }
 0x434   : > { %v3104_v6 = vmul.f32 %v4582_v58, %v6490_v30  ;;  %v2854_v23 = vpop.xlane.xlu1 %2853 }
 0x435   : > { %3241 = vst.msk [vmem:[%s5901_s6 + $0x368] sm:$0xff] %vm3131_vm2, %v3094_v10  ;;  %4595 = vrcp.f32 %v2854_v23  ;;  %v2864_v31 = vpop.xlane.xlu0 %2863 }
 0x436   : > { %v4584_v36 = vpop.eup %4583  ;;  %3246 = vst.msk [vmem:[%s5901_s6 + $0x390] sm:$0xff] %vm3131_vm2, %v3104_v6  ;;  %4597 = vrcp.f32 %v2864_v31 }
 0x437   : > { %v4586_v51 = vpop.eup %4585  ;;  %v3106_v26 = vmul.f32 %v4584_v36, %v6500_v16 }
 0x438   : > { %v3100_v13 = vmul.f32 %v4586_v51, %v6502_v8  ;;  %v2866_v18 = vpop.xlane.xlu1 %2865 }
 0x439   : > { %3247 = vst.msk [vmem:[%s5901_s6 + $0x398] sm:$0xff] %vm3131_vm2, %v3106_v26  ;;  %4599 = vrcp.f32 %v2866_v18  ;;  %v2860_v30 = vpop.xlane.xlu0 %2859 }
 0x43a   : > { %v4588_v28 = vpop.eup %4587  ;;  %3244 = vst.msk [vmem:[%s5901_s6 + $0x380] sm:$0xff] %vm3131_vm2, %v3100_v13  ;;  %4601 = vrcp.f32 %v2860_v30 }
 0x43b   : > { %v4590_v46 = vpop.eup %4589  ;;  %v3102_v2 = vmul.f32 %v4588_v28, %v6507_v38 }
 0x43c   : > { %v3112_v53 = vmul.f32 %v4590_v46, %v6510_v25  ;;  %v2862_v16 = vpop.xlane.xlu1 %2861 }
 0x43d   : > { %3245 = vst.msk [vmem:[%s5901_s6 + $0x388] sm:$0xff] %vm3131_vm2, %v3102_v2  ;;  %4603 = vrcp.f32 %v2862_v16  ;;  %v2868_v8 = vpop.xlane.xlu0 %2867 }
 0x43e   : > { %v4592_v39 = vpop.eup %4591  ;;  %3250 = vst.msk [vmem:[%s5901_s6 + $0x3b0] sm:$0xff] %vm3131_vm2, %v3112_v53  ;;  %4605 = vrcp.f32 %v2868_v8 }
 0x43f   : > { %v4594_v41 = vpop.eup %4593  ;;  %v3114_v47 = vmul.f32 %v4592_v39, %v6515_v9 }
 0x440   : > { %v3108_v45 = vmul.f32 %v4594_v41, %v6519_v29  ;;  %v2870_v38 = vpop.xlane.xlu1 %2869 }
 0x441   : > { %3251 = vst.msk [vmem:[%s5901_s6 + $0x3b8] sm:$0xff] %vm3131_vm2, %v3114_v47  ;;  %4607 = vrcp.f32 %v2870_v38  ;;  %v2872_v25 = vpop.xlane.xlu0 %2871 }
 0x442   : > { %v4596_v55 = vpop.eup %4595  ;;  %3248 = vst.msk [vmem:[%s5901_s6 + $0x3a0] sm:$0xff] %vm3131_vm2, %v3108_v45  ;;  %4609 = vrcp.f32 %v2872_v25 }
 0x443   : > { %v4598_v43 = vpop.eup %4597  ;;  %v3110_v57 = vmul.f32 %v4596_v55, %v6526_v11 }
 0x444   : > { %v3120_v9 = vmul.f32 %v4598_v43, %v6531_v37  ;;  %v2874_v60 = vpop.xlane.xlu1 %2873 }
 0x445   : > { %3249 = vst.msk [vmem:[%s5901_s6 + $0x3a8] sm:$0xff] %vm3131_vm2, %v3110_v57  ;;  %4611 = vrcp.f32 %v2874_v60 }
 0x446   : > { %v4600_v29 = vpop.eup %4599  ;;  %3254 = vst.msk [vmem:[%s5901_s6 + $0x3d0] sm:$0xff] %vm3131_vm2, %v3120_v9 }
 0x447   : > { %v4602_v24 = vpop.eup %4601  ;;  %v3122_v7 = vmul.f32 %v4600_v29, %v6540_v54 }
 0x448   : > { %v3116_v19 = vmul.f32 %v4602_v24, %v6542_v1 }
 0x449   : > { %3255 = vst.msk [vmem:[%s5901_s6 + $0x3d8] sm:$0xff] %vm3131_vm2, %v3122_v7 }
 0x44a   : > { %v4604_v11 = vpop.eup %4603  ;;  %3252 = vst.msk [vmem:[%s5901_s6 + $0x3c0] sm:$0xff] %vm3131_vm2, %v3116_v19 }
 0x44b   : > { %v4606_v37 = vpop.eup %4605  ;;  %v3118_v62 = vmul.f32 %v4604_v11, %v6546_v35 }
 0x44c   : > { %v3124_v52 = vmul.f32 %v4606_v37, %v6548_v61 }
 0x44d   : > { %3253 = vst.msk [vmem:[%s5901_s6 + $0x3c8] sm:$0xff] %vm3131_vm2, %v3118_v62 }
 0x44e   : > { %v4608_v44 = vpop.eup %4607  ;;  %3256 = vst.msk [vmem:[%s5901_s6 + $0x3e0] sm:$0xff] %vm3131_vm2, %v3124_v52 }
 0x44f   : > { %v4610_v54 = vpop.eup %4609  ;;  %v3126_v59 = vmul.f32 %v4608_v44, %v6555_v17 }
 0x450   : > { %v3128_v1 = vmul.f32 %v4610_v54, %v6552_v40 }
 0x451   : > { %3257 = vst.msk [vmem:[%s5901_s6 + $0x3e8] sm:$0xff] %vm3131_vm2, %v3126_v59 }
 0x452   : > { %v4612_v0 = vpop.eup %4611  ;;  %3258 = vst.msk [vmem:[%s5901_s6 + $0x3f0] sm:$0xff] %vm3131_vm2, %v3128_v1 }
 0x453   : > { %v3130_v21 = vmul.f32 %v4612_v0, %v6562_v48 }
 0x455   : > { %3259 = vst.msk [vmem:[%s5901_s6 + $0x3f8] sm:$0xff] %vm3131_vm2, %v3130_v21 }
 0x456 PF: > { %s15_s18 = sadd.s32 1, %s4621_s18  }
 0x457   : > { %p12_p4 = scmp.ge.s32.totalorder %s15_s18, 4  }
 0x459   :  { %14 = sbr.rel (!%p12_p4) target bundleno = 1 (0x1), region = 70 }

</bundles_post_ra>
